<compile_context>
chip_gen: v7x
topology: tpu7x:2x2x1
jax: 0.10.0
libtpu: 0.0.40
codegen_flags: <defaults>
</compile_context>

<pallas_src>
import functools

import jax
import jax.numpy as jnp
from jax.experimental import pallas as pl
from jax.experimental.pallas import tpu as pltpu


def _round_up(x, m):
    return ((x + m - 1) // m) * m


# ----------------------------------------------------------------------------
# Pallas kernels
# ----------------------------------------------------------------------------
def _conv_taps_kernel(x_ref, w_ref, b_ref, o_ref, *, offsets, m_wide, activation):
    """Fused-im2col conv for one image (one grid step).

    x_ref : (1, rows, Cin)   spatially pre-padded, row-flattened NHWC input (bf16)
    w_ref : (T, Cin, Cout)   one (Cin, Cout) weight matrix per conv tap (bf16)
    b_ref : (1, Cout)        bias (f32)
    o_ref : (1, m_wide, Cout) "wide" output: row pitch = padded width; the last
                              K-1 columns of every row are junk the wrapper drops.

    Each tap is a contiguous static row-slice of the flattened padded input
    (offset = kh*Win + kw), so no im2col patches are materialized in HBM.
    """
    acc = jnp.dot(x_ref[0, pl.ds(offsets[0], m_wide), :], w_ref[0],
                  preferred_element_type=jnp.float32)
    for t in range(1, len(offsets)):
        acc = acc + jnp.dot(x_ref[0, pl.ds(offsets[t], m_wide), :], w_ref[t],
                            preferred_element_type=jnp.float32)
    acc = acc + b_ref[...]
    if activation:
        # Exact SiLU with a single EUP transcendental: sigmoid(x) = 0.5*tanh(x/2)+0.5
        acc = acc * (0.5 * jnp.tanh(0.5 * acc) + 0.5)
    o_ref[0] = acc.astype(o_ref.dtype)


def _final_conv_sample_kl_kernel(x_ref, w_ref, b_ref, eps_ref, mask_ref,
                                 feat_ref, kl_ref, *,
                                 offsets, m_wide, n_batch, z, inv_count):
    """Fused final conv (mean|logvar) + reparameterized sample + per-sample KL.

    Whole batch in a single grid step: weights/bias loaded once, no per-sample
    launch overhead. Outputs carry only the real z channels.
    """
    bias = b_ref[...]                      # (1, 2z) f32
    mask = mask_ref[...]                   # (m_wide, 1), 1.0 on valid columns
    w_taps = [w_ref[t] for t in range(len(offsets))]
    for nb in range(n_batch):
        acc = jnp.dot(x_ref[nb, pl.ds(offsets[0], m_wide), :], w_taps[0],
                      preferred_element_type=jnp.float32)
        for t in range(1, len(offsets)):
            acc = acc + jnp.dot(x_ref[nb, pl.ds(offsets[t], m_wide), :], w_taps[t],
                                preferred_element_type=jnp.float32)
        acc = acc + bias                   # (m_wide, 2z) f32
        mean = acc[:, :z]
        logvar = acc[:, z:]
        # One exp: std for the sample, std*std as the KL variance term.
        std = jnp.exp(0.5 * logvar)
        feat_ref[nb] = mean + eps_ref[nb] * std
        kl_elem = -0.5 * (1.0 + logvar - mean * mean - std * std)
        kl_val = jnp.sum(kl_elem * mask) * inv_count      # torch: flatten(1).mean(1)
        kl_ref[nb] = jnp.zeros((8, 128), jnp.float32) + kl_val


# ----------------------------------------------------------------------------
# Wrapper glue (XLA): spatial pad / space-to-depth / flatten only — no im2col.
# ----------------------------------------------------------------------------
def _prep_pad_flatten_3x3(x_nhwc):
    """Zero-pad H by (1,2), W by (1,1) and row-flatten for 3x3/stride-1 taps.
    (One extra bottom zero row keeps the widest tap slice in bounds.)"""
    n, h, w, c = x_nhwc.shape
    xp = jnp.pad(x_nhwc, ((0, 0), (1, 2), (1, 1), (0, 0)))
    win = w + 2
    return xp.reshape(n, (h + 3) * win, c), win


def _prep_s2d_2x2(x_nhwc):
    """stride-2 3x3 conv == stride-1 2x2 conv on the space-to-depth'd padded input."""
    n, h, w, c = x_nhwc.shape
    assert h % 2 == 0 and w % 2 == 0
    xp = jnp.pad(x_nhwc, ((0, 0), (1, 3), (1, 1), (0, 0)))    # (h+4, w+2), both even
    hh, wh = (h + 4) // 2, (w + 2) // 2
    y = xp.reshape(n, hh, 2, wh, 2, c).transpose(0, 1, 3, 2, 4, 5)
    return y.reshape(n, hh * wh, 4 * c), wh


def _vmem_limit_bytes(*block_bytes):
    """Double-buffered pipeline blocks + headroom, clamped to a TPU-safe range."""
    need = 2 * sum(int(b) for b in block_bytes) + (4 << 20)
    return int(min(max(need, 16 << 20), 48 << 20))


def conv3x3_fused(x_nhwc, w_taps, b, *, stride, out_dtype=jnp.bfloat16):
    """3x3 conv, padding=1, SiLU. stride in {1, 2}. Returns NHWC at true width."""
    n, h, w, _ = x_nhwc.shape
    if stride == 1:
        xf, win = _prep_pad_flatten_3x3(x_nhwc)
        ho, wo = h, w
        offsets = tuple(kh * win + kw for kh in range(3) for kw in range(3))
    elif stride == 2:
        xf, win = _prep_s2d_2x2(x_nhwc)
        ho, wo = h // 2, w // 2
        offsets = tuple(a * win + bb for a in range(2) for bb in range(2))
    else:
        raise ValueError(stride)

    rows, kin = xf.shape[1], xf.shape[2]
    tcount, kin_w, cout = w_taps.shape
    assert kin == kin_w, (kin, kin_w)
    m_wide = ho * win
    assert rows >= m_wide + offsets[-1], "padded input too short for tap slices"

    xf = xf.astype(jnp.bfloat16)
    w_bf = w_taps.astype(jnp.bfloat16)
    b2 = b.reshape(1, cout).astype(jnp.float32)

    kernel = functools.partial(_conv_taps_kernel, offsets=offsets,
                               m_wide=m_wide, activation=True)
    out_wide = pl.pallas_call(
        kernel,
        out_shape=jax.ShapeDtypeStruct((n, m_wide, cout), out_dtype),
        grid=(n,),
        in_specs=[
            pl.BlockSpec((1, rows, kin), lambda i: (i, 0, 0)),
            pl.BlockSpec((tcount, kin, cout), lambda i: (0, 0, 0)),
            pl.BlockSpec((1, cout), lambda i: (0, 0)),
        ],
        out_specs=pl.BlockSpec((1, m_wide, cout), lambda i: (i, 0, 0)),
        compiler_params=pltpu.CompilerParams(
            # one image per step: batch >= 2 keeps both v7x TensorCores busy
            dimension_semantics=("parallel",),
            vmem_limit_bytes=_vmem_limit_bytes(
                rows * kin * 2, tcount * kin * cout * 2, cout * 4,
                m_wide * cout * jnp.dtype(out_dtype).itemsize),
        ),
    )(xf, w_bf, b2)
    # Drop the K-1 junk columns of the wide layout -> (N, Ho, Wo, Cout) NHWC.
    return out_wide.reshape(n, ho, win, cout)[:, :, :wo, :]


def final_conv_sample_kl(x_nhwc, w_taps, b, eps_nchw):
    """Fused final 3x3 conv -> (mean, logvar) -> reparameterized sample + KL."""
    n, h, w, _ = x_nhwc.shape
    z = eps_nchw.shape[1]
    xf, win = _prep_pad_flatten_3x3(x_nhwc)
    ho, wo = h, w
    offsets = tuple(kh * win + kw for kh in range(3) for kw in range(3))
    rows, kin = xf.shape[1], xf.shape[2]
    tcount = w_taps.shape[0]
    m_wide = ho * win
    assert rows >= m_wide + offsets[-1]

    xf = xf.astype(jnp.bfloat16)
    w_bf = w_taps.astype(jnp.bfloat16)
    b2 = b.reshape(1, 2 * z).astype(jnp.float32)

    # eps in the same "wide" (row pitch = win) layout, true z lanes only.
    eps_nhwc = jnp.transpose(eps_nchw.astype(jnp.float32), (0, 2, 3, 1))
    eps_wide = jnp.pad(eps_nhwc, ((0, 0), (0, 0), (0, win - wo), (0, 0)))
    eps_wide = eps_wide.reshape(n, m_wide, z)

    # Static 0/1 mask over wide rows: 1.0 on real output columns, 0.0 on junk.
    col = jnp.arange(m_wide, dtype=jnp.int32) % win
    mask = (col < wo).astype(jnp.float32).reshape(m_wide, 1)

    kernel = functools.partial(
        _final_conv_sample_kl_kernel, offsets=offsets, m_wide=m_wide,
        n_batch=n, z=z, inv_count=1.0 / float(z * ho * wo))
    feat_wide, kl = pl.pallas_call(
        kernel,
        out_shape=(
            jax.ShapeDtypeStruct((n, m_wide, z), jnp.float32),
            jax.ShapeDtypeStruct((n, 8, 128), jnp.float32),
        ),
        grid=(1,),
        in_specs=[
            pl.BlockSpec((n, rows, kin), lambda i: (0, 0, 0)),
            pl.BlockSpec((tcount, kin, 2 * z), lambda i: (0, 0, 0)),
            pl.BlockSpec((1, 2 * z), lambda i: (0, 0)),
            pl.BlockSpec((n, m_wide, z), lambda i: (0, 0, 0)),
            pl.BlockSpec((m_wide, 1), lambda i: (0, 0)),
        ],
        out_specs=(
            pl.BlockSpec((n, m_wide, z), lambda i: (0, 0, 0)),
            pl.BlockSpec((n, 8, 128), lambda i: (0, 0, 0)),
        ),
        compiler_params=pltpu.CompilerParams(
            dimension_semantics=("arbitrary",),
            vmem_limit_bytes=_vmem_limit_bytes(
                n * rows * kin * 2, tcount * kin * 2 * z * 2, 2 * z * 4,
                n * m_wide * z * 4, m_wide * 4,
                n * m_wide * z * 4, n * 8 * 128 * 4),
        ),
    )(xf, w_bf, b2, eps_wide, mask)

    feats = feat_wide.reshape(n, ho, win, z)[:, :, :wo, :]
    feats = jnp.transpose(feats, (0, 3, 1, 2))     # NCHW (N, Z, H/4, W/4)
    return feats, kl[:, 0, 0]


# ----------------------------------------------------------------------------
# Parameters (true channel widths, per-tap stacked layout) + full forward
# ----------------------------------------------------------------------------
def _stack_taps_3x3(w):
    """(3, 3, cin, cout) -> (9, cin, cout), tap order kh*3 + kw."""
    return w.reshape(9, w.shape[2], w.shape[3])


def _stack_taps_s2d(w):
    """Remap a stride-2 3x3 conv weight to a stride-1 2x2 conv over the
    space-to-depth'd input: (3, 3, cin, cout) -> (4, 4*cin, cout).
    s2d channel order is (p, q, c) -> (p*2 + q)*cin + c; taps ordered a*2 + b."""
    cin, cout = w.shape[2], w.shape[3]
    w2 = jnp.zeros((2, 2, 2, 2, cin, cout), w.dtype)
    for a in range(2):
        for bb in range(2):
            for p in range(2):
                for q in range(2):
                    kh, kw = 2 * a + p, 2 * bb + q
                    if kh <= 2 and kw <= 2:
                        w2 = w2.at[a, bb, p, q].set(w[kh, kw])
    return w2.reshape(4, 4 * cin, cout)


def init_params(key, in_ch, hidden, z_ch):
    in_store = _round_up(in_ch, 8)   # lane-pad only the first conv's K side
    k1, k2, k3, k4 = jax.random.split(key, 4)

    def conv_w(k, cin, cout):
        return (jax.random.normal(k, (3, 3, cin, cout), jnp.float32)
                / jnp.sqrt(float(9 * cin)))

    w1 = conv_w(k1, in_ch, hidden)
    w1s = jnp.zeros((3, 3, in_store, hidden), jnp.float32).at[:, :, :in_ch, :].set(w1)
    return {
        "w1": _stack_taps_3x3(w1s),
        "b1": jnp.zeros((hidden,), jnp.float32),
        "w2": _stack_taps_s2d(conv_w(k2, hidden, hidden)),          # stride 2
        "b2": jnp.zeros((hidden,), jnp.float32),
        "w3": _stack_taps_s2d(conv_w(k3, hidden, 2 * hidden)),      # stride 2
        "b3": jnp.zeros((2 * hidden,), jnp.float32),
        # final conv: output channels [0:z) = mean, [z:2z) = logvar (chunk dim=1)
        "w4": _stack_taps_3x3(conv_w(k4, 2 * hidden, 2 * z_ch)),
        "b4": jnp.zeros((2 * z_ch,), jnp.float32),
    }


def variational_encoder_forward(params, images_nchw, noise_nchw, eps_nchw):
    """images, noise: [N, C, H, W] float32; eps: [N, Z, H//4, W//4] float32."""
    # standardize.encode: [0, 1] pixels -> [-1, 1]
    x = images_nchw.astype(jnp.float32) * 2.0 - 1.0
    x = jnp.concatenate([x, noise_nchw.astype(jnp.float32)], axis=1)   # [N, 2C, H, W]
    x = jnp.transpose(x, (0, 2, 3, 1))                                 # NHWC
    cin = x.shape[-1]
    cin_store = _round_up(cin, 8)
    if cin_store != cin:
        x = jnp.pad(x, ((0, 0), (0, 0), (0, 0), (0, cin_store - cin)))
    x = x.astype(jnp.bfloat16)

    h = conv3x3_fused(x, params["w1"], params["b1"], stride=1)
    h = conv3x3_fused(h, params["w2"], params["b2"], stride=2)
    h = conv3x3_fused(h, params["w3"], params["b3"], stride=2)
    # Fused: final conv -> chunk(mean, logvar) -> sample + KL.
    return final_conv_sample_kl(h, params["w4"], params["b4"], eps_nchw)


# ----------------------------------------------------------------------------
if __name__ == "__main__":
    N, C, H, W = 2, 3, 16, 16
    HIDDEN, Z = 32, 4

    key = jax.random.PRNGKey(0)
    k_img, k_noise, k_eps, k_params = jax.random.split(key, 4)

    images = jax.random.uniform(k_img, (N, C, H, W), jnp.float32)        # pixels in [0,1]
    noise = jax.random.normal(k_noise, (N, C, H, W), jnp.float32)
    eps = jax.random.normal(k_eps, (N, Z, H // 4, W // 4), jnp.float32)  # randn_like(std)

    params = init_params(k_params, in_ch=2 * C, hidden=HIDDEN, z_ch=Z)

    fwd = jax.jit(variational_encoder_forward)
    features, kl = fwd(params, images, noise, eps)
    jax.block_until_ready((features, kl))

    assert features.shape == (N, Z, H // 4, W // 4), features.shape
    assert kl.shape == (N,), kl.shape
    assert bool(jnp.all(jnp.isfinite(features))) and bool(jnp.all(jnp.isfinite(kl)))
    print("KERNEL_OK")
</pallas_src>

<mosaic_0001>
module attributes {stable_mosaic.version = 11 : i64} {
  func.func @_conv_taps_kernel(%arg0: i32, %arg1: memref<1x342x8xbf16, #tpu.memory_space<vmem>>, %arg2: memref<9x8x32xbf16, #tpu.memory_space<vmem>>, %arg3: memref<1x32xf32, #tpu.memory_space<vmem>>, %arg4: memref<1x288x32xbf16, #tpu.memory_space<vmem>>) attributes {dimension_semantics = [#tpu.dimension_semantics<parallel>], iteration_bounds = array<i64: 2>, scalar_prefetch = 0 : i64, scratch_operands = 0 : i64, tpu.core_type = #tpu.core_type<tc>, window_params = [{transform_indices = @transform_0, window_bounds = array<i64: 1, 342, 8>}, {pipeline_mode = #tpu.pipeline_mode<synchronous>, transform_indices = @transform_1, window_bounds = array<i64: 9, 8, 32>}, {pipeline_mode = #tpu.pipeline_mode<synchronous>, transform_indices = @transform_2, window_bounds = array<i64: 1, 32>}, {transform_indices = @transform_3, window_bounds = array<i64: 1, 288, 32>}]} {
    %c0 = arith.constant 0 : index
    %c0_0 = arith.constant 0 : index
    %c0_1 = arith.constant 0 : index
    %0 = vector.load %arg1[%c0, %c0_0, %c0_1] : memref<1x342x8xbf16, #tpu.memory_space<vmem>>, vector<1x288x8xbf16>
    %1 = vector.shape_cast %0 : vector<1x288x8xbf16> to vector<288x8xbf16>
    %c0_2 = arith.constant 0 : index
    %c0_3 = arith.constant 0 : index
    %c0_4 = arith.constant 0 : index
    %2 = vector.load %arg2[%c0_2, %c0_3, %c0_4] : memref<9x8x32xbf16, #tpu.memory_space<vmem>>, vector<1x8x32xbf16>
    %3 = vector.shape_cast %2 : vector<1x8x32xbf16> to vector<8x32xbf16>
    %cst = arith.constant dense<0.000000e+00> : vector<288x32xf32>
    %4 = tpu.matmul %1, %3, %cst {dimension_numbers = #tpu.dot_dimension_numbers<[1], [0], [0], [1], [0, 0, 1, 1], [], []>} : vector<288x8xbf16>, vector<8x32xbf16>, vector<288x32xf32> -> vector<288x32xf32>
    %c0_5 = arith.constant 0 : index
    %c1 = arith.constant 1 : index
    %c0_6 = arith.constant 0 : index
    %5 = vector.load %arg1[%c0_5, %c1, %c0_6] : memref<1x342x8xbf16, #tpu.memory_space<vmem>>, vector<1x288x8xbf16>
    %6 = vector.shape_cast %5 : vector<1x288x8xbf16> to vector<288x8xbf16>
    %c1_7 = arith.constant 1 : index
    %c0_8 = arith.constant 0 : index
    %c0_9 = arith.constant 0 : index
    %7 = vector.load %arg2[%c1_7, %c0_8, %c0_9] : memref<9x8x32xbf16, #tpu.memory_space<vmem>>, vector<1x8x32xbf16>
    %8 = vector.shape_cast %7 : vector<1x8x32xbf16> to vector<8x32xbf16>
    %cst_10 = arith.constant dense<0.000000e+00> : vector<288x32xf32>
    %9 = tpu.matmul %6, %8, %cst_10 {dimension_numbers = #tpu.dot_dimension_numbers<[1], [0], [0], [1], [0, 0, 1, 1], [], []>} : vector<288x8xbf16>, vector<8x32xbf16>, vector<288x32xf32> -> vector<288x32xf32>
    %10 = arith.addf %4, %9 : vector<288x32xf32>
    %c0_11 = arith.constant 0 : index
    %c2 = arith.constant 2 : index
    %c0_12 = arith.constant 0 : index
    %11 = vector.load %arg1[%c0_11, %c2, %c0_12] : memref<1x342x8xbf16, #tpu.memory_space<vmem>>, vector<1x288x8xbf16>
    %12 = vector.shape_cast %11 : vector<1x288x8xbf16> to vector<288x8xbf16>
    %c2_13 = arith.constant 2 : index
    %c0_14 = arith.constant 0 : index
    %c0_15 = arith.constant 0 : index
    %13 = vector.load %arg2[%c2_13, %c0_14, %c0_15] : memref<9x8x32xbf16, #tpu.memory_space<vmem>>, vector<1x8x32xbf16>
    %14 = vector.shape_cast %13 : vector<1x8x32xbf16> to vector<8x32xbf16>
    %cst_16 = arith.constant dense<0.000000e+00> : vector<288x32xf32>
    %15 = tpu.matmul %12, %14, %cst_16 {dimension_numbers = #tpu.dot_dimension_numbers<[1], [0], [0], [1], [0, 0, 1, 1], [], []>} : vector<288x8xbf16>, vector<8x32xbf16>, vector<288x32xf32> -> vector<288x32xf32>
    %16 = arith.addf %10, %15 : vector<288x32xf32>
    %c0_17 = arith.constant 0 : index
    %c18 = arith.constant 18 : index
    %c0_18 = arith.constant 0 : index
    %17 = vector.load %arg1[%c0_17, %c18, %c0_18] : memref<1x342x8xbf16, #tpu.memory_space<vmem>>, vector<1x288x8xbf16>
    %18 = vector.shape_cast %17 : vector<1x288x8xbf16> to vector<288x8xbf16>
    %c3 = arith.constant 3 : index
    %c0_19 = arith.constant 0 : index
    %c0_20 = arith.constant 0 : index
    %19 = vector.load %arg2[%c3, %c0_19, %c0_20] : memref<9x8x32xbf16, #tpu.memory_space<vmem>>, vector<1x8x32xbf16>
    %20 = vector.shape_cast %19 : vector<1x8x32xbf16> to vector<8x32xbf16>
    %cst_21 = arith.constant dense<0.000000e+00> : vector<288x32xf32>
    %21 = tpu.matmul %18, %20, %cst_21 {dimension_numbers = #tpu.dot_dimension_numbers<[1], [0], [0], [1], [0, 0, 1, 1], [], []>} : vector<288x8xbf16>, vector<8x32xbf16>, vector<288x32xf32> -> vector<288x32xf32>
    %22 = arith.addf %16, %21 : vector<288x32xf32>
    %c0_22 = arith.constant 0 : index
    %c19 = arith.constant 19 : index
    %c0_23 = arith.constant 0 : index
    %23 = vector.load %arg1[%c0_22, %c19, %c0_23] : memref<1x342x8xbf16, #tpu.memory_space<vmem>>, vector<1x288x8xbf16>
    %24 = vector.shape_cast %23 : vector<1x288x8xbf16> to vector<288x8xbf16>
    %c4 = arith.constant 4 : index
    %c0_24 = arith.constant 0 : index
    %c0_25 = arith.constant 0 : index
    %25 = vector.load %arg2[%c4, %c0_24, %c0_25] : memref<9x8x32xbf16, #tpu.memory_space<vmem>>, vector<1x8x32xbf16>
    %26 = vector.shape_cast %25 : vector<1x8x32xbf16> to vector<8x32xbf16>
    %cst_26 = arith.constant dense<0.000000e+00> : vector<288x32xf32>
    %27 = tpu.matmul %24, %26, %cst_26 {dimension_numbers = #tpu.dot_dimension_numbers<[1], [0], [0], [1], [0, 0, 1, 1], [], []>} : vector<288x8xbf16>, vector<8x32xbf16>, vector<288x32xf32> -> vector<288x32xf32>
    %28 = arith.addf %22, %27 : vector<288x32xf32>
    %c0_27 = arith.constant 0 : index
    %c20 = arith.constant 20 : index
    %c0_28 = arith.constant 0 : index
    %29 = vector.load %arg1[%c0_27, %c20, %c0_28] : memref<1x342x8xbf16, #tpu.memory_space<vmem>>, vector<1x288x8xbf16>
    %30 = vector.shape_cast %29 : vector<1x288x8xbf16> to vector<288x8xbf16>
    %c5 = arith.constant 5 : index
    %c0_29 = arith.constant 0 : index
    %c0_30 = arith.constant 0 : index
    %31 = vector.load %arg2[%c5, %c0_29, %c0_30] : memref<9x8x32xbf16, #tpu.memory_space<vmem>>, vector<1x8x32xbf16>
    %32 = vector.shape_cast %31 : vector<1x8x32xbf16> to vector<8x32xbf16>
    %cst_31 = arith.constant dense<0.000000e+00> : vector<288x32xf32>
    %33 = tpu.matmul %30, %32, %cst_31 {dimension_numbers = #tpu.dot_dimension_numbers<[1], [0], [0], [1], [0, 0, 1, 1], [], []>} : vector<288x8xbf16>, vector<8x32xbf16>, vector<288x32xf32> -> vector<288x32xf32>
    %34 = arith.addf %28, %33 : vector<288x32xf32>
    %c0_32 = arith.constant 0 : index
    %c36 = arith.constant 36 : index
    %c0_33 = arith.constant 0 : index
    %35 = vector.load %arg1[%c0_32, %c36, %c0_33] : memref<1x342x8xbf16, #tpu.memory_space<vmem>>, vector<1x288x8xbf16>
    %36 = vector.shape_cast %35 : vector<1x288x8xbf16> to vector<288x8xbf16>
    %c6 = arith.constant 6 : index
    %c0_34 = arith.constant 0 : index
    %c0_35 = arith.constant 0 : index
    %37 = vector.load %arg2[%c6, %c0_34, %c0_35] : memref<9x8x32xbf16, #tpu.memory_space<vmem>>, vector<1x8x32xbf16>
    %38 = vector.shape_cast %37 : vector<1x8x32xbf16> to vector<8x32xbf16>
    %cst_36 = arith.constant dense<0.000000e+00> : vector<288x32xf32>
    %39 = tpu.matmul %36, %38, %cst_36 {dimension_numbers = #tpu.dot_dimension_numbers<[1], [0], [0], [1], [0, 0, 1, 1], [], []>} : vector<288x8xbf16>, vector<8x32xbf16>, vector<288x32xf32> -> vector<288x32xf32>
    %40 = arith.addf %34, %39 : vector<288x32xf32>
    %c0_37 = arith.constant 0 : index
    %c37 = arith.constant 37 : index
    %c0_38 = arith.constant 0 : index
    %41 = vector.load %arg1[%c0_37, %c37, %c0_38] : memref<1x342x8xbf16, #tpu.memory_space<vmem>>, vector<1x288x8xbf16>
    %42 = vector.shape_cast %41 : vector<1x288x8xbf16> to vector<288x8xbf16>
    %c7 = arith.constant 7 : index
    %c0_39 = arith.constant 0 : index
    %c0_40 = arith.constant 0 : index
    %43 = vector.load %arg2[%c7, %c0_39, %c0_40] : memref<9x8x32xbf16, #tpu.memory_space<vmem>>, vector<1x8x32xbf16>
    %44 = vector.shape_cast %43 : vector<1x8x32xbf16> to vector<8x32xbf16>
    %cst_41 = arith.constant dense<0.000000e+00> : vector<288x32xf32>
    %45 = tpu.matmul %42, %44, %cst_41 {dimension_numbers = #tpu.dot_dimension_numbers<[1], [0], [0], [1], [0, 0, 1, 1], [], []>} : vector<288x8xbf16>, vector<8x32xbf16>, vector<288x32xf32> -> vector<288x32xf32>
    %46 = arith.addf %40, %45 : vector<288x32xf32>
    %c0_42 = arith.constant 0 : index
    %c38 = arith.constant 38 : index
    %c0_43 = arith.constant 0 : index
    %47 = vector.load %arg1[%c0_42, %c38, %c0_43] : memref<1x342x8xbf16, #tpu.memory_space<vmem>>, vector<1x288x8xbf16>
    %48 = vector.shape_cast %47 : vector<1x288x8xbf16> to vector<288x8xbf16>
    %c8 = arith.constant 8 : index
    %c0_44 = arith.constant 0 : index
    %c0_45 = arith.constant 0 : index
    %49 = vector.load %arg2[%c8, %c0_44, %c0_45] : memref<9x8x32xbf16, #tpu.memory_space<vmem>>, vector<1x8x32xbf16>
    %50 = vector.shape_cast %49 : vector<1x8x32xbf16> to vector<8x32xbf16>
    %cst_46 = arith.constant dense<0.000000e+00> : vector<288x32xf32>
    %51 = tpu.matmul %48, %50, %cst_46 {dimension_numbers = #tpu.dot_dimension_numbers<[1], [0], [0], [1], [0, 0, 1, 1], [], []>} : vector<288x8xbf16>, vector<8x32xbf16>, vector<288x32xf32> -> vector<288x32xf32>
    %52 = arith.addf %46, %51 : vector<288x32xf32>
    %c0_47 = arith.constant 0 : index
    %c0_48 = arith.constant 0 : index
    %53 = vector.load %arg3[%c0_47, %c0_48] : memref<1x32xf32, #tpu.memory_space<vmem>>, vector<1x32xf32>
    %54 = vector.broadcast %53 : vector<1x32xf32> to vector<288x32xf32>
    %55 = arith.addf %52, %54 : vector<288x32xf32>
    %cst_49 = arith.constant 5.000000e-01 : f32
    %56 = vector.broadcast %cst_49 : f32 to vector<288x32xf32>
    %57 = arith.mulf %56, %55 : vector<288x32xf32>
    %58 = math.tanh %57 : vector<288x32xf32>
    %cst_50 = arith.constant 5.000000e-01 : f32
    %59 = vector.broadcast %cst_50 : f32 to vector<288x32xf32>
    %60 = arith.mulf %59, %58 : vector<288x32xf32>
    %cst_51 = arith.constant 5.000000e-01 : f32
    %61 = vector.broadcast %cst_51 : f32 to vector<288x32xf32>
    %62 = arith.addf %60, %61 : vector<288x32xf32>
    %63 = arith.mulf %55, %62 : vector<288x32xf32>
    %64 = arith.truncf %63 : vector<288x32xf32> to vector<288x32xbf16>
    %c0_52 = arith.constant 0 : index
    %c0_53 = arith.constant 0 : index
    %c0_54 = arith.constant 0 : index
    %65 = vector.load %arg4[%c0_52, %c0_53, %c0_54] : memref<1x288x32xbf16, #tpu.memory_space<vmem>>, vector<1x288x32xbf16>
    %66 = vector.shape_cast %65 : vector<1x288x32xbf16> to vector<288x32xbf16>
    %67 = vector.shape_cast %64 : vector<288x32xbf16> to vector<1x288x32xbf16>
    tpu.vector_store %arg4[%c0_52, %c0_53, %c0_54], %67 {strides = array<i32>} : memref<1x288x32xbf16, #tpu.memory_space<vmem>>, vector<1x288x32xbf16>,
    return
  }
  func.func @transform_0(%arg0: i32) -> (i32, i32, i32) {
    %c0_i32 = arith.constant 0 : i32
    %c0_i32_0 = arith.constant 0 : i32
    %c0_i32_1 = arith.constant 0 : i32
    return %arg0, %c0_i32, %c0_i32_0 : i32, i32, i32
  }
  func.func @transform_1(%arg0: i32) -> (i32, i32, i32) {
    %c0_i32 = arith.constant 0 : i32
    %c0_i32_0 = arith.constant 0 : i32
    %c0_i32_1 = arith.constant 0 : i32
    %c0_i32_2 = arith.constant 0 : i32
    return %c0_i32, %c0_i32_0, %c0_i32_1 : i32, i32, i32
  }
  func.func @transform_2(%arg0: i32) -> (i32, i32) {
    %c0_i32 = arith.constant 0 : i32
    %c0_i32_0 = arith.constant 0 : i32
    %c0_i32_1 = arith.constant 0 : i32
    return %c0_i32, %c0_i32_0 : i32, i32
  }
  func.func @transform_3(%arg0: i32) -> (i32, i32, i32) {
    %c0_i32 = arith.constant 0 : i32
    %c0_i32_0 = arith.constant 0 : i32
    %c0_i32_1 = arith.constant 0 : i32
    return %arg0, %c0_i32, %c0_i32_0 : i32, i32, i32
  }
}

module attributes {stable_mosaic.version = 11 : i64} {
  func.func @_conv_taps_kernel(%arg0: i32, %arg1: memref<1x90x128xbf16, #tpu.memory_space<vmem>>, %arg2: memref<4x128x32xbf16, #tpu.memory_space<vmem>>, %arg3: memref<1x32xf32, #tpu.memory_space<vmem>>, %arg4: memref<1x72x32xbf16, #tpu.memory_space<vmem>>) attributes {dimension_semantics = [#tpu.dimension_semantics<parallel>], iteration_bounds = array<i64: 2>, scalar_prefetch = 0 : i64, scratch_operands = 0 : i64, tpu.core_type = #tpu.core_type<tc>, window_params = [{transform_indices = @transform_0, window_bounds = array<i64: 1, 90, 128>}, {pipeline_mode = #tpu.pipeline_mode<synchronous>, transform_indices = @transform_1, window_bounds = array<i64: 4, 128, 32>}, {pipeline_mode = #tpu.pipeline_mode<synchronous>, transform_indices = @transform_2, window_bounds = array<i64: 1, 32>}, {transform_indices = @transform_3, window_bounds = array<i64: 1, 72, 32>}]} {
    %c0 = arith.constant 0 : index
    %c0_0 = arith.constant 0 : index
    %c0_1 = arith.constant 0 : index
    %0 = vector.load %arg1[%c0, %c0_0, %c0_1] : memref<1x90x128xbf16, #tpu.memory_space<vmem>>, vector<1x72x128xbf16>
    %1 = vector.shape_cast %0 : vector<1x72x128xbf16> to vector<72x128xbf16>
    %c0_2 = arith.constant 0 : index
    %c0_3 = arith.constant 0 : index
    %c0_4 = arith.constant 0 : index
    %2 = vector.load %arg2[%c0_2, %c0_3, %c0_4] : memref<4x128x32xbf16, #tpu.memory_space<vmem>>, vector<1x128x32xbf16>
    %3 = vector.shape_cast %2 : vector<1x128x32xbf16> to vector<128x32xbf16>
    %cst = arith.constant dense<0.000000e+00> : vector<72x32xf32>
    %4 = tpu.matmul %1, %3, %cst {dimension_numbers = #tpu.dot_dimension_numbers<[1], [0], [0], [1], [0, 0, 1, 1], [], []>} : vector<72x128xbf16>, vector<128x32xbf16>, vector<72x32xf32> -> vector<72x32xf32>
    %c0_5 = arith.constant 0 : index
    %c1 = arith.constant 1 : index
    %c0_6 = arith.constant 0 : index
    %5 = vector.load %arg1[%c0_5, %c1, %c0_6] : memref<1x90x128xbf16, #tpu.memory_space<vmem>>, vector<1x72x128xbf16>
    %6 = vector.shape_cast %5 : vector<1x72x128xbf16> to vector<72x128xbf16>
    %c1_7 = arith.constant 1 : index
    %c0_8 = arith.constant 0 : index
    %c0_9 = arith.constant 0 : index
    %7 = vector.load %arg2[%c1_7, %c0_8, %c0_9] : memref<4x128x32xbf16, #tpu.memory_space<vmem>>, vector<1x128x32xbf16>
    %8 = vector.shape_cast %7 : vector<1x128x32xbf16> to vector<128x32xbf16>
    %cst_10 = arith.constant dense<0.000000e+00> : vector<72x32xf32>
    %9 = tpu.matmul %6, %8, %cst_10 {dimension_numbers = #tpu.dot_dimension_numbers<[1], [0], [0], [1], [0, 0, 1, 1], [], []>} : vector<72x128xbf16>, vector<128x32xbf16>, vector<72x32xf32> -> vector<72x32xf32>
    %10 = arith.addf %4, %9 : vector<72x32xf32>
    %c0_11 = arith.constant 0 : index
    %c9 = arith.constant 9 : index
    %c0_12 = arith.constant 0 : index
    %11 = vector.load %arg1[%c0_11, %c9, %c0_12] : memref<1x90x128xbf16, #tpu.memory_space<vmem>>, vector<1x72x128xbf16>
    %12 = vector.shape_cast %11 : vector<1x72x128xbf16> to vector<72x128xbf16>
    %c2 = arith.constant 2 : index
    %c0_13 = arith.constant 0 : index
    %c0_14 = arith.constant 0 : index
    %13 = vector.load %arg2[%c2, %c0_13, %c0_14] : memref<4x128x32xbf16, #tpu.memory_space<vmem>>, vector<1x128x32xbf16>
    %14 = vector.shape_cast %13 : vector<1x128x32xbf16> to vector<128x32xbf16>
    %cst_15 = arith.constant dense<0.000000e+00> : vector<72x32xf32>
    %15 = tpu.matmul %12, %14, %cst_15 {dimension_numbers = #tpu.dot_dimension_numbers<[1], [0], [0], [1], [0, 0, 1, 1], [], []>} : vector<72x128xbf16>, vector<128x32xbf16>, vector<72x32xf32> -> vector<72x32xf32>
    %16 = arith.addf %10, %15 : vector<72x32xf32>
    %c0_16 = arith.constant 0 : index
    %c10 = arith.constant 10 : index
    %c0_17 = arith.constant 0 : index
    %17 = vector.load %arg1[%c0_16, %c10, %c0_17] : memref<1x90x128xbf16, #tpu.memory_space<vmem>>, vector<1x72x128xbf16>
    %18 = vector.shape_cast %17 : vector<1x72x128xbf16> to vector<72x128xbf16>
    %c3 = arith.constant 3 : index
    %c0_18 = arith.constant 0 : index
    %c0_19 = arith.constant 0 : index
    %19 = vector.load %arg2[%c3, %c0_18, %c0_19] : memref<4x128x32xbf16, #tpu.memory_space<vmem>>, vector<1x128x32xbf16>
    %20 = vector.shape_cast %19 : vector<1x128x32xbf16> to vector<128x32xbf16>
    %cst_20 = arith.constant dense<0.000000e+00> : vector<72x32xf32>
    %21 = tpu.matmul %18, %20, %cst_20 {dimension_numbers = #tpu.dot_dimension_numbers<[1], [0], [0], [1], [0, 0, 1, 1], [], []>} : vector<72x128xbf16>, vector<128x32xbf16>, vector<72x32xf32> -> vector<72x32xf32>
    %22 = arith.addf %16, %21 : vector<72x32xf32>
    %c0_21 = arith.constant 0 : index
    %c0_22 = arith.constant 0 : index
    %23 = vector.load %arg3[%c0_21, %c0_22] : memref<1x32xf32, #tpu.memory_space<vmem>>, vector<1x32xf32>
    %24 = vector.broadcast %23 : vector<1x32xf32> to vector<72x32xf32>
    %25 = arith.addf %22, %24 : vector<72x32xf32>
    %cst_23 = arith.constant 5.000000e-01 : f32
    %26 = vector.broadcast %cst_23 : f32 to vector<72x32xf32>
    %27 = arith.mulf %26, %25 : vector<72x32xf32>
    %28 = math.tanh %27 : vector<72x32xf32>
    %cst_24 = arith.constant 5.000000e-01 : f32
    %29 = vector.broadcast %cst_24 : f32 to vector<72x32xf32>
    %30 = arith.mulf %29, %28 : vector<72x32xf32>
    %cst_25 = arith.constant 5.000000e-01 : f32
    %31 = vector.broadcast %cst_25 : f32 to vector<72x32xf32>
    %32 = arith.addf %30, %31 : vector<72x32xf32>
    %33 = arith.mulf %25, %32 : vector<72x32xf32>
    %34 = arith.truncf %33 : vector<72x32xf32> to vector<72x32xbf16>
    %c0_26 = arith.constant 0 : index
    %c0_27 = arith.constant 0 : index
    %c0_28 = arith.constant 0 : index
    %35 = vector.load %arg4[%c0_26, %c0_27, %c0_28] : memref<1x72x32xbf16, #tpu.memory_space<vmem>>, vector<1x72x32xbf16>
    %36 = vector.shape_cast %35 : vector<1x72x32xbf16> to vector<72x32xbf16>
    %37 = vector.shape_cast %34 : vector<72x32xbf16> to vector<1x72x32xbf16>
    tpu.vector_store %arg4[%c0_26, %c0_27, %c0_28], %37 {strides = array<i32>} : memref<1x72x32xbf16, #tpu.memory_space<vmem>>, vector<1x72x32xbf16>,
    return
  }
  func.func @transform_0(%arg0: i32) -> (i32, i32, i32) {
    %c0_i32 = arith.constant 0 : i32
    %c0_i32_0 = arith.constant 0 : i32
    %c0_i32_1 = arith.constant 0 : i32
    return %arg0, %c0_i32, %c0_i32_0 : i32, i32, i32
  }
  func.func @transform_1(%arg0: i32) -> (i32, i32, i32) {
    %c0_i32 = arith.constant 0 : i32
    %c0_i32_0 = arith.constant 0 : i32
    %c0_i32_1 = arith.constant 0 : i32
    %c0_i32_2 = arith.constant 0 : i32
    return %c0_i32, %c0_i32_0, %c0_i32_1 : i32, i32, i32
  }
  func.func @transform_2(%arg0: i32) -> (i32, i32) {
    %c0_i32 = arith.constant 0 : i32
    %c0_i32_0 = arith.constant 0 : i32
    %c0_i32_1 = arith.constant 0 : i32
    return %c0_i32, %c0_i32_0 : i32, i32
  }
  func.func @transform_3(%arg0: i32) -> (i32, i32, i32) {
    %c0_i32 = arith.constant 0 : i32
    %c0_i32_0 = arith.constant 0 : i32
    %c0_i32_1 = arith.constant 0 : i32
    return %arg0, %c0_i32, %c0_i32_0 : i32, i32, i32
  }
}

module attributes {stable_mosaic.version = 11 : i64} {
  func.func @_conv_taps_kernel(%arg0: i32, %arg1: memref<1x30x128xbf16, #tpu.memory_space<vmem>>, %arg2: memref<4x128x64xbf16, #tpu.memory_space<vmem>>, %arg3: memref<1x64xf32, #tpu.memory_space<vmem>>, %arg4: memref<1x20x64xbf16, #tpu.memory_space<vmem>>) attributes {dimension_semantics = [#tpu.dimension_semantics<parallel>], iteration_bounds = array<i64: 2>, scalar_prefetch = 0 : i64, scratch_operands = 0 : i64, tpu.core_type = #tpu.core_type<tc>, window_params = [{transform_indices = @transform_0, window_bounds = array<i64: 1, 30, 128>}, {pipeline_mode = #tpu.pipeline_mode<synchronous>, transform_indices = @transform_1, window_bounds = array<i64: 4, 128, 64>}, {pipeline_mode = #tpu.pipeline_mode<synchronous>, transform_indices = @transform_2, window_bounds = array<i64: 1, 64>}, {transform_indices = @transform_3, window_bounds = array<i64: 1, 20, 64>}]} {
    %c0 = arith.constant 0 : index
    %c0_0 = arith.constant 0 : index
    %c0_1 = arith.constant 0 : index
    %0 = vector.load %arg1[%c0, %c0_0, %c0_1] : memref<1x30x128xbf16, #tpu.memory_space<vmem>>, vector<1x20x128xbf16>
    %1 = vector.shape_cast %0 : vector<1x20x128xbf16> to vector<20x128xbf16>
    %c0_2 = arith.constant 0 : index
    %c0_3 = arith.constant 0 : index
    %c0_4 = arith.constant 0 : index
    %2 = vector.load %arg2[%c0_2, %c0_3, %c0_4] : memref<4x128x64xbf16, #tpu.memory_space<vmem>>, vector<1x128x64xbf16>
    %3 = vector.shape_cast %2 : vector<1x128x64xbf16> to vector<128x64xbf16>
    %cst = arith.constant dense<0.000000e+00> : vector<20x64xf32>
    %4 = tpu.matmul %1, %3, %cst {dimension_numbers = #tpu.dot_dimension_numbers<[1], [0], [0], [1], [0, 0, 1, 1], [], []>} : vector<20x128xbf16>, vector<128x64xbf16>, vector<20x64xf32> -> vector<20x64xf32>
    %c0_5 = arith.constant 0 : index
    %c1 = arith.constant 1 : index
    %c0_6 = arith.constant 0 : index
    %5 = vector.load %arg1[%c0_5, %c1, %c0_6] : memref<1x30x128xbf16, #tpu.memory_space<vmem>>, vector<1x20x128xbf16>
    %6 = vector.shape_cast %5 : vector<1x20x128xbf16> to vector<20x128xbf16>
    %c1_7 = arith.constant 1 : index
    %c0_8 = arith.constant 0 : index
    %c0_9 = arith.constant 0 : index
    %7 = vector.load %arg2[%c1_7, %c0_8, %c0_9] : memref<4x128x64xbf16, #tpu.memory_space<vmem>>, vector<1x128x64xbf16>
    %8 = vector.shape_cast %7 : vector<1x128x64xbf16> to vector<128x64xbf16>
    %cst_10 = arith.constant dense<0.000000e+00> : vector<20x64xf32>
    %9 = tpu.matmul %6, %8, %cst_10 {dimension_numbers = #tpu.dot_dimension_numbers<[1], [0], [0], [1], [0, 0, 1, 1], [], []>} : vector<20x128xbf16>, vector<128x64xbf16>, vector<20x64xf32> -> vector<20x64xf32>
    %10 = arith.addf %4, %9 : vector<20x64xf32>
    %c0_11 = arith.constant 0 : index
    %c5 = arith.constant 5 : index
    %c0_12 = arith.constant 0 : index
    %11 = vector.load %arg1[%c0_11, %c5, %c0_12] : memref<1x30x128xbf16, #tpu.memory_space<vmem>>, vector<1x20x128xbf16>
    %12 = vector.shape_cast %11 : vector<1x20x128xbf16> to vector<20x128xbf16>
    %c2 = arith.constant 2 : index
    %c0_13 = arith.constant 0 : index
    %c0_14 = arith.constant 0 : index
    %13 = vector.load %arg2[%c2, %c0_13, %c0_14] : memref<4x128x64xbf16, #tpu.memory_space<vmem>>, vector<1x128x64xbf16>
    %14 = vector.shape_cast %13 : vector<1x128x64xbf16> to vector<128x64xbf16>
    %cst_15 = arith.constant dense<0.000000e+00> : vector<20x64xf32>
    %15 = tpu.matmul %12, %14, %cst_15 {dimension_numbers = #tpu.dot_dimension_numbers<[1], [0], [0], [1], [0, 0, 1, 1], [], []>} : vector<20x128xbf16>, vector<128x64xbf16>, vector<20x64xf32> -> vector<20x64xf32>
    %16 = arith.addf %10, %15 : vector<20x64xf32>
    %c0_16 = arith.constant 0 : index
    %c6 = arith.constant 6 : index
    %c0_17 = arith.constant 0 : index
    %17 = vector.load %arg1[%c0_16, %c6, %c0_17] : memref<1x30x128xbf16, #tpu.memory_space<vmem>>, vector<1x20x128xbf16>
    %18 = vector.shape_cast %17 : vector<1x20x128xbf16> to vector<20x128xbf16>
    %c3 = arith.constant 3 : index
    %c0_18 = arith.constant 0 : index
    %c0_19 = arith.constant 0 : index
    %19 = vector.load %arg2[%c3, %c0_18, %c0_19] : memref<4x128x64xbf16, #tpu.memory_space<vmem>>, vector<1x128x64xbf16>
    %20 = vector.shape_cast %19 : vector<1x128x64xbf16> to vector<128x64xbf16>
    %cst_20 = arith.constant dense<0.000000e+00> : vector<20x64xf32>
    %21 = tpu.matmul %18, %20, %cst_20 {dimension_numbers = #tpu.dot_dimension_numbers<[1], [0], [0], [1], [0, 0, 1, 1], [], []>} : vector<20x128xbf16>, vector<128x64xbf16>, vector<20x64xf32> -> vector<20x64xf32>
    %22 = arith.addf %16, %21 : vector<20x64xf32>
    %c0_21 = arith.constant 0 : index
    %c0_22 = arith.constant 0 : index
    %23 = vector.load %arg3[%c0_21, %c0_22] : memref<1x64xf32, #tpu.memory_space<vmem>>, vector<1x64xf32>
    %24 = vector.broadcast %23 : vector<1x64xf32> to vector<20x64xf32>
    %25 = arith.addf %22, %24 : vector<20x64xf32>
    %cst_23 = arith.constant 5.000000e-01 : f32
    %26 = vector.broadcast %cst_23 : f32 to vector<20x64xf32>
    %27 = arith.mulf %26, %25 : vector<20x64xf32>
    %28 = math.tanh %27 : vector<20x64xf32>
    %cst_24 = arith.constant 5.000000e-01 : f32
    %29 = vector.broadcast %cst_24 : f32 to vector<20x64xf32>
    %30 = arith.mulf %29, %28 : vector<20x64xf32>
    %cst_25 = arith.constant 5.000000e-01 : f32
    %31 = vector.broadcast %cst_25 : f32 to vector<20x64xf32>
    %32 = arith.addf %30, %31 : vector<20x64xf32>
    %33 = arith.mulf %25, %32 : vector<20x64xf32>
    %34 = arith.truncf %33 : vector<20x64xf32> to vector<20x64xbf16>
    %c0_26 = arith.constant 0 : index
    %c0_27 = arith.constant 0 : index
    %c0_28 = arith.constant 0 : index
    %35 = vector.load %arg4[%c0_26, %c0_27, %c0_28] : memref<1x20x64xbf16, #tpu.memory_space<vmem>>, vector<1x20x64xbf16>
    %36 = vector.shape_cast %35 : vector<1x20x64xbf16> to vector<20x64xbf16>
    %37 = vector.shape_cast %34 : vector<20x64xbf16> to vector<1x20x64xbf16>
    tpu.vector_store %arg4[%c0_26, %c0_27, %c0_28], %37 {strides = array<i32>} : memref<1x20x64xbf16, #tpu.memory_space<vmem>>, vector<1x20x64xbf16>,
    return
  }
  func.func @transform_0(%arg0: i32) -> (i32, i32, i32) {
    %c0_i32 = arith.constant 0 : i32
    %c0_i32_0 = arith.constant 0 : i32
    %c0_i32_1 = arith.constant 0 : i32
    return %arg0, %c0_i32, %c0_i32_0 : i32, i32, i32
  }
  func.func @transform_1(%arg0: i32) -> (i32, i32, i32) {
    %c0_i32 = arith.constant 0 : i32
    %c0_i32_0 = arith.constant 0 : i32
    %c0_i32_1 = arith.constant 0 : i32
    %c0_i32_2 = arith.constant 0 : i32
    return %c0_i32, %c0_i32_0, %c0_i32_1 : i32, i32, i32
  }
  func.func @transform_2(%arg0: i32) -> (i32, i32) {
    %c0_i32 = arith.constant 0 : i32
    %c0_i32_0 = arith.constant 0 : i32
    %c0_i32_1 = arith.constant 0 : i32
    return %c0_i32, %c0_i32_0 : i32, i32
  }
  func.func @transform_3(%arg0: i32) -> (i32, i32, i32) {
    %c0_i32 = arith.constant 0 : i32
    %c0_i32_0 = arith.constant 0 : i32
    %c0_i32_1 = arith.constant 0 : i32
    return %arg0, %c0_i32, %c0_i32_0 : i32, i32, i32
  }
}

module attributes {stable_mosaic.version = 11 : i64} {
  func.func @_final_conv_sample_kl_kernel(%arg0: i32, %arg1: memref<2x42x64xbf16, #tpu.memory_space<vmem>>, %arg2: memref<9x64x8xbf16, #tpu.memory_space<vmem>>, %arg3: memref<1x8xf32, #tpu.memory_space<vmem>>, %arg4: memref<2x24x4xf32, #tpu.memory_space<vmem>>, %arg5: memref<24x1xf32, #tpu.memory_space<vmem>>, %arg6: memref<2x24x4xf32, #tpu.memory_space<vmem>>, %arg7: memref<2x8x128xf32, #tpu.memory_space<vmem>>) attributes {dimension_semantics = [#tpu.dimension_semantics<arbitrary>], iteration_bounds = array<i64: 1>, scalar_prefetch = 0 : i64, scratch_operands = 0 : i64, tpu.core_type = #tpu.core_type<tc>, window_params = [{pipeline_mode = #tpu.pipeline_mode<synchronous>, transform_indices = @transform_0, window_bounds = array<i64: 2, 42, 64>}, {pipeline_mode = #tpu.pipeline_mode<synchronous>, transform_indices = @transform_1, window_bounds = array<i64: 9, 64, 8>}, {pipeline_mode = #tpu.pipeline_mode<synchronous>, transform_indices = @transform_2, window_bounds = array<i64: 1, 8>}, {pipeline_mode = #tpu.pipeline_mode<synchronous>, transform_indices = @transform_3, window_bounds = array<i64: 2, 24, 4>}, {pipeline_mode = #tpu.pipeline_mode<synchronous>, transform_indices = @transform_4, window_bounds = array<i64: 24, 1>}, {pipeline_mode = #tpu.pipeline_mode<synchronous>, transform_indices = @transform_5, window_bounds = array<i64: 2, 24, 4>}, {pipeline_mode = #tpu.pipeline_mode<synchronous>, transform_indices = @transform_6, window_bounds = array<i64: 2, 8, 128>}]} {
    %c0 = arith.constant 0 : index
    %c0_0 = arith.constant 0 : index
    %0 = vector.load %arg3[%c0, %c0_0] : memref<1x8xf32, #tpu.memory_space<vmem>>, vector<1x8xf32>
    %c0_1 = arith.constant 0 : index
    %c0_2 = arith.constant 0 : index
    %1 = vector.load %arg5[%c0_1, %c0_2] : memref<24x1xf32, #tpu.memory_space<vmem>>, vector<24x1xf32>
    %c0_3 = arith.constant 0 : index
    %c0_4 = arith.constant 0 : index
    %c0_5 = arith.constant 0 : index
    %2 = vector.load %arg2[%c0_3, %c0_4, %c0_5] : memref<9x64x8xbf16, #tpu.memory_space<vmem>>, vector<1x64x8xbf16>
    %3 = vector.shape_cast %2 : vector<1x64x8xbf16> to vector<64x8xbf16>
    %c1 = arith.constant 1 : index
    %c0_6 = arith.constant 0 : index
    %c0_7 = arith.constant 0 : index
    %4 = vector.load %arg2[%c1, %c0_6, %c0_7] : memref<9x64x8xbf16, #tpu.memory_space<vmem>>, vector<1x64x8xbf16>
    %5 = vector.shape_cast %4 : vector<1x64x8xbf16> to vector<64x8xbf16>
    %c2 = arith.constant 2 : index
    %c0_8 = arith.constant 0 : index
    %c0_9 = arith.constant 0 : index
    %6 = vector.load %arg2[%c2, %c0_8, %c0_9] : memref<9x64x8xbf16, #tpu.memory_space<vmem>>, vector<1x64x8xbf16>
    %7 = vector.shape_cast %6 : vector<1x64x8xbf16> to vector<64x8xbf16>
    %c3 = arith.constant 3 : index
    %c0_10 = arith.constant 0 : index
    %c0_11 = arith.constant 0 : index
    %8 = vector.load %arg2[%c3, %c0_10, %c0_11] : memref<9x64x8xbf16, #tpu.memory_space<vmem>>, vector<1x64x8xbf16>
    %9 = vector.shape_cast %8 : vector<1x64x8xbf16> to vector<64x8xbf16>
    %c4 = arith.constant 4 : index
    %c0_12 = arith.constant 0 : index
    %c0_13 = arith.constant 0 : index
    %10 = vector.load %arg2[%c4, %c0_12, %c0_13] : memref<9x64x8xbf16, #tpu.memory_space<vmem>>, vector<1x64x8xbf16>
    %11 = vector.shape_cast %10 : vector<1x64x8xbf16> to vector<64x8xbf16>
    %c5 = arith.constant 5 : index
    %c0_14 = arith.constant 0 : index
    %c0_15 = arith.constant 0 : index
    %12 = vector.load %arg2[%c5, %c0_14, %c0_15] : memref<9x64x8xbf16, #tpu.memory_space<vmem>>, vector<1x64x8xbf16>
    %13 = vector.shape_cast %12 : vector<1x64x8xbf16> to vector<64x8xbf16>
    %c6 = arith.constant 6 : index
    %c0_16 = arith.constant 0 : index
    %c0_17 = arith.constant 0 : index
    %14 = vector.load %arg2[%c6, %c0_16, %c0_17] : memref<9x64x8xbf16, #tpu.memory_space<vmem>>, vector<1x64x8xbf16>
    %15 = vector.shape_cast %14 : vector<1x64x8xbf16> to vector<64x8xbf16>
    %c7 = arith.constant 7 : index
    %c0_18 = arith.constant 0 : index
    %c0_19 = arith.constant 0 : index
    %16 = vector.load %arg2[%c7, %c0_18, %c0_19] : memref<9x64x8xbf16, #tpu.memory_space<vmem>>, vector<1x64x8xbf16>
    %17 = vector.shape_cast %16 : vector<1x64x8xbf16> to vector<64x8xbf16>
    %c8 = arith.constant 8 : index
    %c0_20 = arith.constant 0 : index
    %c0_21 = arith.constant 0 : index
    %18 = vector.load %arg2[%c8, %c0_20, %c0_21] : memref<9x64x8xbf16, #tpu.memory_space<vmem>>, vector<1x64x8xbf16>
    %19 = vector.shape_cast %18 : vector<1x64x8xbf16> to vector<64x8xbf16>
    %c0_22 = arith.constant 0 : index
    %c0_23 = arith.constant 0 : index
    %c0_24 = arith.constant 0 : index
    %20 = vector.load %arg1[%c0_22, %c0_23, %c0_24] : memref<2x42x64xbf16, #tpu.memory_space<vmem>>, vector<1x24x64xbf16>
    %21 = vector.shape_cast %20 : vector<1x24x64xbf16> to vector<24x64xbf16>
    %cst = arith.constant dense<0.000000e+00> : vector<24x8xf32>
    %22 = tpu.matmul %21, %3, %cst {dimension_numbers = #tpu.dot_dimension_numbers<[1], [0], [0], [1], [0, 0, 1, 1], [], []>} : vector<24x64xbf16>, vector<64x8xbf16>, vector<24x8xf32> -> vector<24x8xf32>
    %c0_25 = arith.constant 0 : index
    %c1_26 = arith.constant 1 : index
    %c0_27 = arith.constant 0 : index
    %23 = vector.load %arg1[%c0_25, %c1_26, %c0_27] : memref<2x42x64xbf16, #tpu.memory_space<vmem>>, vector<1x24x64xbf16>
    %24 = vector.shape_cast %23 : vector<1x24x64xbf16> to vector<24x64xbf16>
    %cst_28 = arith.constant dense<0.000000e+00> : vector<24x8xf32>
    %25 = tpu.matmul %24, %5, %cst_28 {dimension_numbers = #tpu.dot_dimension_numbers<[1], [0], [0], [1], [0, 0, 1, 1], [], []>} : vector<24x64xbf16>, vector<64x8xbf16>, vector<24x8xf32> -> vector<24x8xf32>
    %26 = arith.addf %22, %25 : vector<24x8xf32>
    %c0_29 = arith.constant 0 : index
    %c2_30 = arith.constant 2 : index
    %c0_31 = arith.constant 0 : index
    %27 = vector.load %arg1[%c0_29, %c2_30, %c0_31] : memref<2x42x64xbf16, #tpu.memory_space<vmem>>, vector<1x24x64xbf16>
    %28 = vector.shape_cast %27 : vector<1x24x64xbf16> to vector<24x64xbf16>
    %cst_32 = arith.constant dense<0.000000e+00> : vector<24x8xf32>
    %29 = tpu.matmul %28, %7, %cst_32 {dimension_numbers = #tpu.dot_dimension_numbers<[1], [0], [0], [1], [0, 0, 1, 1], [], []>} : vector<24x64xbf16>, vector<64x8xbf16>, vector<24x8xf32> -> vector<24x8xf32>
    %30 = arith.addf %26, %29 : vector<24x8xf32>
    %c0_33 = arith.constant 0 : index
    %c6_34 = arith.constant 6 : index
    %c0_35 = arith.constant 0 : index
    %31 = vector.load %arg1[%c0_33, %c6_34, %c0_35] : memref<2x42x64xbf16, #tpu.memory_space<vmem>>, vector<1x24x64xbf16>
    %32 = vector.shape_cast %31 : vector<1x24x64xbf16> to vector<24x64xbf16>
    %cst_36 = arith.constant dense<0.000000e+00> : vector<24x8xf32>
    %33 = tpu.matmul %32, %9, %cst_36 {dimension_numbers = #tpu.dot_dimension_numbers<[1], [0], [0], [1], [0, 0, 1, 1], [], []>} : vector<24x64xbf16>, vector<64x8xbf16>, vector<24x8xf32> -> vector<24x8xf32>
    %34 = arith.addf %30, %33 : vector<24x8xf32>
    %c0_37 = arith.constant 0 : index
    %c7_38 = arith.constant 7 : index
    %c0_39 = arith.constant 0 : index
    %35 = vector.load %arg1[%c0_37, %c7_38, %c0_39] : memref<2x42x64xbf16, #tpu.memory_space<vmem>>, vector<1x24x64xbf16>
    %36 = vector.shape_cast %35 : vector<1x24x64xbf16> to vector<24x64xbf16>
    %cst_40 = arith.constant dense<0.000000e+00> : vector<24x8xf32>
    %37 = tpu.matmul %36, %11, %cst_40 {dimension_numbers = #tpu.dot_dimension_numbers<[1], [0], [0], [1], [0, 0, 1, 1], [], []>} : vector<24x64xbf16>, vector<64x8xbf16>, vector<24x8xf32> -> vector<24x8xf32>
    %38 = arith.addf %34, %37 : vector<24x8xf32>
    %c0_41 = arith.constant 0 : index
    %c8_42 = arith.constant 8 : index
    %c0_43 = arith.constant 0 : index
    %39 = vector.load %arg1[%c0_41, %c8_42, %c0_43] : memref<2x42x64xbf16, #tpu.memory_space<vmem>>, vector<1x24x64xbf16>
    %40 = vector.shape_cast %39 : vector<1x24x64xbf16> to vector<24x64xbf16>
    %cst_44 = arith.constant dense<0.000000e+00> : vector<24x8xf32>
    %41 = tpu.matmul %40, %13, %cst_44 {dimension_numbers = #tpu.dot_dimension_numbers<[1], [0], [0], [1], [0, 0, 1, 1], [], []>} : vector<24x64xbf16>, vector<64x8xbf16>, vector<24x8xf32> -> vector<24x8xf32>
    %42 = arith.addf %38, %41 : vector<24x8xf32>
    %c0_45 = arith.constant 0 : index
    %c12 = arith.constant 12 : index
    %c0_46 = arith.constant 0 : index
    %43 = vector.load %arg1[%c0_45, %c12, %c0_46] : memref<2x42x64xbf16, #tpu.memory_space<vmem>>, vector<1x24x64xbf16>
    %44 = vector.shape_cast %43 : vector<1x24x64xbf16> to vector<24x64xbf16>
    %cst_47 = arith.constant dense<0.000000e+00> : vector<24x8xf32>
    %45 = tpu.matmul %44, %15, %cst_47 {dimension_numbers = #tpu.dot_dimension_numbers<[1], [0], [0], [1], [0, 0, 1, 1], [], []>} : vector<24x64xbf16>, vector<64x8xbf16>, vector<24x8xf32> -> vector<24x8xf32>
    %46 = arith.addf %42, %45 : vector<24x8xf32>
    %c0_48 = arith.constant 0 : index
    %c13 = arith.constant 13 : index
    %c0_49 = arith.constant 0 : index
    %47 = vector.load %arg1[%c0_48, %c13, %c0_49] : memref<2x42x64xbf16, #tpu.memory_space<vmem>>, vector<1x24x64xbf16>
    %48 = vector.shape_cast %47 : vector<1x24x64xbf16> to vector<24x64xbf16>
    %cst_50 = arith.constant dense<0.000000e+00> : vector<24x8xf32>
    %49 = tpu.matmul %48, %17, %cst_50 {dimension_numbers = #tpu.dot_dimension_numbers<[1], [0], [0], [1], [0, 0, 1, 1], [], []>} : vector<24x64xbf16>, vector<64x8xbf16>, vector<24x8xf32> -> vector<24x8xf32>
    %50 = arith.addf %46, %49 : vector<24x8xf32>
    %c0_51 = arith.constant 0 : index
    %c14 = arith.constant 14 : index
    %c0_52 = arith.constant 0 : index
    %51 = vector.load %arg1[%c0_51, %c14, %c0_52] : memref<2x42x64xbf16, #tpu.memory_space<vmem>>, vector<1x24x64xbf16>
    %52 = vector.shape_cast %51 : vector<1x24x64xbf16> to vector<24x64xbf16>
    %cst_53 = arith.constant dense<0.000000e+00> : vector<24x8xf32>
    %53 = tpu.matmul %52, %19, %cst_53 {dimension_numbers = #tpu.dot_dimension_numbers<[1], [0], [0], [1], [0, 0, 1, 1], [], []>} : vector<24x64xbf16>, vector<64x8xbf16>, vector<24x8xf32> -> vector<24x8xf32>
    %54 = arith.addf %50, %53 : vector<24x8xf32>
    %55 = vector.broadcast %0 : vector<1x8xf32> to vector<24x8xf32>
    %56 = arith.addf %54, %55 : vector<24x8xf32>
    %57 = vector.extract_strided_slice %56 {offsets = [0, 0], sizes = [24, 4], strides = [1, 1]} : vector<24x8xf32> to vector<24x4xf32>
    %58 = vector.extract_strided_slice %56 {offsets = [0, 4], sizes = [24, 4], strides = [1, 1]} : vector<24x8xf32> to vector<24x4xf32>
    %cst_54 = arith.constant 5.000000e-01 : f32
    %59 = vector.broadcast %cst_54 : f32 to vector<24x4xf32>
    %60 = arith.mulf %59, %58 : vector<24x4xf32>
    %61 = math.exp %60 : vector<24x4xf32>
    %c0_55 = arith.constant 0 : index
    %c0_56 = arith.constant 0 : index
    %c0_57 = arith.constant 0 : index
    %62 = vector.load %arg4[%c0_55, %c0_56, %c0_57] : memref<2x24x4xf32, #tpu.memory_space<vmem>>, vector<1x24x4xf32>
    %63 = vector.shape_cast %62 : vector<1x24x4xf32> to vector<24x4xf32>
    %64 = arith.mulf %63, %61 : vector<24x4xf32>
    %65 = arith.addf %57, %64 : vector<24x4xf32>
    %c0_58 = arith.constant 0 : index
    %c0_59 = arith.constant 0 : index
    %c0_60 = arith.constant 0 : index
    %66 = vector.load %arg6[%c0_58, %c0_59, %c0_60] : memref<2x24x4xf32, #tpu.memory_space<vmem>>, vector<1x24x4xf32>
    %67 = vector.shape_cast %66 : vector<1x24x4xf32> to vector<24x4xf32>
    %68 = vector.shape_cast %65 : vector<24x4xf32> to vector<1x24x4xf32>
    tpu.vector_store %arg6[%c0_58, %c0_59, %c0_60], %68 {strides = array<i32>} : memref<2x24x4xf32, #tpu.memory_space<vmem>>, vector<1x24x4xf32>,
    %cst_61 = arith.constant 1.000000e+00 : f32
    %69 = vector.broadcast %cst_61 : f32 to vector<24x4xf32>
    %70 = arith.addf %69, %58 : vector<24x4xf32>
    %71 = arith.mulf %57, %57 : vector<24x4xf32>
    %72 = arith.subf %70, %71 : vector<24x4xf32>
    %73 = arith.mulf %61, %61 : vector<24x4xf32>
    %74 = arith.subf %72, %73 : vector<24x4xf32>
    %cst_62 = arith.constant -5.000000e-01 : f32
    %75 = vector.broadcast %cst_62 : f32 to vector<24x4xf32>
    %76 = arith.mulf %75, %74 : vector<24x4xf32>
    %77 = vector.broadcast %1 : vector<24x1xf32> to vector<24x4xf32>
    %78 = arith.mulf %76, %77 : vector<24x4xf32>
    %79 = vector.shape_cast %78 : vector<24x4xf32> to vector<1x24x4xf32>
    %cst_63 = arith.constant dense<0.000000e+00> : vector<1xf32>
    %80 = vector.multi_reduction <add>, %79, %cst_63 [1, 2] : vector<1x24x4xf32> to vector<1xf32>
    %81 = vector.shape_cast %80 : vector<1xf32> to vector<1x1x1xf32>
    %82 = vector.extract %81[0, 0, 0] : f32 from vector<1x1x1xf32>
    %cst_64 = arith.constant 1.562500e-02 : f32
    %83 = arith.mulf %82, %cst_64 : f32
    %cst_65 = arith.constant 0.000000e+00 : f32
    %84 = vector.broadcast %cst_65 : f32 to vector<8x128xf32>
    %85 = vector.broadcast %83 : f32 to vector<8x128xf32>
    %86 = arith.addf %84, %85 : vector<8x128xf32>
    %c0_66 = arith.constant 0 : index
    %c0_67 = arith.constant 0 : index
    %c0_68 = arith.constant 0 : index
    %87 = vector.load %arg7[%c0_66, %c0_67, %c0_68] : memref<2x8x128xf32, #tpu.memory_space<vmem>>, vector<1x8x128xf32>
    %88 = vector.shape_cast %87 : vector<1x8x128xf32> to vector<8x128xf32>
    %89 = vector.shape_cast %86 : vector<8x128xf32> to vector<1x8x128xf32>
    tpu.vector_store %arg7[%c0_66, %c0_67, %c0_68], %89 {strides = array<i32>} : memref<2x8x128xf32, #tpu.memory_space<vmem>>, vector<1x8x128xf32>,
    %c1_69 = arith.constant 1 : index
    %c0_70 = arith.constant 0 : index
    %c0_71 = arith.constant 0 : index
    %90 = vector.load %arg1[%c1_69, %c0_70, %c0_71] : memref<2x42x64xbf16, #tpu.memory_space<vmem>>, vector<1x24x64xbf16>
    %91 = vector.shape_cast %90 : vector<1x24x64xbf16> to vector<24x64xbf16>
    %cst_72 = arith.constant dense<0.000000e+00> : vector<24x8xf32>
    %92 = tpu.matmul %91, %3, %cst_72 {dimension_numbers = #tpu.dot_dimension_numbers<[1], [0], [0], [1], [0, 0, 1, 1], [], []>} : vector<24x64xbf16>, vector<64x8xbf16>, vector<24x8xf32> -> vector<24x8xf32>
    %c1_73 = arith.constant 1 : index
    %c1_74 = arith.constant 1 : index
    %c0_75 = arith.constant 0 : index
    %93 = vector.load %arg1[%c1_73, %c1_74, %c0_75] : memref<2x42x64xbf16, #tpu.memory_space<vmem>>, vector<1x24x64xbf16>
    %94 = vector.shape_cast %93 : vector<1x24x64xbf16> to vector<24x64xbf16>
    %cst_76 = arith.constant dense<0.000000e+00> : vector<24x8xf32>
    %95 = tpu.matmul %94, %5, %cst_76 {dimension_numbers = #tpu.dot_dimension_numbers<[1], [0], [0], [1], [0, 0, 1, 1], [], []>} : vector<24x64xbf16>, vector<64x8xbf16>, vector<24x8xf32> -> vector<24x8xf32>
    %96 = arith.addf %92, %95 : vector<24x8xf32>
    %c1_77 = arith.constant 1 : index
    %c2_78 = arith.constant 2 : index
    %c0_79 = arith.constant 0 : index
    %97 = vector.load %arg1[%c1_77, %c2_78, %c0_79] : memref<2x42x64xbf16, #tpu.memory_space<vmem>>, vector<1x24x64xbf16>
    %98 = vector.shape_cast %97 : vector<1x24x64xbf16> to vector<24x64xbf16>
    %cst_80 = arith.constant dense<0.000000e+00> : vector<24x8xf32>
    %99 = tpu.matmul %98, %7, %cst_80 {dimension_numbers = #tpu.dot_dimension_numbers<[1], [0], [0], [1], [0, 0, 1, 1], [], []>} : vector<24x64xbf16>, vector<64x8xbf16>, vector<24x8xf32> -> vector<24x8xf32>
    %100 = arith.addf %96, %99 : vector<24x8xf32>
    %c1_81 = arith.constant 1 : index
    %c6_82 = arith.constant 6 : index
    %c0_83 = arith.constant 0 : index
    %101 = vector.load %arg1[%c1_81, %c6_82, %c0_83] : memref<2x42x64xbf16, #tpu.memory_space<vmem>>, vector<1x24x64xbf16>
    %102 = vector.shape_cast %101 : vector<1x24x64xbf16> to vector<24x64xbf16>
    %cst_84 = arith.constant dense<0.000000e+00> : vector<24x8xf32>
    %103 = tpu.matmul %102, %9, %cst_84 {dimension_numbers = #tpu.dot_dimension_numbers<[1], [0], [0], [1], [0, 0, 1, 1], [], []>} : vector<24x64xbf16>, vector<64x8xbf16>, vector<24x8xf32> -> vector<24x8xf32>
    %104 = arith.addf %100, %103 : vector<24x8xf32>
    %c1_85 = arith.constant 1 : index
    %c7_86 = arith.constant 7 : index
    %c0_87 = arith.constant 0 : index
    %105 = vector.load %arg1[%c1_85, %c7_86, %c0_87] : memref<2x42x64xbf16, #tpu.memory_space<vmem>>, vector<1x24x64xbf16>
    %106 = vector.shape_cast %105 : vector<1x24x64xbf16> to vector<24x64xbf16>
    %cst_88 = arith.constant dense<0.000000e+00> : vector<24x8xf32>
    %107 = tpu.matmul %106, %11, %cst_88 {dimension_numbers = #tpu.dot_dimension_numbers<[1], [0], [0], [1], [0, 0, 1, 1], [], []>} : vector<24x64xbf16>, vector<64x8xbf16>, vector<24x8xf32> -> vector<24x8xf32>
    %108 = arith.addf %104, %107 : vector<24x8xf32>
    %c1_89 = arith.constant 1 : index
    %c8_90 = arith.constant 8 : index
    %c0_91 = arith.constant 0 : index
    %109 = vector.load %arg1[%c1_89, %c8_90, %c0_91] : memref<2x42x64xbf16, #tpu.memory_space<vmem>>, vector<1x24x64xbf16>
    %110 = vector.shape_cast %109 : vector<1x24x64xbf16> to vector<24x64xbf16>
    %cst_92 = arith.constant dense<0.000000e+00> : vector<24x8xf32>
    %111 = tpu.matmul %110, %13, %cst_92 {dimension_numbers = #tpu.dot_dimension_numbers<[1], [0], [0], [1], [0, 0, 1, 1], [], []>} : vector<24x64xbf16>, vector<64x8xbf16>, vector<24x8xf32> -> vector<24x8xf32>
    %112 = arith.addf %108, %111 : vector<24x8xf32>
    %c1_93 = arith.constant 1 : index
    %c12_94 = arith.constant 12 : index
    %c0_95 = arith.constant 0 : index
    %113 = vector.load %arg1[%c1_93, %c12_94, %c0_95] : memref<2x42x64xbf16, #tpu.memory_space<vmem>>, vector<1x24x64xbf16>
    %114 = vector.shape_cast %113 : vector<1x24x64xbf16> to vector<24x64xbf16>
    %cst_96 = arith.constant dense<0.000000e+00> : vector<24x8xf32>
    %115 = tpu.matmul %114, %15, %cst_96 {dimension_numbers = #tpu.dot_dimension_numbers<[1], [0], [0], [1], [0, 0, 1, 1], [], []>} : vector<24x64xbf16>, vector<64x8xbf16>, vector<24x8xf32> -> vector<24x8xf32>
    %116 = arith.addf %112, %115 : vector<24x8xf32>
    %c1_97 = arith.constant 1 : index
    %c13_98 = arith.constant 13 : index
    %c0_99 = arith.constant 0 : index
    %117 = vector.load %arg1[%c1_97, %c13_98, %c0_99] : memref<2x42x64xbf16, #tpu.memory_space<vmem>>, vector<1x24x64xbf16>
    %118 = vector.shape_cast %117 : vector<1x24x64xbf16> to vector<24x64xbf16>
    %cst_100 = arith.constant dense<0.000000e+00> : vector<24x8xf32>
    %119 = tpu.matmul %118, %17, %cst_100 {dimension_numbers = #tpu.dot_dimension_numbers<[1], [0], [0], [1], [0, 0, 1, 1], [], []>} : vector<24x64xbf16>, vector<64x8xbf16>, vector<24x8xf32> -> vector<24x8xf32>
    %120 = arith.addf %116, %119 : vector<24x8xf32>
    %c1_101 = arith.constant 1 : index
    %c14_102 = arith.constant 14 : index
    %c0_103 = arith.constant 0 : index
    %121 = vector.load %arg1[%c1_101, %c14_102, %c0_103] : memref<2x42x64xbf16, #tpu.memory_space<vmem>>, vector<1x24x64xbf16>
    %122 = vector.shape_cast %121 : vector<1x24x64xbf16> to vector<24x64xbf16>
    %cst_104 = arith.constant dense<0.000000e+00> : vector<24x8xf32>
    %123 = tpu.matmul %122, %19, %cst_104 {dimension_numbers = #tpu.dot_dimension_numbers<[1], [0], [0], [1], [0, 0, 1, 1], [], []>} : vector<24x64xbf16>, vector<64x8xbf16>, vector<24x8xf32> -> vector<24x8xf32>
    %124 = arith.addf %120, %123 : vector<24x8xf32>
    %125 = vector.broadcast %0 : vector<1x8xf32> to vector<24x8xf32>
    %126 = arith.addf %124, %125 : vector<24x8xf32>
    %127 = vector.extract_strided_slice %126 {offsets = [0, 0], sizes = [24, 4], strides = [1, 1]} : vector<24x8xf32> to vector<24x4xf32>
    %128 = vector.extract_strided_slice %126 {offsets = [0, 4], sizes = [24, 4], strides = [1, 1]} : vector<24x8xf32> to vector<24x4xf32>
    %cst_105 = arith.constant 5.000000e-01 : f32
    %129 = vector.broadcast %cst_105 : f32 to vector<24x4xf32>
    %130 = arith.mulf %129, %128 : vector<24x4xf32>
    %131 = math.exp %130 : vector<24x4xf32>
    %c1_106 = arith.constant 1 : index
    %c0_107 = arith.constant 0 : index
    %c0_108 = arith.constant 0 : index
    %132 = vector.load %arg4[%c1_106, %c0_107, %c0_108] : memref<2x24x4xf32, #tpu.memory_space<vmem>>, vector<1x24x4xf32>
    %133 = vector.shape_cast %132 : vector<1x24x4xf32> to vector<24x4xf32>
    %134 = arith.mulf %133, %131 : vector<24x4xf32>
    %135 = arith.addf %127, %134 : vector<24x4xf32>
    %c1_109 = arith.constant 1 : index
    %c0_110 = arith.constant 0 : index
    %c0_111 = arith.constant 0 : index
    %136 = vector.load %arg6[%c1_109, %c0_110, %c0_111] : memref<2x24x4xf32, #tpu.memory_space<vmem>>, vector<1x24x4xf32>
    %137 = vector.shape_cast %136 : vector<1x24x4xf32> to vector<24x4xf32>
    %138 = vector.shape_cast %135 : vector<24x4xf32> to vector<1x24x4xf32>
    tpu.vector_store %arg6[%c1_109, %c0_110, %c0_111], %138 {strides = array<i32>} : memref<2x24x4xf32, #tpu.memory_space<vmem>>, vector<1x24x4xf32>,
    %cst_112 = arith.constant 1.000000e+00 : f32
    %139 = vector.broadcast %cst_112 : f32 to vector<24x4xf32>
    %140 = arith.addf %139, %128 : vector<24x4xf32>
    %141 = arith.mulf %127, %127 : vector<24x4xf32>
    %142 = arith.subf %140, %141 : vector<24x4xf32>
    %143 = arith.mulf %131, %131 : vector<24x4xf32>
    %144 = arith.subf %142, %143 : vector<24x4xf32>
    %cst_113 = arith.constant -5.000000e-01 : f32
    %145 = vector.broadcast %cst_113 : f32 to vector<24x4xf32>
    %146 = arith.mulf %145, %144 : vector<24x4xf32>
    %147 = vector.broadcast %1 : vector<24x1xf32> to vector<24x4xf32>
    %148 = arith.mulf %146, %147 : vector<24x4xf32>
    %149 = vector.shape_cast %148 : vector<24x4xf32> to vector<1x24x4xf32>
    %cst_114 = arith.constant dense<0.000000e+00> : vector<1xf32>
    %150 = vector.multi_reduction <add>, %149, %cst_114 [1, 2] : vector<1x24x4xf32> to vector<1xf32>
    %151 = vector.shape_cast %150 : vector<1xf32> to vector<1x1x1xf32>
    %152 = vector.extract %151[0, 0, 0] : f32 from vector<1x1x1xf32>
    %cst_115 = arith.constant 1.562500e-02 : f32
    %153 = arith.mulf %152, %cst_115 : f32
    %cst_116 = arith.constant 0.000000e+00 : f32
    %154 = vector.broadcast %cst_116 : f32 to vector<8x128xf32>
    %155 = vector.broadcast %153 : f32 to vector<8x128xf32>
    %156 = arith.addf %154, %155 : vector<8x128xf32>
    %c1_117 = arith.constant 1 : index
    %c0_118 = arith.constant 0 : index
    %c0_119 = arith.constant 0 : index
    %157 = vector.load %arg7[%c1_117, %c0_118, %c0_119] : memref<2x8x128xf32, #tpu.memory_space<vmem>>, vector<1x8x128xf32>
    %158 = vector.shape_cast %157 : vector<1x8x128xf32> to vector<8x128xf32>
    %159 = vector.shape_cast %156 : vector<8x128xf32> to vector<1x8x128xf32>
    tpu.vector_store %arg7[%c1_117, %c0_118, %c0_119], %159 {strides = array<i32>} : memref<2x8x128xf32, #tpu.memory_space<vmem>>, vector<1x8x128xf32>,
    return
  }
  func.func @transform_0(%arg0: i32) -> (i32, i32, i32) {
    %c0_i32 = arith.constant 0 : i32
    %c0_i32_0 = arith.constant 0 : i32
    %c0_i32_1 = arith.constant 0 : i32
    %c0_i32_2 = arith.constant 0 : i32
    return %c0_i32, %c0_i32_0, %c0_i32_1 : i32, i32, i32
  }
  func.func @transform_1(%arg0: i32) -> (i32, i32, i32) {
    %c0_i32 = arith.constant 0 : i32
    %c0_i32_0 = arith.constant 0 : i32
    %c0_i32_1 = arith.constant 0 : i32
    %c0_i32_2 = arith.constant 0 : i32
    return %c0_i32, %c0_i32_0, %c0_i32_1 : i32, i32, i32
  }
  func.func @transform_2(%arg0: i32) -> (i32, i32) {
    %c0_i32 = arith.constant 0 : i32
    %c0_i32_0 = arith.constant 0 : i32
    %c0_i32_1 = arith.constant 0 : i32
    return %c0_i32, %c0_i32_0 : i32, i32
  }
  func.func @transform_3(%arg0: i32) -> (i32, i32, i32) {
    %c0_i32 = arith.constant 0 : i32
    %c0_i32_0 = arith.constant 0 : i32
    %c0_i32_1 = arith.constant 0 : i32
    %c0_i32_2 = arith.constant 0 : i32
    return %c0_i32, %c0_i32_0, %c0_i32_1 : i32, i32, i32
  }
  func.func @transform_4(%arg0: i32) -> (i32, i32) {
    %c0_i32 = arith.constant 0 : i32
    %c0_i32_0 = arith.constant 0 : i32
    %c0_i32_1 = arith.constant 0 : i32
    return %c0_i32, %c0_i32_0 : i32, i32
  }
  func.func @transform_5(%arg0: i32) -> (i32, i32, i32) {
    %c0_i32 = arith.constant 0 : i32
    %c0_i32_0 = arith.constant 0 : i32
    %c0_i32_1 = arith.constant 0 : i32
    %c0_i32_2 = arith.constant 0 : i32
    return %c0_i32, %c0_i32_0, %c0_i32_1 : i32, i32, i32
  }
  func.func @transform_6(%arg0: i32) -> (i32, i32, i32) {
    %c0_i32 = arith.constant 0 : i32
    %c0_i32_0 = arith.constant 0 : i32
    %c0_i32_1 = arith.constant 0 : i32
    %c0_i32_2 = arith.constant 0 : i32
    return %c0_i32, %c0_i32_0, %c0_i32_1 : i32, i32, i32
  }
}

</mosaic_0001>

<bundles_post_ra>
// kernel: variational_encoder_forward.4
= control target key start
LH: loop header
LB: loop body
LE: loop exit
PB: predicated region body
PF: predicated region fallthrough
CT: control target
= control target key end

     0   :  { %s5389_s12 = smov 0   ;;  %s6531_s0 = inlined_call_operand.vmem [shape: bf16[2,342,8], index: 0, kind: input, shape index: {}]   ;;  %s6532_s1 = inlined_call_operand.vmem [shape: bf16[9,8,32], index: 1, kind: input, shape index: {}]   ;;  %s6533_s2 = inlined_call_operand.vmem [shape: f32[1,32], index: 2, kind: input, shape index: {}]   ;;  %s6534_s3 = inlined_call_operand.vmem [shape: bf16[2,288,32], index: 3, kind: output, shape index: {}]  }
   0x1 LB: > { %s4079_s13 = sadd.s32 4294967295, %s5367_s12   ;;  %p4083_p0 = scmp.ge.s32.totalorder %s5367_s12, 1  ;;  %s5367_s12 = sphi %s5389_s12, %s13_s12  }
   0x2   : > { %p137_p1 = scmp.lt.s32.totalorder %s5367_s12, 3 }
   0x4   : > { %p138_p2 = pnand %p4083_p0, %p137_p1 }
   0x5   : > { %vm509_vm0 = vcmask (!%p138_p2), 1043456   ;;  %v4200_v0 = vld [vmem:[%s6532_s1 + $0x10] sm:$0xf] (!%p138_p2)  ;;  %v4086_v1 = vld [vmem:[%s6532_s1 + $0x4] sm:$0xf] (!%p138_p2)  ;;  %p161_p3 = scmp.lt.s32.totalorder (!%p138_p2), %s4079_s13, 1 }
   0x6   : > { %141 = sbr.rel (%p138_p2) target bundleno = 592 (0x250), region = 32  ;;  %5200 = vmatprep.subr.msk.bf16.mxu0 (!%p138_p2), %vm509_vm0, %v4200_v0  ;;  %5196 = vmatprep.subr.msk.bf16.mxu1 (!%p138_p2), %vm509_vm0, %v4086_v1  ;;  %v5406_v2 = vsel (!%p138_p2), %vm509_vm0, %v4200_v0, 0  ;;  %v511_v3 = vsel (!%p138_p2), %vm509_vm0, %v4086_v1, 0  ;;  %v4220_v4 = vld [vmem:[%s6532_s1 + $0x14] sm:$0xf] (!%p138_p2)  ;;  %vm454_vm2 = vcmask (!%p138_p2), 64512  }
   0x7   : > { %4717 = vmatpush3.bf16.msra.mxu0 (!%p138_p2), %v5406_v2  ;;  %4565 = vmatpush3.bf16.msra.mxu1 (!%p138_p2), %v511_v3  ;;  %v208_v5 = vld [vmem:[%s6532_s1] sm:$0xf] (!%p138_p2)  ;;  %vm305_vm1 = vsmask.f32 (!%p138_p2), 7424  ;;  %v5427_v6 = vsel (!%p138_p2), %vm509_vm0, %v4220_v4, 0  ;;  %vm2112_vm4 = vcmask (!%p138_p2), 1045504  }
   0x8   : > { %5202 = vmatprep.subr.msk.bf16.mxu0 (!%p138_p2), %vm509_vm0, %v4220_v4  ;;  %5197 = vmatprep.subr.msk.bf16.mxu1 (!%p138_p2), %vm509_vm0, %v208_v5  ;;  %vm1665_vm3 = vsmask.f32 (!%p138_p2), 6400  ;;  %v727_v12 = vsel (!%p138_p2), %vm509_vm0, %v208_v5, 0  ;;  %v5475_v39 = vld [vmem:[%s6532_s1 + $0x8] sm:$0xf] (!%p138_p2)  ;;  %vm912_vm5 = vcmask (!%p138_p2), 1046528  }
   0x9   : > { %v5509_v1 = vld [vmem:[%s6532_s1 + $0x18] sm:$0xf] (!%p138_p2)  ;;  %vm2865_vm6 = vsmask.f32 (!%p138_p2), 5376  ;;  %vm3312_vm7 = vcmask (!%p138_p2), 1044480   ;;  %vm3987_vm8 = vcmask (!%p138_p2), 257024  }
   0xd   : > { %s6536_s13 = smov (!%p161_p3, %s4079_s13), 1 }
   0xe   : > { %s5206_s22 = smul.u32 172, %s6536_s13 }
   0xf   : > { %s5207_s15 = smul.u32 144, %s6536_s13 }
  0x10   : > { %s5424_s25 = scalar_lea.vmem %s6531_s0, %s5206_s22 }
  0x11   : > { %v172_v7 = vld [vmem:[%s5424_s25] sm:$0xf]  ;;  %v5431_v8 = vld [vmem:[%s5424_s25 + $0x4] sm:$0xf]  ;;  %v5437_v10 = vld [vmem:[%s5424_s25 + $0x8] sm:$0xff]   ;;  %s6274_s17 = scalar_lea.vmem %s6534_s3, %s5207_s15 }
  0x12   : > { %v5434_v9 = vcombine.low %v172_v7, %v5431_v8  ;;  %v1220_v11 = vld [vmem:[%s5424_s25 + $0x8] sm:$0xe]  ;;  %v5442_v13 = vld [vmem:[%s5424_s25 + $0xc] sm:$0xf]  ;;  %v314_v16 = vshll.u32 %v5437_v10, 16  ;;  %v318_v17 = vshrl.u32 %v5437_v10, 16 }
  0x13   : > { %v5449_v18 = vld [vmem:[%s5424_s25 + $0x10] sm:$0xff]   ;;  %v5455_v20 = vcombine.low %v1220_v11, %v5442_v13  ;;  %v5463_v28 = vld [vmem:[%s5424_s25 + $0x18] sm:$0xff]   ;;  %v5469_v34 = vld [vmem:[%s5424_s25 + $0x20] sm:$0xff]  }
  0x14   : > { %v307_v14 = vshrl.u32 %v5434_v9, 16  ;;  %v309_v15 = vshll.u32 %v5434_v9, 16  ;;  %v5452_v19 = vld [vmem:[%s5424_s25 + $0x10] sm:$0xff]   ;;  %v316_v22 = vrot.slane %v314_v16, 1  ;;  %v1675_v23 = vshrl.u32 %v5449_v18, 16  ;;  %v5466_v33 = vld [vmem:[%s5424_s25 + $0x18] sm:$0xff]  }
  0x15   : > { %v1678_v24 = vshll.u32 %v5449_v18, 16  ;;  %v1667_v25 = vshrl.u32 %v5455_v20, 16  ;;  %v1670_v26 = vshll.u32 %v5455_v20, 16  ;;  %v322_v27 = vshll.u32 %v5452_v19, 16  ;;  %v5484_v48 = vld [vmem:[%s5424_s25 + $0x20] sm:$0xff]   ;;  %v5487_v49 = vld [vmem:[%s5424_s25 + $0x28] sm:$0xff]  }
  0x16   : > { %v311_v21 = vrot.slane %v309_v15, 1  ;;  %v320_v30 = vor.u32 %v318_v17, %v316_v22  ;;  %v1677_v31 = vrot.slane %v1675_v23, 1  ;;  %v1684_v38 = vshrl.u32 %v5463_v28, 16  ;;  %v5493_v54 = vld [vmem:[%s5424_s25 + $0x28] sm:$0xff]   ;;  %v5499_v59 = vld [vmem:[%s5424_s25 + $0x30] sm:$0xff]   ;;  %v5523_v23 = vld [vmem:[%s5424_s25 + $0x38] sm:$0xff]  }
  0x17   : > { %v1680_v32 = vrot.slane %v1678_v24, 2  ;;  %v1669_v35 = vrot.slane %v1667_v25, 1  ;;  %v1672_v36 = vrot.slane %v1670_v26, 2  ;;  %v324_v37 = vrot.slane %v322_v27, 1  ;;  %v5504_v0 = vld [vmem:[%s5424_s25 + $0x30] sm:$0xff]  }
  0x18   : > { %v312_v29 = vor.u32 %v311_v21, %v307_v14  ;;  %v1687_v42 = vshll.u32 %v5463_v28, 16  ;;  %v326_v43 = vshrl.u32 %v5452_v19, 16  ;;  %v1686_v46 = vrot.slane %v1684_v38, 1 }
  0x19   : > { %v1681_v41 = vor.u32 %v1680_v32, %v1677_v31  ;;  %v1673_v44 = vor.u32 %v1672_v36, %v1669_v35  ;;  %v325_v45 = vsel %vm305_vm1, %v320_v30, %v324_v37  ;;  %v330_v47 = vshll.u32 %v5466_v33, 16  ;;  %v5532_v35 = vld [vmem:[%s5424_s25 + $0x38] sm:$0xff]  }
  0x1a   : > { %v317_v40 = vsel %vm305_vm1, %v312_v29, %v316_v22  ;;  %v1689_v50 = vrot.slane %v1687_v42, 2  ;;  %v328_v51 = vor.u32 %v326_v43, %v324_v37  ;;  %v1693_v52 = vshrl.u32 %v5469_v34, 16 }
  0x1b   : > { %4566 = vmatprep.mubr.msk.bf16.mxu1 %vm454_vm2, %v317_v40  ;;  %v1696_v53 = vshll.u32 %v5469_v34, 16  ;;  %v1682_v55 = vsel %vm1665_vm3, %v1673_v44, %v1681_v41  ;;  %v332_v56 = vrot.slane %v330_v47, 1  ;;  %v334_v57 = vshrl.u32 %v5466_v33, 16  ;;  %v5543_v44 = vld [vmem:[%s5424_s25 + $0x40] sm:$0xff]  }
  0x1c   : > { %4567 = vmatmul.mubr.msk.bf16.vlgmr.msra.gmra.mrb[0].mxu1 %vm454_vm2, %v325_v45  ;;  %v338_v58 = vshll.u32 %v5484_v48, 16  ;;  %4718 = vmatprep.mubr.msk.bf16.mxu0 %vm454_vm2, %v1682_v55  ;;  %v1690_v60 = vor.u32 %v1689_v50, %v1686_v46  ;;  %v1695_v61 = vrot.slane %v1693_v52, 1  ;;  %v1702_v63 = vshrl.u32 %v5487_v49, 16 }
  0x1d   : > { %4603 = vmatpush3.bf16.msra.mxu1 %v727_v12  ;;  %v1698_v62 = vrot.slane %v1696_v53, 2  ;;  %v333_v3 = vsel %vm305_vm1, %v328_v51, %v332_v56  ;;  %v336_v4 = vor.u32 %v334_v57, %v332_v56  ;;  %v1705_v7 = vshll.u32 %v5487_v49, 16  ;;  %v5548_v51 = vld [vmem:[%s5424_s25 + $0x40] sm:$0xff]  }
  0x1e   : > { %5198 = vmatprep.subr.msk.bf16.mxu1 %vm509_vm0, %v5475_v39  ;;  %v340_v5 = vrot.slane %v338_v58, 1  ;;  %v1691_v11 = vsel %vm1665_vm3, %v1681_v41, %v1690_v60  ;;  %4570 = vmatprep.mubr.msk.bf16.mxu1 %vm454_vm2, %v333_v3  ;;  %v1704_v14 = vrot.slane %v1702_v63, 1  ;;  %v342_v15 = vshrl.u32 %v5484_v48, 16  ;;  %v5559_v63 = vld [vmem:[%s5424_s25 + $0x48] sm:$0xff]  }
  0x1f   : > { %v1699_v12 = vor.u32 %v1698_v62, %v1695_v61  ;;  %4719 = vmatmul.mubr.msk.bf16.vlgmr.msra.gmra.mrb[0].mxu0 %vm454_vm2, %v1691_v11  ;;  %v1707_v17 = vrot.slane %v1705_v7, 2  ;;  %v346_v21 = vshll.u32 %v5493_v54, 16  ;;  %v1711_v22 = vshrl.u32 %v5499_v59, 16  ;;  %v5556_v62 = vld [vmem:[%s5424_s25 + $0x48] sm:$0xff]  }
  0x20   : > { %v341_v16 = vsel %vm305_vm1, %v336_v4, %v340_v5  ;;  %4755 = vmatpush3.bf16.msra.mxu0 %v5427_v6  ;;  %v344_v25 = vor.u32 %v342_v15, %v340_v5  ;;  %v1714_v26 = vshll.u32 %v5499_v59, 16  ;;  %v350_v27 = vshrl.u32 %v5493_v54, 16 }
  0x21   : > { %v1700_v24 = vsel %vm1665_vm3, %v1690_v60, %v1699_v12  ;;  %v1708_v29 = vor.u32 %v1707_v17, %v1704_v14  ;;  %v348_v30 = vrot.slane %v346_v21, 1  ;;  %v1713_v31 = vrot.slane %v1711_v22, 1  ;;  %5203 = vmatprep.subr.msk.bf16.mxu0 %vm509_vm0, %v5509_v1  ;;  %v5568_v14 = vld [vmem:[%s5424_s25 + $0x50] sm:$0xff]  }
  0x22   : > { %4722 = vmatprep.mubr.msk.bf16.mxu0 %vm454_vm2, %v1700_v24  ;;  %v354_v32 = vshll.u32 %v5504_v0, 16  ;;  %v1716_v6 = vrot.slane %v1714_v26, 2  ;;  %v1720_v36 = vshrl.u32 %v5523_v23, 16  ;;  %v1723_v37 = vshll.u32 %v5523_v23, 16 }
  0x23   : > { %v358_v38 = vshrl.u32 %v5504_v0, 16  ;;  %v1709_v40 = vsel %vm1665_vm3, %v1699_v12, %v1708_v29  ;;  %v349_v41 = vsel %vm305_vm1, %v344_v25, %v348_v30  ;;  %v352_v42 = vor.u32 %v350_v27, %v348_v30  ;;  %v5576_v25 = vld [vmem:[%s5424_s25 + $0x50] sm:$0xff]  }
  0x24   : > { %4571 = vmatmul.mubr.msk.bf16.gmra.mrb[4].mxu1 %vm454_vm2, %v341_v16  ;;  %v356_v43 = vrot.slane %v354_v32, 1  ;;  %v1717_v45 = vor.u32 %v1716_v6, %v1713_v31  ;;  %v1722_v46 = vrot.slane %v1720_v36, 1  ;;  %v1725_v47 = vrot.slane %v1723_v37, 2 }
  0x25   : > { %4574 = vmatprep.mubr.msk.bf16.mxu1 %vm454_vm2, %v349_v41  ;;  %v362_v50 = vshll.u32 %v5532_v35, 16  ;;  %v1729_v55 = vshrl.u32 %v5543_v44, 16  ;;  %v1732_v56 = vshll.u32 %v5543_v44, 16  ;;  %v366_v61 = vshrl.u32 %v5532_v35, 16  ;;  %v5586_v41 = vld [vmem:[%s5424_s25 + $0x58] sm:$0xff]  }
  0x26   : > { %v357_v52 = vsel %vm305_vm1, %v352_v42, %v356_v43  ;;  %v360_v53 = vor.u32 %v358_v38, %v356_v43  ;;  %v1718_v57 = vsel %vm1665_vm3, %v1708_v29, %v1717_v45  ;;  %v1726_v58 = vor.u32 %v1725_v47, %v1722_v46  ;;  %v5581_v29 = vld [vmem:[%s5424_s25 + $0x58] sm:$0xff]  }
  0x27   : > { %v364_v60 = vrot.slane %v362_v50, 1  ;;  %4723 = vmatmul.mubr.msk.bf16.gmra.mrb[4].mxu0 %vm454_vm2, %v1709_v40  ;;  %v1731_v3 = vrot.slane %v1729_v55, 1  ;;  %v1734_v4 = vrot.slane %v1732_v56, 2  ;;  %v370_v5 = vshll.u32 %v5548_v51, 16 }
  0x28   : > { %v374_v7 = vshrl.u32 %v5548_v51, 16  ;;  %4726 = vmatprep.mubr.msk.bf16.mxu0 %vm454_vm2, %v1718_v57  ;;  %v1738_v12 = vshrl.u32 %v5556_v62, 16  ;;  %v1741_v16 = vshll.u32 %v5556_v62, 16  ;;  %v378_v17 = vshll.u32 %v5559_v63, 16  ;;  %v2106_v57 = vld [vmem:[%s5424_s25 + $0x8] sm:$0xc] }
  0x29   : > { %v365_v11 = vsel %vm305_vm1, %v360_v53, %v364_v60  ;;  %v1735_v15 = vor.u32 %v1734_v4, %v1731_v3  ;;  %v372_v21 = vrot.slane %v370_v5, 1  ;;  %v1747_v22 = vshrl.u32 %v5568_v14, 16 }
  0x2a   : > { %v1750_v24 = vshll.u32 %v5568_v14, 16  ;;  %v1727_v26 = vsel %vm1665_vm3, %v1717_v45, %v1726_v58  ;;  %v368_v27 = vor.u32 %v366_v61, %v364_v60  ;;  %v1740_v30 = vrot.slane %v1738_v12, 1 }
  0x2b   : > { %v1743_v31 = vrot.slane %v1741_v16, 2  ;;  %v376_v32 = vor.u32 %v374_v7, %v372_v21  ;;  %v380_v6 = vrot.slane %v378_v17, 1  ;;  %v1736_v36 = vsel %vm1665_vm3, %v1726_v58, %v1735_v15  ;;  %v5600_v58 = vld [vmem:[%s5424_s25 + $0x60] sm:$0xff]  }
  0x2c   : > { %4575 = vmatmul.mubr.msk.bf16.gmra.mrb[8].mxu1 %vm454_vm2, %v357_v52  ;;  %v1749_v37 = vrot.slane %v1747_v22, 1  ;;  %v1752_v38 = vrot.slane %v1750_v24, 2  ;;  %v386_v40 = vshll.u32 %v5576_v25, 16  ;;  %v373_v42 = vsel %vm305_vm1, %v368_v27, %v372_v21 }
  0x2d   : > { %4578 = vmatprep.mubr.msk.bf16.mxu1 %vm454_vm2, %v365_v11  ;;  %v382_v43 = vshrl.u32 %v5559_v63, 16  ;;  %v1756_v45 = vshrl.u32 %v5581_v29, 16  ;;  %v1759_v46 = vshll.u32 %v5581_v29, 16  ;;  %v1744_v47 = vor.u32 %v1743_v31, %v1740_v30  ;;  %v5605_v11 = vld [vmem:[%s5424_s25 + $0x68] sm:$0xff]  }
  0x2e   : > { %v381_v50 = vsel %vm305_vm1, %v376_v32, %v380_v6  ;;  %v390_v52 = vshrl.u32 %v5576_v25, 16  ;;  %v394_v53 = vshll.u32 %v5586_v41, 16  ;;  %v1753_v55 = vor.u32 %v1752_v38, %v1749_v37  ;;  %v5622_v32 = vld [vmem:[%s5424_s25 + $0x70] sm:$0xff]  }
  0x2f   : > { %4727 = vmatmul.mubr.msk.bf16.gmra.mrb[8].mxu0 %vm454_vm2, %v1727_v26  ;;  %v388_v56 = vrot.slane %v386_v40, 1  ;;  %v384_v60 = vor.u32 %v382_v43, %v380_v6  ;;  %v1758_v61 = vrot.slane %v1756_v45, 1  ;;  %v1761_v3 = vrot.slane %v1759_v46, 2  ;;  %v5628_v40 = vld [vmem:[%s5424_s25 + $0x78] sm:$0xff]  }
  0x30   : > { %4730 = vmatprep.mubr.msk.bf16.mxu0 %vm454_vm2, %v1736_v36  ;;  %v1745_v4 = vsel %vm1665_vm3, %v1735_v15, %v1744_v47  ;;  %v396_v7 = vrot.slane %v394_v53, 1  ;;  %v1754_v12 = vsel %vm1665_vm3, %v1744_v47, %v1753_v55  ;;  %v4221_v16 = vcombine.low %v2106_v57, %v5442_v13 }
  0x31   : > { %v392_v5 = vor.u32 %v390_v52, %v388_v56  ;;  %v402_v17 = vshll.u32 %v5600_v58, 16  ;;  %v389_v21 = vsel %vm305_vm1, %v384_v60, %v388_v56  ;;  %v398_v22 = vshrl.u32 %v5586_v41, 16  ;;  %v5643_v56 = vld [vmem:[%s5424_s25 + $0x80] sm:$0xff]  }
  0x32   : > { %v5614_v15 = vor.u32 %v1761_v3, %v1758_v61  ;;  %v406_v26 = vshrl.u32 %v5600_v58, 16  ;;  %v410_v27 = vshll.u32 %v5605_v11, 16  ;;  %v2113_v13 = vrot.slane %v4221_v16, 2 }
  0x33   : > { %v397_v24 = vsel %vm305_vm1, %v392_v5, %v396_v7  ;;  %v2114_v30 = vrot.slane %v5449_v18, 2  ;;  %v404_v31 = vrot.slane %v402_v17, 1  ;;  %v400_v6 = vor.u32 %v398_v22, %v396_v7 }
  0x34   : > { %4579 = vmatmul.mubr.msk.bf16.gmra.mrb[12].mxu1 %vm454_vm2, %v373_v42  ;;  %v1763_v36 = vsel %vm1665_vm3, %v1753_v55, %v5614_v15  ;;  %v412_v38 = vrot.slane %v410_v27, 1  ;;  %v418_v18 = vshll.u32 %v5622_v32, 16  ;;  %v2116_v45 = vrot.slane %v5463_v28, 2  ;;  %v5673_v27 = vld [vmem:[%s5424_s25 + $0x90] ss:$0 sps:$4 sm:$0x11]  }
  0x35   : > { %4582 = vmatprep.mubr.msk.bf16.mxu1 %vm454_vm2, %v381_v50  ;;  %v408_v37 = vor.u32 %v406_v26, %v404_v31  ;;  %v2115_v42 = vsel %vm2112_vm4, %v2113_v13, %v2114_v30  ;;  %v405_v43 = vsel %vm305_vm1, %v400_v6, %v404_v31  ;;  %v414_v46 = vshrl.u32 %v5605_v11, 16 }
  0x36   : > { %v422_v50 = vshrl.u32 %v5622_v32, 16  ;;  %v426_v52 = vshll.u32 %v5628_v40, 16  ;;  %v2118_v53 = vrot.slane %v5469_v34, 2  ;;  %v420_v55 = vrot.slane %v418_v18, 1  ;;  %v5656_v34 = vld [vmem:[%s6532_s1 + $0x1c] sm:$0xf] }
  0x37   : > { %4731 = vmatmul.mubr.msk.bf16.gmra.mrb[12].mxu0 %vm454_vm2, %v1745_v4  ;;  %v413_v47 = vsel %vm305_vm1, %v408_v37, %v412_v38  ;;  %v2644_v28 = vsel %vm509_vm0, %v5509_v1, 0  ;;  %v416_v57 = vor.u32 %v414_v46, %v412_v38  ;;  %v2117_v60 = vsel %vm2112_vm4, %v2114_v30, %v2116_v45  ;;  %v5650_v4 = vld [vmem:[%s5424_s25 + $0x88] sm:$0xff]  }
  0x38   : > { %4734 = vmatprep.mubr.msk.bf16.mxu0 %vm454_vm2, %v1754_v12  ;;  %v424_v61 = vor.u32 %v422_v50, %v420_v55  ;;  %v428_v3 = vrot.slane %v426_v52, 1  ;;  %v2119_v5 = vsel %vm2112_vm4, %v2116_v45, %v2118_v53  ;;  %v434_v7 = vshll.u32 %v5643_v56, 16 }
  0x39   : > { %v421_v1 = vsel %vm305_vm1, %v416_v57, %v420_v55  ;;  %v2120_v12 = vrot.slane %v5487_v49, 2  ;;  %v430_v16 = vshrl.u32 %v5628_v40, 16  ;;  %v442_v22 = vshll.u32 %v5650_v4, 16  ;;  %v5700_v55 = vld [vmem:[%s5424_s25 + $0x60] sm:$0xff]   ;;  %v5719_v57 = vld [vmem:[%s5424_s25 + $0x68] sm:$0xff]  }
  0x3a   : > { %v429_v17 = vsel %vm305_vm1, %v424_v61, %v428_v3  ;;  %v436_v26 = vrot.slane %v434_v7, 1  ;;  %v450_v37 = vshll.u32 %v5673_v27, 16  ;;  %v2124_v38 = vrot.slane %v5523_v23, 2  ;;  %v5737_v7 = vld [vmem:[%s5424_s25 + $0x78] sm:$0xff]  }
  0x3b   : > { %v432_v49 = vor.u32 %v430_v16, %v428_v3  ;;  %v2121_v13 = vsel %vm2112_vm4, %v2118_v53, %v2120_v12  ;;  %v444_v31 = vrot.slane %v442_v22, 1  ;;  %v2126_v18 = vrot.slane %v5543_v44, 2  ;;  %v5753_v22 = vld [vmem:[%s5424_s25 + $0x88] sm:$0xff]  }
  0x3c   : > { %4583 = vmatmul.mubr.msk.bf16.gmra.mrb[16].mxu1 %vm454_vm2, %v389_v21  ;;  %v438_v21 = vshrl.u32 %v5643_v56, 16  ;;  %v452_v45 = vrot.slane %v450_v37, 1  ;;  %v2128_v23 = vrot.slane %v5556_v62, 2  ;;  %v2130_v44 = vrot.slane %v5568_v14, 2 }
  0x3d   : > { %4586 = vmatprep.mubr.msk.bf16.mxu1 %vm454_vm2, %v397_v24  ;;  %v2122_v24 = vrot.slane %v5499_v59, 2  ;;  %v437_v59 = vsel %vm305_vm1, %v432_v49, %v436_v26  ;;  %v2132_v62 = vrot.slane %v5581_v29, 2  ;;  %v1005_v14 = vsel %vm509_vm0, %v5475_v39, 0 }
  0x3e   : > { %v440_v30 = vor.u32 %v438_v21, %v436_v26  ;;  %v2129_v52 = vsel %vm2112_vm4, %v2126_v18, %v2128_v23  ;;  %v2131_v53 = vsel %vm2112_vm4, %v2128_v23, %v2130_v44  ;;  %v2136_v61 = vrot.slane %v5719_v57, 2  ;;  %v5757_v26 = vld [vmem:[%s5424_s25 + $0x90] sm:$0xff]  }
  0x3f   : > { %4735 = vmatmul.mubr.msk.bf16.gmra.mrb[16].mxu0 %vm454_vm2, %v1763_v36  ;;  %v2123_v6 = vsel %vm2112_vm4, %v2120_v12, %v2122_v24  ;;  %v446_v36 = vshrl.u32 %v5650_v4, 16  ;;  %v2125_v46 = vsel %vm2112_vm4, %v2122_v24, %v2124_v38  ;;  %v2133_v29 = vsel %vm2112_vm4, %v2130_v44, %v2132_v62  ;;  %v5741_v12 = vld [vmem:[%s5424_s25 + $0x80] sm:$0xff]  }
  0x40   : > { %4756 = vmatprep.mubr.msk.bf16.mxu0 %vm454_vm2, %v2115_v42  ;;  %v445_v42 = vsel %vm305_vm1, %v440_v30, %v444_v31  ;;  %v2140_v16 = vrot.slane %v5737_v7, 2  ;;  %v2144_v49 = vrot.slane %v5753_v22, 2  ;;  %v2420_v30 = vld [vmem:[%s5424_s25 + $0x10] sm:$0xc] }
  0x44   : > { %4587 = vmatmul.mubr.msk.bf16.gmra.mrb[20].mxu1 %vm454_vm2, %v405_v43  ;;  %v448_v43 = vor.u32 %v446_v36, %v444_v31  ;;  %v5767_v31 = vld [vmem:[%s5424_s25 + $0x14] sm:$0xf] }
  0x45   : > { %4590 = vmatprep.mubr.msk.bf16.mxu1 %vm454_vm2, %v413_v47  ;;  %v2127_v47 = vsel %vm2112_vm4, %v2124_v38, %v2126_v18  ;;  %v5777_v37 = vcombine.low %v2420_v30, %v5767_v31  ;;  %v5780_v38 = vld [vmem:[%s5424_s25 + $0x18] sm:$0xff]  }
  0x46   : > { %v453_v50 = vsel %vm305_vm1, %v448_v43, %v452_v45  ;;  %v2553_v43 = vrot.slane %v5780_v38, 2 }
  0x47   : > { %4757 = vmatmul.mubr.msk.bf16.vlgmr.msra.gmra.mrb[0].mxu0 %vm454_vm2, %v2117_v60  ;;  %v5725_v60 = vld [vmem:[%s5424_s25 + $0x70] sm:$0xff]   ;;  %v2552_v18 = vrot.slane %v5777_v37, 2 }
  0x48   : > { %4793 = vmatpush3.bf16.msra.mxu0 %v2644_v28  ;;  %4760 = vmatprep.mubr.msk.bf16.mxu0 %vm454_vm2, %v2119_v5  ;;  %v2134_v28 = vrot.slane %v5700_v55, 2  ;;  %v2138_v3 = vrot.slane %v5725_v60, 2 }
  0x49   : > { %5204 = vmatprep.subr.msk.bf16.mxu0 %vm509_vm0, %v5656_v34 }
  0x4a   : > { %v2135_v39 = vsel %vm2112_vm4, %v2132_v62, %v2134_v28  ;;  %v2137_v5 = vsel %vm2112_vm4, %v2134_v28, %v2136_v61  ;;  %v2141_v21 = vsel %vm2112_vm4, %v2138_v3, %v2140_v16  ;;  %v3091_v62 = vsel %vm509_vm0, %v5656_v34, 0  ;;  %v5815_v28 = vld [vmem:[%s5424_s25 + $0x38] sm:$0xff]  }
  0x4c   : > { %4591 = vmatmul.mubr.msk.bf16.gmra.mrb[24].mxu1 %vm454_vm2, %v421_v1  ;;  %v2139_v1 = vsel %vm2112_vm4, %v2136_v61, %v2138_v3  ;;  %v2561_v61 = vrot.slane %v5815_v28, 2  ;;  %v5834_v3 = vld [vmem:[%s5424_s25 + $0x40] sm:$0xff]  }
  0x4d   : > { %4594 = vmatprep.mubr.msk.bf16.mxu1 %vm454_vm2, %v429_v17  ;;  %v2142_v17 = vrot.slane %v5741_v12, 2 }
  0x4f   : > { %4761 = vmatmul.mubr.msk.bf16.gmra.mrb[4].mxu0 %vm454_vm2, %v2121_v13  ;;  %v2143_v24 = vsel %vm2112_vm4, %v2140_v16, %v2142_v17  ;;  %v2146_v13 = vrot.slane %v5757_v26, 2  ;;  %v906_v16 = vld [vmem:[%s5424_s25] sm:$0xe] }
  0x50   : > { %4764 = vmatprep.mubr.msk.bf16.mxu0 %vm454_vm2, %v2123_v6  ;;  %v2145_v6 = vsel %vm2112_vm4, %v2142_v17, %v2144_v49  ;;  %v2563_v17 = vrot.slane %v5834_v3, 2 }
  0x51   : > { %v2147_v36 = vsel %vm2112_vm4, %v2144_v49, %v2146_v13 }
  0x52   : > { %v2564_v49 = vsel %vm2112_vm4, %v2561_v61, %v2563_v17 }
  0x54   : > { %4595 = vmatmul.mubr.msk.bf16.gmra.mrb[28].mxu1 %vm454_vm2, %v437_v59  ;;  %v5773_v59 = vld [vmem:[%s5424_s25 + $0x98] ss:$0 sps:$4 sm:$0x33]  }
  0x55   : > { %4598 = vmatprep.mubr.msk.bf16.mxu1 %vm454_vm2, %v445_v42  ;;  %v2148_v42 = vrot.slane %v5773_v59, 2 }
  0x57   : > { %4765 = vmatmul.mubr.msk.bf16.gmra.mrb[8].mxu0 %vm454_vm2, %v2125_v46  ;;  %v2149_v45 = vsel %vm2112_vm4, %v2146_v13, %v2148_v42  ;;  %v5793_v46 = vld [vmem:[%s5424_s25 + $0x20] sm:$0xff]   ;;  %v5852_v13 = vld [vmem:[%s5424_s25 + $0x50] sm:$0xff]  }
  0x58   : > { %4768 = vmatprep.mubr.msk.bf16.mxu0 %vm454_vm2, %v2127_v47  ;;  %v2554_v47 = vsel %vm2112_vm4, %v2552_v18, %v2553_v43  ;;  %v2555_v23 = vrot.slane %v5793_v46, 2  ;;  %v2567_v42 = vrot.slane %v5852_v13, 2 }
  0x5c   : > { %4599 = vmatmul.mubr.msk.bf16.gmra.mrb[32].mxu1 %vm454_vm2, %v453_v50  ;;  %v5797_v50 = vld [vmem:[%s5424_s25 + $0x28] sm:$0xff]  }
  0x5d   : > { %4604 = vmatprep.mubr.msk.bf16.mxu1 %vm454_vm2, %v5434_v9  ;;  %v5711_v9 = vld [vmem:[%s6532_s1 + $0xc] sm:$0xf]  ;;  %v2557_v44 = vrot.slane %v5797_v50, 2 }
  0x5f   : > { %4769 = vmatmul.mubr.msk.bf16.gmra.mrb[12].mxu0 %vm454_vm2, %v2129_v52  ;;  %v2556_v52 = vsel %vm2112_vm4, %v2553_v43, %v2555_v23 }
  0x60   : > { %4772 = vmatprep.mubr.msk.bf16.mxu0 %vm454_vm2, %v2131_v53  ;;  %v5809_v53 = vld [vmem:[%s5424_s25 + $0x30] sm:$0xff]  }
  0x64   : > { %4605 = vmatmul.mubr.msk.bf16.vlgmr.msra.gmra.mrb[0].mxu1 %vm454_vm2, %v5437_v10 }
  0x65   : > { %4608 = vmatprep.mubr.msk.bf16.mxu1 %vm454_vm2, %v5452_v19  ;;  %4641 = vmatpush3.bf16.msra.mxu1 %v1005_v14  ;;  %v2558_v14 = vsel %vm2112_vm4, %v2555_v23, %v2557_v44  ;;  %v918_v23 = vrot.slane %v5466_v33, 1 }
  0x66   : > { %5199 = vmatprep.subr.msk.bf16.mxu1 %vm509_vm0, %v5711_v9 }
  0x67   : > { %4773 = vmatmul.mubr.msk.bf16.gmra.mrb[16].mxu0 %vm454_vm2, %v2133_v29  ;;  %v5820_v29 = vld [vmem:[%s6532_s1 + $0x20] sm:$0xf] }
  0x68   : > { %4776 = vmatprep.mubr.msk.bf16.mxu0 %vm454_vm2, %v2135_v39  ;;  %v2559_v39 = vrot.slane %v5809_v53, 2 }
  0x6a   : > { %v2560_v34 = vsel %vm2112_vm4, %v2557_v44, %v2559_v39 }
  0x6c   : > { %4609 = vmatmul.mubr.msk.bf16.gmra.mrb[4].mxu1 %vm454_vm2, %v5466_v33 }
  0x6d   : > { %4612 = vmatprep.mubr.msk.bf16.mxu1 %vm454_vm2, %v5484_v48 }
  0x6f   : > { %4777 = vmatmul.mubr.msk.bf16.gmra.mrb[20].mxu0 %vm454_vm2, %v2137_v5  ;;  %v2562_v5 = vsel %vm2112_vm4, %v2559_v39, %v2561_v61  ;;  %v1444_v39 = vsel %vm509_vm0, %v5711_v9, 0  ;;  %v920_v61 = vrot.slane %v5484_v48, 1  ;;  %v5350_v9 = vld [vmem:[%s6532_s1 + $0x10] sm:$0xf] }
  0x70   : > { %4780 = vmatprep.mubr.msk.bf16.mxu0 %vm454_vm2, %v2139_v1  ;;  %v5838_v1 = vld [vmem:[%s5424_s25 + $0x48] sm:$0xff]  }
  0x71   : > { %v921_v48 = vsel %vm912_vm5, %v918_v23, %v920_v61 }
  0x74   : > { %4613 = vmatmul.mubr.msk.bf16.gmra.mrb[8].mxu1 %vm454_vm2, %v5493_v54 }
  0x75   : > { %4616 = vmatprep.mubr.msk.bf16.mxu1 %vm454_vm2, %v5504_v0 }
  0x77   : > { %4781 = vmatmul.mubr.msk.bf16.gmra.mrb[24].mxu0 %vm454_vm2, %v2141_v21  ;;  %v4143_v21 = vcombine.low %v906_v16, %v5431_v8  ;;  %v5857_v8 = vld [vmem:[%s5424_s25 + $0x58] sm:$0xff]   ;;  %v922_v16 = vrot.slane %v5493_v54, 1 }
  0x78   : > { %4784 = vmatprep.mubr.msk.bf16.mxu0 %vm454_vm2, %v2143_v24  ;;  %v2565_v24 = vrot.slane %v5838_v1, 2  ;;  %v2569_v43 = vrot.slane %v5857_v8, 2 }
  0x79   : > { %v913_v30 = vrot.slane %v4143_v21, 1  ;;  %v5899_v21 = vld [vmem:[%s5424_s25 + $0x78] sm:$0xff]   ;;  %v923_v54 = vsel %vm912_vm5, %v920_v61, %v922_v16 }
  0x7a   : > { %v2570_v44 = vsel %vm2112_vm4, %v2567_v42, %v2569_v43 }
  0x7c   : > { %4617 = vmatmul.mubr.msk.bf16.gmra.mrb[12].mxu1 %vm454_vm2, %v5532_v35 }
  0x7d   : > { %4620 = vmatprep.mubr.msk.bf16.mxu1 %vm454_vm2, %v5548_v51 }
  0x7f   : > { %4785 = vmatmul.mubr.msk.bf16.gmra.mrb[28].mxu0 %vm454_vm2, %v2145_v6  ;;  %v914_v6 = vrot.slane %v5437_v10, 1  ;;  %v916_v10 = vrot.slane %v5452_v19, 1 }
  0x80   : > { %4788 = vmatprep.mubr.msk.bf16.mxu0 %vm454_vm2, %v2147_v36  ;;  %v2566_v36 = vsel %vm2112_vm4, %v2563_v17, %v2565_v24 }
  0x81   : > { %v915_v18 = vsel %vm912_vm5, %v913_v30, %v914_v6  ;;  %v924_v30 = vrot.slane %v5504_v0, 1 }
  0x84   : > { %4621 = vmatmul.mubr.msk.bf16.gmra.mrb[16].mxu1 %vm454_vm2, %v5559_v63 }
  0x85   : > { %4624 = vmatprep.mubr.msk.bf16.mxu1 %vm454_vm2, %v5576_v25 }
  0x87   : > { %4789 = vmatmul.mubr.msk.bf16.gmra.mrb[32].mxu0 %vm454_vm2, %v2149_v45  ;;  %v2568_v45 = vsel %vm2112_vm4, %v2565_v24, %v2567_v42  ;;  %v926_v42 = vrot.slane %v5532_v35, 1  ;;  %v928_v35 = vrot.slane %v5548_v51, 1 }
  0x88   : > { %4794 = vmatprep.mubr.msk.bf16.mxu0 %vm454_vm2, %v2554_v47  ;;  %v5870_v47 = vld [vmem:[%s5424_s25 + $0x60] sm:$0xff]  }
  0x89   : > { %v2571_v19 = vrot.slane %v5870_v47, 2 }
  0x8c   : > { %4625 = vmatmul.mubr.msk.bf16.gmra.mrb[20].mxu1 %vm454_vm2, %v5586_v41 }
  0x8d   : > { %4628 = vmatprep.mubr.msk.bf16.mxu1 %vm454_vm2, %v5600_v58 }
  0x8f   : > { %4795 = vmatmul.mubr.msk.bf16.vlgmr.msra.gmra.mrb[0].mxu0 %vm454_vm2, %v2556_v52  ;;  %v5875_v52 = vld [vmem:[%s5424_s25 + $0x68] sm:$0xff]  }
  0x90   : > { %4831 = vmatpush3.bf16.msra.mxu0 %v3091_v62  ;;  %4798 = vmatprep.mubr.msk.bf16.mxu0 %vm454_vm2, %v2558_v14  ;;  %v917_v62 = vsel %vm912_vm5, %v914_v6, %v916_v10  ;;  %v919_v14 = vsel %vm912_vm5, %v916_v10, %v918_v23  ;;  %v2573_v33 = vrot.slane %v5875_v52, 2  ;;  %v925_v10 = vsel %vm912_vm5, %v922_v16, %v924_v30 }
  0x91   : > { %5205 = vmatprep.subr.msk.bf16.mxu0 %vm509_vm0, %v5820_v29  ;;  %v2867_v16 = vshrl.u32 %v5777_v37, 16 }
  0x92   : > { %v2574_v17 = vsel %vm2112_vm4, %v2571_v19, %v2573_v33 }
  0x94   : > { %4629 = vmatmul.mubr.msk.bf16.gmra.mrb[24].mxu1 %vm454_vm2, %v5605_v11 }
  0x95   : > { %4632 = vmatprep.mubr.msk.bf16.mxu1 %vm454_vm2, %v5622_v32 }
  0x97   : > { %4799 = vmatmul.mubr.msk.bf16.gmra.mrb[4].mxu0 %vm454_vm2, %v2560_v34  ;;  %v2572_v34 = vsel %vm2112_vm4, %v2569_v43, %v2571_v19  ;;  %v5917_v43 = vld [vmem:[%s5424_s25 + $0x88] sm:$0xff]   ;;  %v930_v19 = vrot.slane %v5559_v63, 1  ;;  %v2870_v63 = vshll.u32 %v5777_v37, 16 }
  0x98   : > { %4802 = vmatprep.mubr.msk.bf16.mxu0 %vm454_vm2, %v2562_v5  ;;  %v5890_v5 = vld [vmem:[%s5424_s25 + $0x70] sm:$0xff]   ;;  %v2581_v23 = vrot.slane %v5917_v43, 2 }
  0x99   : > { %v2575_v24 = vrot.slane %v5890_v5, 2  ;;  %v931_v51 = vsel %vm912_vm5, %v928_v35, %v930_v19 }
  0x9b   : > { %v2576_v6 = vsel %vm2112_vm4, %v2573_v33, %v2575_v24  ;;  %v929_v33 = vsel %vm912_vm5, %v926_v42, %v928_v35 }
  0x9c   : > { %4633 = vmatmul.mubr.msk.bf16.gmra.mrb[28].mxu1 %vm454_vm2, %v5628_v40 }
  0x9d   : > { %4636 = vmatprep.mubr.msk.bf16.mxu1 %vm454_vm2, %v5643_v56 }
  0x9f   : > { %4803 = vmatmul.mubr.msk.bf16.gmra.mrb[8].mxu0 %vm454_vm2, %v2564_v49  ;;  %v2577_v49 = vrot.slane %v5899_v21, 2 }
  0xa0   : > { %4806 = vmatprep.mubr.msk.bf16.mxu0 %vm454_vm2, %v2566_v36  ;;  %v5912_v36 = vld [vmem:[%s5424_s25 + $0x80] sm:$0xff]  }
  0xa1   : > { %v2579_v0 = vrot.slane %v5912_v36, 2 }
  0xa4   : > { %4637 = vmatmul.mubr.msk.bf16.gmra.mrb[32].mxu1 %vm454_vm2, %v5650_v4 }
  0xa5   : > { %4642 = vmatprep.mubr.msk.bf16.mxu1 %vm454_vm2, %v915_v18  ;;  %v2578_v18 = vsel %vm2112_vm4, %v2575_v24, %v2577_v49 }
  0xa7   : > { %4807 = vmatmul.mubr.msk.bf16.gmra.mrb[12].mxu0 %vm454_vm2, %v2568_v45  ;;  %v927_v45 = vsel %vm912_vm5, %v924_v30, %v926_v42  ;;  %v934_v30 = vrot.slane %v5586_v41, 1  ;;  %v2872_v42 = vrot.slane %v2870_v63, 3  ;;  %v2893_v41 = vshrl.u32 %v5797_v50, 16 }
  0xa8   : > { %4810 = vmatprep.mubr.msk.bf16.mxu0 %vm454_vm2, %v2570_v44  ;;  %v2580_v44 = vsel %vm2112_vm4, %v2577_v49, %v2579_v0  ;;  %v5274_v49 = vld [vmem:[%s5424_s25 + $0xa0] ss:$0 sps:$4 sm:$0x33]  }
  0xac   : > { %4643 = vmatmul.mubr.msk.bf16.vlgmr.msra.gmra.mrb[0].mxu1 %vm454_vm2, %v917_v62  ;;  %v5930_v62 = vld [vmem:[%s5424_s25 + $0x90] sm:$0xff]  }
  0xad   : > { %4646 = vmatprep.mubr.msk.bf16.mxu1 %vm454_vm2, %v919_v14  ;;  %4679 = vmatpush3.bf16.msra.mxu1 %v1444_v39  ;;  %v5934_v14 = vld [vmem:[%s5424_s25 + $0x98] sm:$0xff]   ;;  %v2582_v39 = vsel %vm2112_vm4, %v2579_v0, %v2581_v23  ;;  %v2583_v61 = vrot.slane %v5930_v62, 2  ;;  %v2587_v0 = vrot.slane %v5274_v49, 2 }
  0xae   : > { %5201 = vmatprep.subr.msk.bf16.mxu1 %vm509_vm0, %v5350_v9  ;;  %v2875_v9 = vshrl.u32 %v5780_v38, 16 }
  0xaf   : > { %4811 = vmatmul.mubr.msk.bf16.gmra.mrb[16].mxu0 %vm454_vm2, %v2572_v34  ;;  %v2585_v34 = vrot.slane %v5934_v14, 2  ;;  %v2584_v24 = vsel %vm2112_vm4, %v2581_v23, %v2583_v61  ;;  %v2887_v23 = vshll.u32 %v5793_v46, 16 }
  0xb0   : > { %4814 = vmatprep.mubr.msk.bf16.mxu0 %vm454_vm2, %v2574_v17  ;;  %v2878_v17 = vshll.u32 %v5780_v38, 16  ;;  %v2877_v37 = vrot.slane %v2875_v9, 2  ;;  %v2895_v9 = vrot.slane %v2893_v41, 2  ;;  %v2920_v41 = vshrl.u32 %v5834_v3, 16 }
  0xb4   : > { %4647 = vmatmul.mubr.msk.bf16.gmra.mrb[4].mxu1 %vm454_vm2, %v921_v48  ;;  %v932_v48 = vrot.slane %v5576_v25, 1 }
  0xb5   : > { %4650 = vmatprep.mubr.msk.bf16.mxu1 %vm454_vm2, %v923_v54  ;;  %v2586_v54 = vsel %vm2112_vm4, %v2583_v61, %v2585_v34 }
  0xb6   : > { %v935_v25 = vsel %vm912_vm5, %v932_v48, %v934_v30 }
  0xb7   : > { %4815 = vmatmul.mubr.msk.bf16.gmra.mrb[20].mxu0 %vm454_vm2, %v2576_v6  ;;  %v2869_v6 = vrot.slane %v2867_v16, 2  ;;  %v938_v16 = vrot.slane %v5605_v11, 1  ;;  %v2911_v11 = vshrl.u32 %v5815_v28, 16 }
  0xb8   : > { %4818 = vmatprep.mubr.msk.bf16.mxu0 %vm454_vm2, %v2578_v18  ;;  %v2880_v18 = vrot.slane %v2878_v17, 3 }
  0xb9   : > { %v2873_v35 = vor.u32 %v2872_v42, %v2869_v6  ;;  %v2914_v6 = vshll.u32 %v5815_v28, 16 }
  0xbc   : > { %4651 = vmatmul.mubr.msk.bf16.gmra.mrb[8].mxu1 %vm454_vm2, %v925_v10  ;;  %v933_v10 = vsel %vm912_vm5, %v930_v19, %v932_v48  ;;  %v936_v19 = vrot.slane %v5600_v58, 1  ;;  %v2902_v58 = vshrl.u32 %v5809_v53, 16 }
  0xbd   : > { %4654 = vmatprep.mubr.msk.bf16.mxu1 %vm454_vm2, %v927_v45  ;;  %v2884_v45 = vshrl.u32 %v5793_v46, 16 }
  0xbe   : > { %v937_v48 = vsel %vm912_vm5, %v934_v30, %v936_v19  ;;  %v940_v30 = vrot.slane %v5622_v32, 1  ;;  %v2923_v32 = vshll.u32 %v5834_v3, 16 }
  0xbf   : > { %4819 = vmatmul.mubr.msk.bf16.gmra.mrb[24].mxu0 %vm454_vm2, %v2580_v44  ;;  %v2881_v44 = vor.u32 %v2880_v18, %v2877_v37  ;;  %v2886_v61 = vrot.slane %v2884_v45, 2  ;;  %v2904_v37 = vrot.slane %v2902_v58, 2  ;;  %v2913_v45 = vrot.slane %v2911_v11, 2 }
  0xc0   : > { %4822 = vmatprep.mubr.msk.bf16.mxu0 %vm454_vm2, %v2582_v39  ;;  %v2896_v39 = vshll.u32 %v5797_v50, 16  ;;  %v2938_v58 = vshrl.u32 %v5852_v13, 16  ;;  %v2950_v11 = vshll.u32 %v5857_v8, 16 }
  0xc1   : > { %v2882_v63 = vsel %vm2865_vm6, %v2873_v35, %v2881_v44  ;;  %v941_v35 = vsel %vm912_vm5, %v938_v16, %v940_v30 }
  0xc2   : > { %v2898_v17 = vrot.slane %v2896_v39, 3 }
  0xc4   : > { %4655 = vmatmul.mubr.msk.bf16.gmra.mrb[12].mxu1 %vm454_vm2, %v929_v33  ;;  %v2588_v33 = vsel %vm2112_vm4, %v2585_v34, %v2587_v0  ;;  %v2905_v34 = vshll.u32 %v5809_v53, 16  ;;  %v2899_v49 = vor.u32 %v2898_v17, %v2895_v9  ;;  %v3405_v0 = vsel %vm509_vm0, %v5820_v29, 0 }
  0xc5   : > { %4658 = vmatprep.mubr.msk.bf16.mxu1 %vm454_vm2, %v931_v51  ;;  %v2889_v51 = vrot.slane %v2887_v23, 3  ;;  %v2916_v23 = vrot.slane %v2914_v6, 3  ;;  %v2929_v29 = vshrl.u32 %v5838_v1, 16 }
  0xc6   : > { %v2907_v18 = vrot.slane %v2905_v34, 3  ;;  %v2941_v34 = vshll.u32 %v5852_v13, 16 }
  0xc7   : > { %4823 = vmatmul.mubr.msk.bf16.gmra.mrb[28].mxu0 %vm454_vm2, %v2584_v24  ;;  %v2890_v24 = vor.u32 %v2889_v51, %v2886_v61  ;;  %v2917_v39 = vor.u32 %v2916_v23, %v2913_v45  ;;  %v2922_v61 = vrot.slane %v2920_v41, 2  ;;  %v2925_v51 = vrot.slane %v2923_v32, 3 }
  0xc8   : > { %4826 = vmatprep.mubr.msk.bf16.mxu0 %vm454_vm2, %v2586_v54  ;;  %v939_v54 = vsel %vm912_vm5, %v936_v19, %v938_v16  ;;  %v2932_v19 = vshll.u32 %v5838_v1, 16  ;;  %v2931_v17 = vrot.slane %v2929_v29, 2  ;;  %v2952_v23 = vrot.slane %v2950_v11, 3  ;;  %v5352_v29 = vld [vmem:[%s5424_s25 + $0x18] sm:$0xff]  }
  0xc9   : > { %v2891_v42 = vsel %vm2865_vm6, %v2881_v44, %v2890_v24  ;;  %v2908_v44 = vor.u32 %v2907_v18, %v2904_v37  ;;  %v2943_v37 = vrot.slane %v2941_v34, 3  ;;  %v1352_v18 = vrot.slane %v5455_v20, 1 }
  0xca   : > { %v2956_v32 = vshrl.u32 %v5870_v47, 16  ;;  %v2959_v20 = vshll.u32 %v5870_v47, 16  ;;  %v2977_v34 = vshll.u32 %v5890_v5, 16  ;;  %v2986_v11 = vshll.u32 %v5899_v21, 16 }
  0xcb   : > { %v2909_v16 = vsel %vm2865_vm6, %v2899_v49, %v2908_v44  ;;  %v2918_v9 = vsel %vm2865_vm6, %v2908_v44, %v2917_v39 }
  0xcc   : > { %4659 = vmatmul.mubr.msk.bf16.gmra.mrb[16].mxu1 %vm454_vm2, %v933_v10  ;;  %v942_v10 = vrot.slane %v5628_v40, 1 }
  0xcd   : > { %4662 = vmatprep.mubr.msk.bf16.mxu1 %vm454_vm2, %v935_v25  ;;  %v2900_v25 = vsel %vm2865_vm6, %v2890_v24, %v2899_v49 }
  0xce   : > { %v943_v40 = vsel %vm912_vm5, %v940_v30, %v942_v10  ;;  %v948_v30 = vrot.slane %v5673_v27, 1 }
  0xcf   : > { %4827 = vmatmul.mubr.msk.bf16.gmra.mrb[32].mxu0 %vm454_vm2, %v2588_v33  ;;  %v944_v33 = vrot.slane %v5643_v56, 1 }
  0xd0   : > { %4832 = vmatprep.mubr.msk.bf16.mxu0 %vm454_vm2, %v2882_v63  ;;  %v946_v63 = vrot.slane %v5650_v4, 1  ;;  %v2947_v4 = vshrl.u32 %v5857_v8, 16 }
  0xd1   : > { %v945_v24 = vsel %vm912_vm5, %v942_v10, %v944_v33  ;;  %v5351_v10 = vld [vmem:[%s5424_s25 + $0x10] sm:$0xff]  }
  0xd2   : > { %v947_v56 = vsel %vm912_vm5, %v944_v33, %v946_v63  ;;  %v2949_v45 = vrot.slane %v2947_v4, 2  ;;  %v2983_v4 = vshrl.u32 %v5899_v21, 16 }
  0xd4   : > { %4663 = vmatmul.mubr.msk.bf16.gmra.mrb[20].mxu1 %vm454_vm2, %v937_v48  ;;  %v2934_v48 = vrot.slane %v2932_v19, 3  ;;  %v2953_v44 = vor.u32 %v2952_v23, %v2949_v45  ;;  %v1355_v19 = vrot.slane %v5352_v29, 1  ;;  %v2985_v45 = vrot.slane %v2983_v4, 2 }
  0xd5   : > { %4666 = vmatprep.mubr.msk.bf16.mxu1 %vm454_vm2, %v939_v54  ;;  %v2926_v54 = vor.u32 %v2925_v51, %v2922_v61  ;;  %v2958_v61 = vrot.slane %v2956_v32, 2  ;;  %v2961_v51 = vrot.slane %v2959_v20, 3  ;;  %v2988_v23 = vrot.slane %v2986_v11, 3  ;;  %v5358_v11 = vld [vmem:[%s5424_s25 + $0x48] sm:$0xff]  }
  0xd6   : > { %v2935_v49 = vor.u32 %v2934_v48, %v2931_v17  ;;  %v2995_v32 = vshll.u32 %v5912_v36, 16  ;;  %v3022_v4 = vshll.u32 %v5934_v14, 16 }
  0xd7   : > { %4833 = vmatmul.mubr.msk.bf16.vlgmr.msra.gmra.mrb[0].mxu0 %vm454_vm2, %v2891_v42  ;;  %v2927_v6 = vsel %vm2865_vm6, %v2917_v39, %v2926_v54  ;;  %v2940_v42 = vrot.slane %v2938_v58, 2  ;;  %v2968_v39 = vshll.u32 %v5875_v52, 16  ;;  %v2974_v58 = vshrl.u32 %v5890_v5, 16 }
  0xd8   : > { %4869 = vmatpush3.bf16.msra.mxu0 %v3405_v0  ;;  %4836 = vmatprep.mubr.msk.bf16.mxu0 %vm454_vm2, %v2900_v25  ;;  %v1353_v0 = vrot.slane %v5351_v10, 1  ;;  %v2936_v25 = vsel %vm2865_vm6, %v2926_v54, %v2935_v49  ;;  %v2962_v54 = vor.u32 %v2961_v51, %v2958_v61  ;;  %v5355_v10 = vld [vmem:[%s5424_s25 + $0x30] sm:$0xff]   ;;  %v2989_v20 = vor.u32 %v2988_v23, %v2985_v45  ;;  %v5357_v51 = vld [vmem:[%s5424_s25 + $0x40] sm:$0xff]  }
  0xd9   : > { %v2944_v41 = vor.u32 %v2943_v37, %v2940_v42  ;;  %v2970_v48 = vrot.slane %v2968_v39, 3  ;;  %v2976_v37 = vrot.slane %v2974_v58, 2  ;;  %v5356_v39 = vld [vmem:[%s5424_s25 + $0x38] sm:$0xff]   ;;  %v2997_v61 = vrot.slane %v2995_v32, 3 }
  0xda   : > { %v1354_v27 = vsel %vm912_vm5, %v1352_v18, %v1353_v0  ;;  %v2963_v42 = vsel %vm2865_vm6, %v2953_v44, %v2962_v54  ;;  %v2979_v18 = vrot.slane %v2977_v34, 3  ;;  %v1363_v29 = vrot.slane %v5356_v39, 1 }
  0xdb   : > { %v2945_v33 = vsel %vm2865_vm6, %v2935_v49, %v2944_v41  ;;  %v3013_v58 = vshll.u32 %v5930_v62, 16  ;;  %v3024_v23 = vrot.slane %v3022_v4, 3  ;;  %v3318_v4 = vrot.slane %v5797_v50, 3 }
  0xdc   : > { %4667 = vmatmul.mubr.msk.bf16.gmra.mrb[24].mxu1 %vm454_vm2, %v941_v35  ;;  %v949_v35 = vsel %vm912_vm5, %v946_v63, %v948_v30  ;;  %v3320_v50 = vrot.slane %v5809_v53, 3 }
  0xdd   : > { %4670 = vmatprep.mubr.msk.bf16.mxu1 %vm454_vm2, %v943_v40  ;;  %v2965_v40 = vshrl.u32 %v5875_v52, 16 }
  0xdf   : > { %4837 = vmatmul.mubr.msk.bf16.gmra.mrb[4].mxu0 %vm454_vm2, %v2909_v16  ;;  %v5353_v16 = vld [vmem:[%s5424_s25 + $0x20] sm:$0xff]   ;;  %v2967_v17 = vrot.slane %v2965_v40, 2  ;;  %v3004_v40 = vshll.u32 %v5917_v43, 16 }
  0xe0   : > { %4840 = vmatprep.mubr.msk.bf16.mxu0 %vm454_vm2, %v2918_v9  ;;  %v1357_v63 = vrot.slane %v5353_v16, 1  ;;  %v2954_v9 = vsel %vm2865_vm6, %v2944_v41, %v2953_v44  ;;  %v2980_v41 = vor.u32 %v2979_v18, %v2976_v37  ;;  %v3001_v44 = vshrl.u32 %v5917_v43, 16  ;;  %v5359_v18 = vld [vmem:[%s5424_s25 + $0x50] sm:$0xff]  }
  0xe1   : > { %v2971_v49 = vor.u32 %v2970_v48, %v2967_v17  ;;  %v1365_v16 = vrot.slane %v5357_v51, 1  ;;  %v3006_v17 = vrot.slane %v3004_v40, 3  ;;  %v3015_v37 = vrot.slane %v3013_v58, 3  ;;  %v5360_v40 = vld [vmem:[%s5424_s25 + $0x58] sm:$0xff]  }
  0xe2   : > { %v1371_v39 = vrot.slane %v5360_v40, 1  ;;  %v1774_v40 = vshrl.u32 %v5719_v57, 16 }
  0xe4   : > { %4671 = vmatmul.mubr.msk.bf16.gmra.mrb[28].mxu1 %vm454_vm2, %v945_v24  ;;  %v1356_v24 = vsel %vm912_vm5, %v1353_v0, %v1355_v19  ;;  %v1361_v0 = vrot.slane %v5355_v10, 1  ;;  %v1369_v10 = vrot.slane %v5359_v18, 1  ;;  %v3322_v18 = vrot.slane %v5815_v28, 3 }
  0xe5   : > { %4674 = vmatprep.mubr.msk.bf16.mxu1 %vm454_vm2, %v947_v56  ;;  %v1358_v56 = vsel %vm912_vm5, %v1355_v19, %v1357_v63  ;;  %v2981_v19 = vsel %vm2865_vm6, %v2971_v49, %v2980_v41 }
  0xe6   : > { %v1364_v48 = vsel %vm912_vm5, %v1361_v0, %v1363_v29  ;;  %v3323_v53 = vsel %vm3312_vm7, %v3320_v50, %v3322_v18 }
  0xe7   : > { %4841 = vmatmul.mubr.msk.bf16.gmra.mrb[8].mxu0 %vm454_vm2, %v2927_v6  ;;  %v5354_v6 = vld [vmem:[%s5424_s25 + $0x28] sm:$0xff]  }
  0xe8   : > { %4844 = vmatprep.mubr.msk.bf16.mxu0 %vm454_vm2, %v2936_v25  ;;  %v1359_v30 = vrot.slane %v5354_v6, 1  ;;  %v2972_v25 = vsel %vm2865_vm6, %v2962_v54, %v2971_v49  ;;  %v1366_v54 = vsel %vm912_vm5, %v1363_v29, %v1365_v16  ;;  %v3019_v49 = vshrl.u32 %v5934_v14, 16 }
  0xe9   : > { %v1367_v6 = vrot.slane %v5358_v11, 1  ;;  %v1379_v11 = vrot.slane %v5737_v7, 1 }
  0xea   : > { %v3021_v45 = vrot.slane %v3019_v49, 2 }
  0xec   : > { %4675 = vmatmul.mubr.msk.bf16.gmra.mrb[32].mxu1 %vm454_vm2, %v949_v35  ;;  %v1360_v35 = vsel %vm912_vm5, %v1357_v63, %v1359_v30  ;;  %v2990_v63 = vsel %vm2865_vm6, %v2980_v41, %v2989_v20 }
  0xed   : > { %4680 = vmatprep.mubr.msk.bf16.mxu1 %vm454_vm2, %v1354_v27  ;;  %v2992_v27 = vshrl.u32 %v5912_v36, 16 }
  0xef   : > { %4845 = vmatmul.mubr.msk.bf16.gmra.mrb[12].mxu0 %vm454_vm2, %v2945_v33  ;;  %v2994_v33 = vrot.slane %v2992_v27, 2 }
  0xf0   : > { %4848 = vmatprep.mubr.msk.bf16.mxu0 %vm454_vm2, %v2954_v9  ;;  %v3003_v9 = vrot.slane %v3001_v44, 2  ;;  %v3306_v44 = vld [vmem:[%s5424_s25 + $0x10] sm:$0x8] }
  0xf2   : > { %v3007_v34 = vor.u32 %v3006_v17, %v3003_v9 }
  0xf4   : > { %4681 = vmatmul.mubr.msk.bf16.vlgmr.msra.gmra.mrb[0].mxu1 %vm454_vm2, %v1356_v24  ;;  %v2998_v24 = vor.u32 %v2997_v61, %v2994_v33  ;;  %v1373_v61 = vrot.slane %v5700_v55, 1 }
  0xf5   : > { %4684 = vmatprep.mubr.msk.bf16.mxu1 %vm454_vm2, %v1358_v56  ;;  %4907 = vmatpush3.bf16.msra.mxu1 %v5406_v2  ;;  %v1362_v2 = vsel %vm912_vm5, %v1359_v30, %v1361_v0  ;;  %v3010_v56 = vshrl.u32 %v5930_v62, 16  ;;  %v6070_v0 = vld [vmem:[%s5424_s25 + $0xa0] ss:$0 sps:$4 sm:$0x77]  }
  0xf6   : > { %v2999_v30 = vsel %vm2865_vm6, %v2989_v20, %v2998_v24  ;;  %v3028_v27 = vshrl.u32 %v6070_v0, 16  ;;  %v3031_v32 = vshll.u32 %v6070_v0, 16  ;;  %v3025_v20 = vor.u32 %v3024_v23, %v3021_v45 }
  0xf7   : > { %4849 = vmatmul.mubr.msk.bf16.gmra.mrb[16].mxu0 %vm454_vm2, %v2963_v42  ;;  %v3012_v42 = vrot.slane %v3010_v56, 2  ;;  %v1374_v17 = vsel %vm912_vm5, %v1371_v39, %v1373_v61  ;;  %v1377_v56 = vrot.slane %v5725_v60, 1  ;;  %v1385_v45 = vrot.slane %v5757_v26, 1 }
  0xf8   : > { %4852 = vmatprep.mubr.msk.bf16.mxu0 %vm454_vm2, %v2972_v25  ;;  %v3008_v25 = vsel %vm2865_vm6, %v2998_v24, %v3007_v34  ;;  %v3033_v33 = vrot.slane %v3031_v32, 3  ;;  %v3314_v24 = vrot.slane %v5780_v38, 3  ;;  %v3316_v38 = vrot.slane %v5793_v46, 3 }
  0xf9   : > { %v3016_v41 = vor.u32 %v3015_v37, %v3012_v42  ;;  %v1380_v46 = vsel %vm912_vm5, %v1377_v56, %v1379_v11  ;;  %v1765_v23 = vshrl.u32 %v5700_v55, 16 }
  0xfa   : > { %v3319_v42 = vsel %vm3312_vm7, %v3316_v38, %v3318_v4 }
  0xfb   : > { %v3017_v29 = vsel %vm2865_vm6, %v3007_v34, %v3016_v41  ;;  %v3026_v51 = vsel %vm2865_vm6, %v3016_v41, %v3025_v20  ;;  %v5277_v41 = vld [vmem:[%s5424_s25 + $0x98] ss:$0 sps:$4 sm:$0x11]   ;;  %v1767_v32 = vrot.slane %v1765_v23, 1 }
  0xfc   : > { %4685 = vmatmul.mubr.msk.bf16.gmra.mrb[4].mxu1 %vm454_vm2, %v1360_v35  ;;  %v1368_v35 = vsel %vm912_vm5, %v1365_v16, %v1367_v6  ;;  %v4299_v16 = vcombine.low %v3306_v44, %v5767_v31  ;;  %v3326_v44 = vrot.slane %v5838_v1, 3 }
  0xfd   : > { %4688 = vmatprep.mubr.msk.bf16.mxu1 %vm454_vm2, %v1362_v2  ;;  %v1370_v2 = vsel %vm912_vm5, %v1367_v6, %v1369_v10  ;;  %v3317_v6 = vsel %vm3312_vm7, %v3314_v24, %v3316_v38 }
  0xff   : > { %4853 = vmatmul.mubr.msk.bf16.gmra.mrb[20].mxu0 %vm454_vm2, %v2981_v19  ;;  %v3030_v19 = vrot.slane %v3028_v27, 2 }
 0x100   : > { %4856 = vmatprep.mubr.msk.bf16.mxu0 %vm454_vm2, %v2990_v63  ;;  %v1372_v63 = vsel %vm912_vm5, %v1369_v10, %v1371_v39  ;;  %v1383_v10 = vrot.slane %v5753_v22, 1  ;;  %v1777_v39 = vshll.u32 %v5719_v57, 16 }
 0x101   : > { %v3034_v9 = vor.u32 %v3033_v33, %v3030_v19  ;;  %v1786_v33 = vshll.u32 %v5725_v60, 16 }
 0x102   : > { %v1386_v27 = vsel %vm912_vm5, %v1383_v10, %v1385_v45 }
 0x103   : > { %v3035_v31 = vsel %vm2865_vm6, %v3025_v20, %v3034_v9 }
 0x104   : > { %4689 = vmatmul.mubr.msk.bf16.gmra.mrb[8].mxu1 %vm454_vm2, %v1364_v48  ;;  %v3313_v48 = vrot.slane %v4299_v16, 3  ;;  %v1779_v16 = vrot.slane %v1777_v39, 2 }
 0x105   : > { %4692 = vmatprep.mubr.msk.bf16.mxu1 %vm454_vm2, %v1366_v54  ;;  %v1375_v54 = vrot.slane %v5719_v57, 1 }
 0x106   : > { %v3315_v58 = vsel %vm3312_vm7, %v3313_v48, %v3314_v24  ;;  %v3330_v48 = vrot.slane %v5857_v8, 3  ;;  %v1792_v24 = vshrl.u32 %v5737_v7, 16 }
 0x107   : > { %4857 = vmatmul.mubr.msk.bf16.gmra.mrb[24].mxu0 %vm454_vm2, %v2999_v30  ;;  %v1376_v34 = vsel %vm912_vm5, %v1373_v61, %v1375_v54  ;;  %v1378_v49 = vsel %vm912_vm5, %v1375_v54, %v1377_v56  ;;  %v1381_v30 = vrot.slane %v5741_v12, 1  ;;  %v1795_v54 = vshll.u32 %v5737_v7, 16 }
 0x108   : > { %4860 = vmatprep.mubr.msk.bf16.mxu0 %vm454_vm2, %v3008_v25  ;;  %v3321_v25 = vsel %vm3312_vm7, %v3318_v4, %v3320_v50 }
 0x109   : > { %v1382_v37 = vsel %vm912_vm5, %v1379_v11, %v1381_v30  ;;  %v1384_v28 = vsel %vm912_vm5, %v1381_v30, %v1383_v10  ;;  %v1797_v38 = vrot.slane %v1795_v54, 2  ;;  %v1810_v30 = vshrl.u32 %v5753_v22, 16 }
 0x10b   : > { %v1812_v10 = vrot.slane %v1810_v30, 1 }
 0x10c   : > { %4693 = vmatmul.mubr.msk.bf16.gmra.mrb[12].mxu1 %vm454_vm2, %v1368_v35  ;;  %v1768_v35 = vshll.u32 %v5700_v55, 16  ;;  %v1387_v55 = vrot.slane %v5277_v41, 1  ;;  %v1831_v41 = vshll.u32 %v5773_v59, 16 }
 0x10d   : > { %4696 = vmatprep.mubr.msk.bf16.mxu1 %vm454_vm2, %v1370_v2  ;;  %v3324_v2 = vrot.slane %v5834_v3, 3  ;;  %v1783_v3 = vshrl.u32 %v5725_v60, 16 }
 0x10e   : > { %v1770_v20 = vrot.slane %v1768_v35, 2  ;;  %v1388_v1 = vsel %vm912_vm5, %v1385_v45, %v1387_v55  ;;  %v3336_v45 = vrot.slane %v5890_v5, 3 }
 0x10f   : > { %4861 = vmatmul.mubr.msk.bf16.gmra.mrb[28].mxu0 %vm454_vm2, %v3017_v29  ;;  %v3325_v29 = vsel %vm3312_vm7, %v3322_v18, %v3324_v2  ;;  %v3327_v61 = vsel %vm3312_vm7, %v3324_v2, %v3326_v44  ;;  %v1785_v9 = vrot.slane %v1783_v3, 1  ;;  %v3346_v3 = vrot.slane %v5934_v14, 3 }
 0x110   : > { %4864 = vmatprep.mubr.msk.bf16.mxu0 %vm454_vm2, %v3026_v51  ;;  %v1771_v19 = vor.u32 %v1770_v20, %v1767_v32  ;;  %v1776_v51 = vrot.slane %v1774_v40, 1  ;;  %v3342_v40 = vrot.slane %v5917_v43, 3 }
 0x112   : > { %v1772_v57 = vsel %vm1665_vm3, %v5614_v15, %v1771_v19  ;;  %v1780_v60 = vor.u32 %v1779_v16, %v1776_v51  ;;  %v1804_v15 = vshll.u32 %v5741_v12, 16 }
 0x114   : > { %4697 = vmatmul.mubr.msk.bf16.gmra.mrb[16].mxu1 %vm454_vm2, %v1372_v63  ;;  %v3328_v63 = vrot.slane %v5852_v13, 3  ;;  %v1801_v13 = vshrl.u32 %v5741_v12, 16  ;;  %v1781_v8 = vsel %vm1665_vm3, %v1771_v19, %v1780_v60  ;;  %v1806_v11 = vrot.slane %v1804_v15, 2 }
 0x115   : > { %4700 = vmatprep.mubr.msk.bf16.mxu1 %vm454_vm2, %v1374_v17  ;;  %v1788_v17 = vrot.slane %v1786_v33, 2 }
 0x116   : > { %v1803_v4 = vrot.slane %v1801_v13, 1 }
 0x117   : > { %4865 = vmatmul.mubr.msk.bf16.gmra.mrb[32].mxu0 %vm454_vm2, %v3035_v31  ;;  %v3329_v31 = vsel %vm3312_vm7, %v3326_v44, %v3328_v63  ;;  %v1789_v56 = vor.u32 %v1788_v17, %v1785_v9  ;;  %v3340_v44 = vrot.slane %v5912_v36, 3  ;;  %v3344_v36 = vrot.slane %v5930_v62, 3 }
 0x118   : > { %4870 = vmatprep.mubr.msk.bf16.mxu0 %vm454_vm2, %v3315_v58  ;;  %v3331_v58 = vsel %vm3312_vm7, %v3328_v63, %v3330_v48  ;;  %v1807_v50 = vor.u32 %v1806_v11, %v1803_v4 }
 0x119   : > { %v1790_v7 = vsel %vm1665_vm3, %v1780_v60, %v1789_v56  ;;  %v3345_v43 = vsel %vm3312_vm7, %v3342_v40, %v3344_v36  ;;  %v3347_v33 = vsel %vm3312_vm7, %v3344_v36, %v3346_v3 }
 0x11c   : > { %4701 = vmatmul.mubr.msk.bf16.gmra.mrb[20].mxu1 %vm454_vm2, %v1376_v34  ;;  %v1794_v34 = vrot.slane %v1792_v24, 1 }
 0x11d   : > { %4704 = vmatprep.mubr.msk.bf16.mxu1 %vm454_vm2, %v1378_v49  ;;  %v3332_v49 = vrot.slane %v5870_v47, 3  ;;  %v1819_v47 = vshrl.u32 %v5757_v26, 16 }
 0x11e   : > { %v1798_v12 = vor.u32 %v1797_v38, %v1794_v34 }
 0x11f   : > { %4871 = vmatmul.mubr.msk.bf16.vlgmr.msra.gmra.mrb[0].mxu0 %vm454_vm2, %v3317_v6  ;;  %v3334_v6 = vrot.slane %v5875_v52, 3  ;;  %v1821_v23 = vrot.slane %v1819_v47, 1 }
 0x120   : > { %4874 = vmatprep.mubr.msk.bf16.mxu0 %vm454_vm2, %v3319_v42  ;;  %v1813_v42 = vshll.u32 %v5753_v22, 16  ;;  %v1799_v52 = vsel %vm1665_vm3, %v1789_v56, %v1798_v12  ;;  %v1808_v22 = vsel %vm1665_vm3, %v1798_v12, %v1807_v50 }
 0x121   : > { %v3335_v18 = vsel %vm3312_vm7, %v3332_v49, %v3334_v6  ;;  %v3337_v2 = vsel %vm3312_vm7, %v3334_v6, %v3336_v45 }
 0x124   : > { %4705 = vmatmul.mubr.msk.bf16.gmra.mrb[24].mxu1 %vm454_vm2, %v1380_v46  ;;  %v3333_v46 = vsel %vm3312_vm7, %v3330_v48, %v3332_v49  ;;  %v6226_v49 = vld [vmem:[%s6533_s2] ss:$0 sm:$0xff] }
 0x125   : > { %4708 = vmatprep.mubr.msk.bf16.mxu1 %vm454_vm2, %v1382_v37  ;;  %v1822_v37 = vshll.u32 %v5757_v26, 16 }
 0x127   : > { %4875 = vmatmul.mubr.msk.bf16.gmra.mrb[4].mxu0 %vm454_vm2, %v3321_v25  ;;  %v1815_v25 = vrot.slane %v1813_v42, 2  ;;  %v1824_v35 = vrot.slane %v1822_v37, 2 }
 0x128   : > { %4878 = vmatprep.mubr.msk.bf16.mxu0 %vm454_vm2, %v3323_v53  ;;  %v3338_v53 = vrot.slane %v5899_v21, 3  ;;  %v1833_v21 = vrot.slane %v1831_v41, 2 }
 0x129   : > { %v1816_v26 = vor.u32 %v1815_v25, %v1812_v10 }
 0x12a   : > { %v3339_v5 = vsel %vm3312_vm7, %v3336_v45, %v3338_v53  ;;  %v3341_v39 = vsel %vm3312_vm7, %v3338_v53, %v3340_v44 }
 0x12b   : > { %v1817_v32 = vsel %vm1665_vm3, %v1807_v50, %v1816_v26 }
 0x12c   : > { %4709 = vmatmul.mubr.msk.bf16.gmra.mrb[28].mxu1 %vm454_vm2, %v1384_v28  ;;  %v1828_v28 = vshrl.u32 %v5773_v59, 16 }
 0x12d   : > { %4712 = vmatprep.mubr.msk.bf16.mxu1 %vm454_vm2, %v1386_v27  ;;  %v1825_v27 = vor.u32 %v1824_v35, %v1821_v23 }
 0x12e   : > { %v1830_v20 = vrot.slane %v1828_v28, 1 }
 0x12f   : > { %4879 = vmatmul.mubr.msk.bf16.gmra.mrb[8].mxu0 %vm454_vm2, %v3325_v29  ;;  %v1826_v55 = vsel %vm1665_vm3, %v1816_v26, %v1825_v27  ;;  %v3343_v29 = vsel %vm3312_vm7, %v3340_v44, %v3342_v40 }
 0x130   : > { %4882 = vmatprep.mubr.msk.bf16.mxu0 %vm454_vm2, %v3327_v61  ;;  %v1834_v59 = vor.u32 %v1833_v21, %v1830_v20  ;;  %v3348_v61 = vrot.slane %v6070_v0, 3 }
 0x132   : > { %v1835_v19 = vsel %vm1665_vm3, %v1825_v27, %v1834_v59 }
 0x134   : > { %4713 = vmatmul.mubr.msk.bf16.gmra.mrb[32].mxu1 %vm454_vm2, %v1388_v1  ;;  %v3349_v1 = vsel %vm3312_vm7, %v3346_v3, %v3348_v61 }
 0x135   : > { %4738 = vmatprep.mubr.msk.bf16.mxu1 %vm454_vm2, %v1772_v57 }
 0x137   : > { %4883 = vmatmul.mubr.msk.bf16.gmra.mrb[12].mxu0 %vm454_vm2, %v3329_v31 }
 0x138   : > { %4886 = vmatprep.mubr.msk.bf16.mxu0 %vm454_vm2, %v3331_v58 }
 0x13c   : > { %4739 = vmatmul.mubr.msk.bf16.vlgmr.msra.gmra.mrb[20].mxu1 %vm454_vm2, %v1781_v8 }
 0x13d   : > { %4742 = vmatprep.mubr.msk.bf16.mxu1 %vm454_vm2, %v1790_v7 }
 0x13f   : > { %4887 = vmatmul.mubr.msk.bf16.gmra.mrb[16].mxu0 %vm454_vm2, %v3333_v46 }
 0x140   : > { %4890 = vmatprep.mubr.msk.bf16.mxu0 %vm454_vm2, %v3335_v18 }
 0x144   : > { %4743 = vmatmul.mubr.msk.bf16.gmra.mrb[24].mxu1 %vm454_vm2, %v1799_v52 }
 0x145   : > { %4746 = vmatprep.mubr.msk.bf16.mxu1 %vm454_vm2, %v1808_v22 }
 0x147   : > { %4891 = vmatmul.mubr.msk.bf16.gmra.mrb[20].mxu0 %vm454_vm2, %v3337_v2 }
 0x148   : > { %4894 = vmatprep.mubr.msk.bf16.mxu0 %vm454_vm2, %v3339_v5 }
 0x14c   : > { %4747 = vmatmul.mubr.msk.bf16.gmra.mrb[28].mxu1 %vm454_vm2, %v1817_v32 }
 0x14d   : > { %4750 = vmatprep.mubr.msk.bf16.mxu1 %vm454_vm2, %v1826_v55 }
 0x14f   : > { %4895 = vmatmul.mubr.msk.bf16.gmra.mrb[24].mxu0 %vm454_vm2, %v3341_v39 }
 0x150   : > { %4898 = vmatprep.mubr.msk.bf16.mxu0 %vm454_vm2, %v3343_v29 }
 0x154   : > { %4751 = vmatmul.mubr.msk.bf16.gmra.mrb[32].mxu1 %vm454_vm2, %v1835_v19 }
 0x157   : > { %4899 = vmatmul.mubr.msk.bf16.gmra.mrb[28].mxu0 %vm454_vm2, %v3345_v43 }
 0x158   : > { %4902 = vmatprep.mubr.msk.bf16.mxu0 %vm454_vm2, %v3347_v33 }
 0x15f   : > { %4903 = vmatmul.mubr.msk.bf16.gmra.mrb[32].mxu0 %vm454_vm2, %v3349_v1 }
 0x1c7   : > { %v4682_v51 = vpop.f32.mrb[0].mxu1 }
 0x1c8   : > { %v1480_v62 = vpop.f32.mrb[1].mxu1 }
 0x1c9   : > { %v4683_v16 = vpop.f32.mrb[2].mxu1 }
 0x1ca   : > { %v1483_v14 = vpop.f32.mrb[3].mxu1 }
 0x1cf   : > { %v4686_v63 = vpop.f32.mrb[4].mxu1 }
 0x1d0   : > { %v1496_v57 = vpop.f32.mrb[5].mxu1 }
 0x1d1   : > { %v4687_v9 = vpop.f32.mrb[6].mxu1 }
 0x1d2   : > { %v1499_v17 = vpop.f32.mrb[7].mxu1 }
 0x1d7   : > { %v4690_v48 = vpop.f32.mrb[8].mxu1 }
 0x1d8   : > { %v1512_v60 = vpop.f32.mrb[9].mxu1 }
 0x1d9   : > { %v6203_v24 = vpop.f32.mrb[10].mxu1 }
 0x1da   : > { %v6205_v54 = vpop.f32.mrb[11].mxu1 }
 0x1df   : > { %v6207_v31 = vpop.f32.mrb[12].mxu1 }
 0x1e0   : > { %v6209_v0 = vpop.f32.mrb[13].mxu1 }
 0x1e1   : > { %v6211_v56 = vpop.f32.mrb[14].mxu1 }
 0x1e2   : > { %v6213_v13 = vpop.f32.mrb[15].mxu1 }
 0x1e7   : > { %v6215_v15 = vpop.f32.mrb[16].mxu1 }
 0x1e8   : > { %v6217_v58 = vpop.f32.mrb[17].mxu1 }
 0x1e9   : > { %v6219_v8 = vpop.f32.mrb[18].mxu1 }
 0x1ea   : > { %v6221_v34 = vpop.f32.mrb[19].mxu1 }
 0x1f2   : > { %v4872_v38 = vpop.f32.mrb[0].mxu0 }
 0x1f3   : > { %v4908_v7 = vadd.f32 %v4872_v38, %v4682_v51  ;;  %v3441_v4 = vpop.f32.mrb[1].mxu0 }
 0x1f4   : > { %v4909_v11 = vadd.f32 %v3441_v4, %v1480_v62  ;;  %v4873_v6 = vpop.f32.mrb[2].mxu0 }
 0x1f5   : > { %v3629_v12 = vadd.f32 %v4908_v7, %v6226_v49  ;;  %v4910_v30 = vadd.f32 %v4873_v6, %v4683_v16  ;;  %v3444_v42 = vpop.f32.mrb[3].mxu0 }
 0x1f6   : > { %v3627_v46 = vadd.f32 %v4909_v11, %v6226_v49  ;;  %v4911_v50 = vadd.f32 %v3444_v42, %v1483_v14 }
 0x1f7   : > { %v3665_v47 = vmul.f32 0.5, %v3629_v12  ;;  %v6231_v37 = vadd.f32 %v4910_v30, %v6226_v49 }
 0x1f8   : > { %v3663_v18 = vmul.f32 0.5, %v3627_v46  ;;  %v6234_v52 = vadd.f32 %v4911_v50, %v6226_v49 }
 0x1f9   : > { %5278 = vtanh.f32 %v3665_v47  ;;  %v3666_v10 = vmul.f32 0.5, %v6231_v37 }
 0x1fa   : > { %5280 = vtanh.f32 %v3663_v18  ;;  %v3664_v25 = vmul.f32 0.5, %v6234_v52  ;;  %v4876_v45 = vpop.f32.mrb[4].mxu0 }
 0x1fb   : > { %5282 = vtanh.f32 %v3666_v10  ;;  %v4912_v22 = vadd.f32 %v4876_v45, %v4686_v63  ;;  %v3457_v23 = vpop.f32.mrb[5].mxu0 }
 0x1fc   : > { %5284 = vtanh.f32 %v3664_v25  ;;  %v4913_v35 = vadd.f32 %v3457_v23, %v1496_v57  ;;  %v4877_v53 = vpop.f32.mrb[6].mxu0 }
 0x1fd   : > { %v6239_v26 = vadd.f32 %v4912_v22, %v6226_v49  ;;  %v4914_v28 = vadd.f32 %v4877_v53, %v4687_v9  ;;  %v3460_v41 = vpop.f32.mrb[7].mxu0 }
 0x1fe   : > { %v6242_v2 = vadd.f32 %v4913_v35, %v6226_v49  ;;  %v4915_v27 = vadd.f32 %v3460_v41, %v1499_v17 }
 0x1ff   : > { %v3669_v5 = vmul.f32 0.5, %v6239_v26  ;;  %v6246_v32 = vadd.f32 %v4914_v28, %v6226_v49 }
 0x200   : > { %v3667_v20 = vmul.f32 0.5, %v6242_v2  ;;  %v6250_v21 = vadd.f32 %v4915_v27, %v6226_v49 }
 0x201   : > { %5286 = vtanh.f32 %v3669_v5  ;;  %v3670_v44 = vmul.f32 0.5, %v6246_v32 }
 0x202   : > { %5288 = vtanh.f32 %v3667_v20  ;;  %v3668_v55 = vmul.f32 0.5, %v6250_v21  ;;  %v4880_v40 = vpop.f32.mrb[8].mxu0 }
 0x203   : > { %v5279_v59 = vpop.eup %5278  ;;  %5290 = vtanh.f32 %v3670_v44  ;;  %v4916_v39 = vadd.f32 %v4880_v40, %v4690_v48  ;;  %v3473_v29 = vpop.f32.mrb[9].mxu0 }
 0x204   : > { %v5281_v19 = vpop.eup %5280  ;;  %v3737_v36 = vmul.f32 0.5, %v5279_v59  ;;  %5292 = vtanh.f32 %v3668_v55  ;;  %v4917_v3 = vadd.f32 %v3473_v29, %v1512_v60  ;;  %v4881_v43 = vpop.f32.mrb[10].mxu0 }
 0x205   : > { %v5283_v33 = vpop.eup %5282  ;;  %v3735_v61 = vmul.f32 0.5, %v5281_v19  ;;  %v6256_v1 = vadd.f32 %v4916_v39, %v6226_v49  ;;  %v4918_v51 = vadd.f32 %v4881_v43, %v6203_v24  ;;  %v3476_v62 = vpop.f32.mrb[11].mxu0 }
 0x206   : > { %v5285_v16 = vpop.eup %5284  ;;  %v3773_v14 = vadd.f32 0.5, %v3737_v36  ;;  %v3738_v63 = vmul.f32 0.5, %v5283_v33  ;;  %v6260_v57 = vadd.f32 %v4917_v3, %v6226_v49  ;;  %v4919_v9 = vadd.f32 %v3476_v62, %v6205_v54 }
 0x207   : > { %v3771_v17 = vadd.f32 0.5, %v3735_v61  ;;  %v3736_v48 = vmul.f32 0.5, %v5285_v16  ;;  %v3673_v60 = vmul.f32 0.5, %v6256_v1  ;;  %v6265_v38 = vadd.f32 %v4918_v51, %v6226_v49 }
 0x208   : > { %v3809_v7 = vmul.f32 %v3773_v14, %v3629_v12  ;;  %v3774_v4 = vadd.f32 0.5, %v3738_v63  ;;  %v3671_v24 = vmul.f32 0.5, %v6260_v57  ;;  %v6269_v11 = vadd.f32 %v4919_v9, %v6226_v49 }
 0x209   : > { %v3807_v54 = vmul.f32 %v3771_v17, %v3627_v46  ;;  %v3772_v6 = vadd.f32 0.5, %v3736_v48  ;;  %5294 = vtanh.f32 %v3673_v60  ;;  %v3674_v30 = vmul.f32 0.5, %v6265_v38 }
 0x20a   : > { %v4359_v42 = vpack.c.bf16 %v3809_v7, %v3809_v7  ;;  %v3810_v12 = vmul.f32 %v3774_v4, %v6231_v37  ;;  %5296 = vtanh.f32 %v3671_v24  ;;  %v3672_v50 = vmul.f32 0.5, %v6269_v11  ;;  %v4884_v47 = vpop.f32.mrb[12].mxu0 }
 0x20b   : > { %v5287_v18 = vpop.eup %5286  ;;  %v4357_v10 = vpack.c.bf16 %v3807_v54, %v3807_v54  ;;  %v3808_v25 = vmul.f32 %v3772_v6, %v6234_v52  ;;  %5298 = vtanh.f32 %v3674_v30  ;;  %v4920_v46 = vadd.f32 %v4884_v47, %v6207_v31  ;;  %v3489_v45 = vpop.f32.mrb[13].mxu0 }
 0x20c   : > { %v5289_v22 = vpop.eup %5288  ;;  %3990 = vst.msk [vmem:[%s6274_s17 + $0x8] sm:$0xf] %vm3987_vm8, %v4359_v42  ;;  %v4360_v23 = vpack.c.bf16 %v3810_v12, %v3810_v12  ;;  %v3741_v35 = vmul.f32 0.5, %v5287_v18  ;;  %5300 = vtanh.f32 %v3672_v50  ;;  %v4921_v37 = vadd.f32 %v3489_v45, %v6209_v0  ;;  %v4885_v53 = vpop.f32.mrb[14].mxu0 }
 0x20d   : > { %v5291_v28 = vpop.eup %5290  ;;  %3988 = vst.msk [vmem:[%s6274_s17] sm:$0xf] %vm3987_vm8, %v4357_v10  ;;  %v4358_v41 = vpack.c.bf16 %v3808_v25, %v3808_v25  ;;  %v3739_v52 = vmul.f32 0.5, %v5289_v22  ;;  %v6287_v27 = vadd.f32 %v4920_v46, %v6226_v49  ;;  %v4922_v31 = vadd.f32 %v4885_v53, %v6211_v56  ;;  %v3492_v5 = vpop.f32.mrb[15].mxu0 }
 0x20e   : > { %v5293_v44 = vpop.eup %5292  ;;  %3991 = vst.msk [vmem:[%s6274_s17 + $0xc] sm:$0xf] %vm3987_vm8, %v4360_v23  ;;  %v3777_v55 = vadd.f32 0.5, %v3741_v35  ;;  %v3742_v0 = vmul.f32 0.5, %v5291_v28  ;;  %v6295_v40 = vadd.f32 %v4921_v37, %v6226_v49  ;;  %v4923_v59 = vadd.f32 %v3492_v5, %v6213_v13 }
 0x20f   : > { %v6290_v20 = vpop.f32.mrb[20].mxu1  ;;  %3989 = vst.msk [vmem:[%s6274_s17 + $0x4] sm:$0xf] %vm3987_vm8, %v4358_v41  ;;  %v3775_v29 = vadd.f32 0.5, %v3739_v52  ;;  %v3740_v19 = vmul.f32 0.5, %v5293_v44  ;;  %v3677_v56 = vmul.f32 0.5, %v6287_v27  ;;  %v6304_v36 = vadd.f32 %v4922_v31, %v6226_v49 }
 0x210   : > { %v6298_v39 = vpop.f32.mrb[21].mxu1  ;;  %v3813_v43 = vmul.f32 %v3777_v55, %v6239_v26  ;;  %v3778_v33 = vadd.f32 0.5, %v3742_v0  ;;  %v3675_v61 = vmul.f32 0.5, %v6295_v40  ;;  %v6311_v13 = vadd.f32 %v4923_v59, %v6226_v49 }
 0x211   : > { %v6306_v3 = vpop.f32.mrb[22].mxu1  ;;  %v3811_v62 = vmul.f32 %v3775_v29, %v6242_v2  ;;  %v3776_v16 = vadd.f32 0.5, %v3740_v19  ;;  %5302 = vtanh.f32 %v3677_v56  ;;  %v3678_v14 = vmul.f32 0.5, %v6304_v36 }
 0x212   : > { %v6313_v51 = vpop.f32.mrb[23].mxu1  ;;  %v4363_v63 = vpack.c.bf16 %v3813_v43, %v3813_v43  ;;  %v3814_v9 = vmul.f32 %v3778_v33, %v6246_v32  ;;  %5304 = vtanh.f32 %v3675_v61  ;;  %v3676_v26 = vmul.f32 0.5, %v6311_v13  ;;  %v4888_v17 = vpop.f32.mrb[16].mxu0 }
 0x213   : > { %v5295_v48 = vpop.eup %5294  ;;  %v4361_v60 = vpack.c.bf16 %v3811_v62, %v3811_v62  ;;  %v3812_v7 = vmul.f32 %v3776_v16, %v6250_v21  ;;  %5306 = vtanh.f32 %v3678_v14  ;;  %v4924_v2 = vadd.f32 %v4888_v17, %v6215_v15  ;;  %v3505_v4 = vpop.f32.mrb[17].mxu0 }
 0x214   : > { %v5297_v24 = vpop.eup %5296  ;;  %3994 = vst.msk [vmem:[%s6274_s17 + $0x18] sm:$0xf] %vm3987_vm8, %v4363_v63  ;;  %v4364_v54 = vpack.c.bf16 %v3814_v9, %v3814_v9  ;;  %v3745_v6 = vmul.f32 0.5, %v5295_v48  ;;  %5308 = vtanh.f32 %v3676_v26  ;;  %v4925_v32 = vadd.f32 %v3505_v4, %v6217_v58  ;;  %v4889_v30 = vpop.f32.mrb[18].mxu0 }
 0x215   : > { %v5299_v42 = vpop.eup %5298  ;;  %3992 = vst.msk [vmem:[%s6274_s17 + $0x10] sm:$0xf] %vm3987_vm8, %v4361_v60  ;;  %v4362_v12 = vpack.c.bf16 %v3812_v7, %v3812_v7  ;;  %v3743_v21 = vmul.f32 0.5, %v5297_v24  ;;  %v6327_v50 = vadd.f32 %v4924_v2, %v6226_v49  ;;  %v4926_v15 = vadd.f32 %v4889_v30, %v6219_v8  ;;  %v3508_v47 = vpop.f32.mrb[19].mxu0 }
 0x216   : > { %v5301_v10 = vpop.eup %5300  ;;  %3995 = vst.msk [vmem:[%s6274_s17 + $0x1c] sm:$0xf] %vm3987_vm8, %v4364_v54  ;;  %v3781_v25 = vadd.f32 0.5, %v3745_v6  ;;  %v3746_v58 = vmul.f32 0.5, %v5299_v42  ;;  %v6335_v46 = vadd.f32 %v4925_v32, %v6226_v49  ;;  %v4927_v45 = vadd.f32 %v3508_v47, %v6221_v34 }
 0x217   : > { %v6330_v18 = vpop.f32.mrb[24].mxu1  ;;  %3993 = vst.msk [vmem:[%s6274_s17 + $0x14] sm:$0xf] %vm3987_vm8, %v4362_v12  ;;  %v3779_v23 = vadd.f32 0.5, %v3743_v21  ;;  %v3744_v35 = vmul.f32 0.5, %v5301_v10  ;;  %v3681_v8 = vmul.f32 0.5, %v6327_v50  ;;  %v6344_v37 = vadd.f32 %v4926_v15, %v6226_v49 }
 0x218   : > { %v6338_v22 = vpop.f32.mrb[25].mxu1  ;;  %v3817_v28 = vmul.f32 %v3781_v25, %v6256_v1  ;;  %v3782_v41 = vadd.f32 0.5, %v3746_v58  ;;  %v3679_v52 = vmul.f32 0.5, %v6335_v46  ;;  %v6351_v34 = vadd.f32 %v4927_v45, %v6226_v49 }
 0x219   : > { %v6346_v53 = vpop.f32.mrb[26].mxu1  ;;  %v3815_v5 = vmul.f32 %v3779_v23, %v6260_v57  ;;  %v3780_v44 = vadd.f32 0.5, %v3744_v35  ;;  %5310 = vtanh.f32 %v3681_v8  ;;  %v3682_v55 = vmul.f32 0.5, %v6344_v37 }
 0x21a   : > { %v6353_v31 = vpop.f32.mrb[27].mxu1  ;;  %v4367_v0 = vpack.c.bf16 %v3817_v28, %v3817_v28  ;;  %v3818_v59 = vmul.f32 %v3782_v41, %v6265_v38  ;;  %5312 = vtanh.f32 %v3679_v52  ;;  %v3680_v1 = vmul.f32 0.5, %v6351_v34  ;;  %v4892_v29 = vpop.f32.mrb[20].mxu0 }
 0x21b   : > { %v5303_v19 = vpop.eup %5302  ;;  %v4365_v56 = vpack.c.bf16 %v3815_v5, %v3815_v5  ;;  %v3816_v43 = vmul.f32 %v3780_v44, %v6269_v11  ;;  %5314 = vtanh.f32 %v3682_v55  ;;  %v4928_v57 = vadd.f32 %v4892_v29, %v6290_v20  ;;  %v3521_v33 = vpop.f32.mrb[21].mxu0 }
 0x21c   : > { %v5305_v61 = vpop.eup %5304  ;;  %3998 = vst.msk [vmem:[%s6274_s17 + $0x28] sm:$0xf] %vm3987_vm8, %v4367_v0  ;;  %v4368_v62 = vpack.c.bf16 %v3818_v59, %v3818_v59  ;;  %v3749_v16 = vmul.f32 0.5, %v5303_v19  ;;  %5316 = vtanh.f32 %v3680_v1  ;;  %v4929_v38 = vadd.f32 %v3521_v33, %v6298_v39  ;;  %v4893_v14 = vpop.f32.mrb[22].mxu0 }
 0x21d   : > { %v5307_v63 = vpop.eup %5306  ;;  %3996 = vst.msk [vmem:[%s6274_s17 + $0x20] sm:$0xf] %vm3987_vm8, %v4365_v56  ;;  %v4366_v9 = vpack.c.bf16 %v3816_v43, %v3816_v43  ;;  %v3747_v11 = vmul.f32 0.5, %v5305_v61  ;;  %v6367_v26 = vadd.f32 %v4928_v57, %v6226_v49  ;;  %v4930_v20 = vadd.f32 %v4893_v14, %v6306_v3  ;;  %v3524_v17 = vpop.f32.mrb[23].mxu0 }
 0x21e   : > { %v5309_v60 = vpop.eup %5308  ;;  %3999 = vst.msk [vmem:[%s6274_s17 + $0x2c] sm:$0xf] %vm3987_vm8, %v4368_v62  ;;  %v3785_v7 = vadd.f32 0.5, %v3749_v16  ;;  %v3750_v39 = vmul.f32 0.5, %v5307_v63  ;;  %v6375_v2 = vadd.f32 %v4929_v38, %v6226_v49  ;;  %v4931_v4 = vadd.f32 %v3524_v17, %v6313_v51 }
 0x21f   : > { %v6370_v48 = vpop.f32.mrb[28].mxu1  ;;  %3997 = vst.msk [vmem:[%s6274_s17 + $0x24] sm:$0xf] %vm3987_vm8, %v4366_v9  ;;  %v3783_v54 = vadd.f32 0.5, %v3747_v11  ;;  %v3748_v6 = vmul.f32 0.5, %v5309_v60  ;;  %v3685_v3 = vmul.f32 0.5, %v6367_v26  ;;  %v6384_v32 = vadd.f32 %v4930_v20, %v6226_v49 }
 0x220   : > { %v6378_v24 = vpop.f32.mrb[29].mxu1  ;;  %v3821_v42 = vmul.f32 %v3785_v7, %v6287_v27  ;;  %v3786_v12 = vadd.f32 0.5, %v3750_v39  ;;  %v3683_v21 = vmul.f32 0.5, %v6375_v2  ;;  %v6391_v51 = vadd.f32 %v4931_v4, %v6226_v49 }
 0x221   : > { %v6386_v30 = vpop.f32.mrb[30].mxu1  ;;  %v3819_v47 = vmul.f32 %v3783_v54, %v6295_v40  ;;  %v3784_v10 = vadd.f32 0.5, %v3748_v6  ;;  %5318 = vtanh.f32 %v3685_v3  ;;  %v3686_v25 = vmul.f32 0.5, %v6384_v32 }
 0x222   : > { %v6393_v15 = vpop.f32.mrb[31].mxu1  ;;  %v4371_v58 = vpack.c.bf16 %v3821_v42, %v3821_v42  ;;  %v3822_v45 = vmul.f32 %v3786_v12, %v6304_v36  ;;  %5320 = vtanh.f32 %v3683_v21  ;;  %v3684_v27 = vmul.f32 0.5, %v6391_v51  ;;  %v4896_v23 = vpop.f32.mrb[24].mxu0 }
 0x223   : > { %v5311_v35 = vpop.eup %5310  ;;  %v4369_v8 = vpack.c.bf16 %v3819_v47, %v3819_v47  ;;  %v3820_v28 = vmul.f32 %v3784_v10, %v6311_v13  ;;  %5322 = vtanh.f32 %v3686_v25  ;;  %v4932_v40 = vadd.f32 %v4896_v23, %v6330_v18  ;;  %v3537_v41 = vpop.f32.mrb[25].mxu0 }
 0x224   : > { %v5313_v52 = vpop.eup %5312  ;;  %4002 = vst.msk [vmem:[%s6274_s17 + $0x38] sm:$0xf] %vm3987_vm8, %v4371_v58  ;;  %v4372_v5 = vpack.c.bf16 %v3822_v45, %v3822_v45  ;;  %v3753_v44 = vmul.f32 0.5, %v5311_v35  ;;  %5324 = vtanh.f32 %v3684_v27  ;;  %v4933_v36 = vadd.f32 %v3537_v41, %v6338_v22  ;;  %v4897_v55 = vpop.f32.mrb[26].mxu0 }
 0x225   : > { %v5315_v0 = vpop.eup %5314  ;;  %4000 = vst.msk [vmem:[%s6274_s17 + $0x30] sm:$0xf] %vm3987_vm8, %v4369_v8  ;;  %v4370_v59 = vpack.c.bf16 %v3820_v28, %v3820_v28  ;;  %v3751_v13 = vmul.f32 0.5, %v5313_v52  ;;  %v6407_v1 = vadd.f32 %v4932_v40, %v6226_v49  ;;  %v4934_v18 = vadd.f32 %v4897_v55, %v6346_v53  ;;  %v3540_v29 = vpop.f32.mrb[27].mxu0 }
 0x226   : > { %v5317_v56 = vpop.eup %5316  ;;  %4003 = vst.msk [vmem:[%s6274_s17 + $0x3c] sm:$0xf] %vm3987_vm8, %v4372_v5  ;;  %v3789_v43 = vadd.f32 0.5, %v3753_v44  ;;  %v3754_v22 = vmul.f32 0.5, %v5315_v0  ;;  %v6415_v57 = vadd.f32 %v4933_v36, %v6226_v49  ;;  %v4935_v33 = vadd.f32 %v3540_v29, %v6353_v31 }
 0x227   : > { %v6410_v19 = vpop.f32.mrb[32].mxu1  ;;  %4001 = vst.msk [vmem:[%s6274_s17 + $0x34] sm:$0xf] %vm3987_vm8, %v4370_v59  ;;  %v3787_v62 = vadd.f32 0.5, %v3751_v13  ;;  %v3752_v16 = vmul.f32 0.5, %v5317_v56  ;;  %v3689_v53 = vmul.f32 0.5, %v6407_v1  ;;  %v6424_v38 = vadd.f32 %v4934_v18, %v6226_v49 }
 0x228   : > { %v6418_v61 = vpop.f32.mrb[33].mxu1  ;;  %v3825_v63 = vmul.f32 %v3789_v43, %v6327_v50  ;;  %v3790_v9 = vadd.f32 0.5, %v3754_v22  ;;  %v3687_v11 = vmul.f32 0.5, %v6415_v57  ;;  %v6431_v31 = vadd.f32 %v4935_v33, %v6226_v49 }
 0x229   : > { %v6426_v14 = vpop.f32.mrb[34].mxu1  ;;  %v3823_v17 = vmul.f32 %v3787_v62, %v6335_v46  ;;  %v3788_v60 = vadd.f32 0.5, %v3752_v16  ;;  %5326 = vtanh.f32 %v3689_v53  ;;  %v3690_v7 = vmul.f32 0.5, %v6424_v38 }
 0x22a   : > { %v6433_v20 = vpop.f32.mrb[35].mxu1  ;;  %v4375_v39 = vpack.c.bf16 %v3825_v63, %v3825_v63  ;;  %v3826_v4 = vmul.f32 %v3790_v9, %v6344_v37  ;;  %5328 = vtanh.f32 %v3687_v11  ;;  %v3688_v50 = vmul.f32 0.5, %v6431_v31  ;;  %v4900_v54 = vpop.f32.mrb[28].mxu0 }
 0x22b   : > { %v5319_v6 = vpop.eup %5318  ;;  %v4373_v3 = vpack.c.bf16 %v3823_v17, %v3823_v17  ;;  %v3824_v42 = vmul.f32 %v3788_v60, %v6351_v34  ;;  %5330 = vtanh.f32 %v3690_v7  ;;  %v4936_v46 = vadd.f32 %v4900_v54, %v6370_v48  ;;  %v3553_v12 = vpop.f32.mrb[29].mxu0 }
 0x22c   : > { %v5321_v21 = vpop.eup %5320  ;;  %4006 = vst.msk [vmem:[%s6274_s17 + $0x48] sm:$0xf] %vm3987_vm8, %v4375_v39  ;;  %v4376_v47 = vpack.c.bf16 %v3826_v4, %v3826_v4  ;;  %v3757_v10 = vmul.f32 0.5, %v5319_v6  ;;  %5332 = vtanh.f32 %v3688_v50  ;;  %v4937_v37 = vadd.f32 %v3553_v12, %v6378_v24  ;;  %v4901_v25 = vpop.f32.mrb[30].mxu0 }
 0x22d   : > { %v5323_v58 = vpop.eup %5322  ;;  %4004 = vst.msk [vmem:[%s6274_s17 + $0x40] sm:$0xf] %vm3987_vm8, %v4373_v3  ;;  %v4374_v45 = vpack.c.bf16 %v3824_v42, %v3824_v42  ;;  %v3755_v34 = vmul.f32 0.5, %v5321_v21  ;;  %v6447_v27 = vadd.f32 %v4936_v46, %v6226_v49  ;;  %v4938_v48 = vadd.f32 %v4901_v25, %v6386_v30  ;;  %v3556_v23 = vpop.f32.mrb[31].mxu0 }
 0x22e   : > { %v5325_v35 = vpop.eup %5324  ;;  %4007 = vst.msk [vmem:[%s6274_s17 + $0x4c] sm:$0xf] %vm3987_vm8, %v4376_v47  ;;  %v3793_v8 = vadd.f32 0.5, %v3757_v10  ;;  %v3758_v28 = vmul.f32 0.5, %v5323_v58  ;;  %v6453_v40 = vadd.f32 %v4937_v37, %v6226_v49  ;;  %v4939_v24 = vadd.f32 %v3556_v23, %v6393_v15 }
 0x22f   : > { %4005 = vst.msk [vmem:[%s6274_s17 + $0x44] sm:$0xf] %vm3987_vm8, %v4374_v45  ;;  %v3791_v41 = vadd.f32 0.5, %v3755_v34  ;;  %v3756_v52 = vmul.f32 0.5, %v5325_v35  ;;  %v3693_v5 = vmul.f32 0.5, %v6447_v27  ;;  %v6460_v44 = vadd.f32 %v4938_v48, %v6226_v49 }
 0x230   : > { %v3829_v30 = vmul.f32 %v3793_v8, %v6367_v26  ;;  %v3794_v36 = vadd.f32 0.5, %v3758_v28  ;;  %v3691_v55 = vmul.f32 0.5, %v6453_v40  ;;  %v6465_v0 = vadd.f32 %v4939_v24, %v6226_v49 }
 0x231   : > { %v3827_v59 = vmul.f32 %v3791_v41, %v6375_v2  ;;  %v3792_v15 = vadd.f32 0.5, %v3756_v52  ;;  %5334 = vtanh.f32 %v3693_v5  ;;  %v3694_v13 = vmul.f32 0.5, %v6460_v44 }
 0x232   : > { %v4379_v18 = vpack.c.bf16 %v3829_v30, %v3829_v30  ;;  %v3830_v29 = vmul.f32 %v3794_v36, %v6384_v32  ;;  %5336 = vtanh.f32 %v3691_v55  ;;  %v3692_v56 = vmul.f32 0.5, %v6465_v0  ;;  %v4904_v26 = vpop.f32.mrb[32].mxu0 }
 0x233   : > { %v5327_v43 = vpop.eup %5326  ;;  %v4377_v22 = vpack.c.bf16 %v3827_v59, %v3827_v59  ;;  %v3828_v33 = vmul.f32 %v3792_v15, %v6391_v51  ;;  %5338 = vtanh.f32 %v3694_v13  ;;  %v4940_v2 = vadd.f32 %v4904_v26, %v6410_v19  ;;  %v3569_v62 = vpop.f32.mrb[33].mxu0 }
 0x234   : > { %v5329_v16 = vpop.eup %5328  ;;  %4010 = vst.msk [vmem:[%s6274_s17 + $0x58] sm:$0xf] %vm3987_vm8, %v4379_v18  ;;  %v4380_v53 = vpack.c.bf16 %v3830_v29, %v3830_v29  ;;  %v3761_v63 = vmul.f32 0.5, %v5327_v43  ;;  %5340 = vtanh.f32 %v3692_v56  ;;  %v4941_v32 = vadd.f32 %v3569_v62, %v6418_v61  ;;  %v4905_v9 = vpop.f32.mrb[34].mxu0 }
 0x235   : > { %v5331_v11 = vpop.eup %5330  ;;  %4008 = vst.msk [vmem:[%s6274_s17 + $0x50] sm:$0xf] %vm3987_vm8, %v4377_v22  ;;  %v4378_v17 = vpack.c.bf16 %v3828_v33, %v3828_v33  ;;  %v3759_v51 = vmul.f32 0.5, %v5329_v16  ;;  %v6479_v60 = vadd.f32 %v4940_v2, %v6226_v49  ;;  %v4942_v19 = vadd.f32 %v4905_v9, %v6426_v14  ;;  %v3572_v7 = vpop.f32.mrb[35].mxu0 }
 0x236   : > { %v5333_v39 = vpop.eup %5332  ;;  %4011 = vst.msk [vmem:[%s6274_s17 + $0x5c] sm:$0xf] %vm3987_vm8, %v4380_v53  ;;  %v3797_v4 = vadd.f32 0.5, %v3761_v63  ;;  %v3762_v50 = vmul.f32 0.5, %v5331_v11  ;;  %v6485_v54 = vadd.f32 %v4941_v32, %v6226_v49  ;;  %v4943_v61 = vadd.f32 %v3572_v7, %v6433_v20 }
 0x237   : > { %4009 = vst.msk [vmem:[%s6274_s17 + $0x54] sm:$0xf] %vm3987_vm8, %v4378_v17  ;;  %v3795_v6 = vadd.f32 0.5, %v3759_v51  ;;  %v3760_v3 = vmul.f32 0.5, %v5333_v39  ;;  %v3697_v42 = vmul.f32 0.5, %v6479_v60  ;;  %v3662_v46 = vadd.f32 %v4942_v19, %v6226_v49 }
 0x238   : > { %v3833_v14 = vmul.f32 %v3797_v4, %v6407_v1  ;;  %v3798_v12 = vadd.f32 0.5, %v3762_v50  ;;  %v3695_v21 = vmul.f32 0.5, %v6485_v54  ;;  %v3660_v47 = vadd.f32 %v4943_v61, %v6226_v49 }
 0x239   : > { %v3831_v10 = vmul.f32 %v3795_v6, %v6415_v57  ;;  %v3796_v37 = vadd.f32 0.5, %v3760_v3  ;;  %5342 = vtanh.f32 %v3697_v42  ;;  %v3698_v20 = vmul.f32 0.5, %v3662_v46 }
 0x23a   : > { %v4383_v25 = vpack.c.bf16 %v3833_v14, %v3833_v14  ;;  %v3834_v58 = vmul.f32 %v3798_v12, %v6424_v38  ;;  %5344 = vtanh.f32 %v3695_v21  ;;  %v3696_v45 = vmul.f32 0.5, %v3660_v47 }
 0x23b   : > { %v5335_v34 = vpop.eup %5334  ;;  %v4381_v1 = vpack.c.bf16 %v3831_v10, %v3831_v10  ;;  %v3832_v48 = vmul.f32 %v3796_v37, %v6431_v31  ;;  %5346 = vtanh.f32 %v3698_v20 }
 0x23c   : > { %v5337_v23 = vpop.eup %5336  ;;  %4014 = vst.msk [vmem:[%s6274_s17 + $0x68] sm:$0xf] %vm3987_vm8, %v4383_v25  ;;  %v4384_v49 = vpack.c.bf16 %v3834_v58, %v3834_v58  ;;  %v3765_v57 = vmul.f32 0.5, %v5335_v34  ;;  %5348 = vtanh.f32 %v3696_v45 }
 0x23d   : > { %v5339_v35 = vpop.eup %5338  ;;  %4012 = vst.msk [vmem:[%s6274_s17 + $0x60] sm:$0xf] %vm3987_vm8, %v4381_v1  ;;  %v4382_v8 = vpack.c.bf16 %v3832_v48, %v3832_v48  ;;  %v3763_v38 = vmul.f32 0.5, %v5337_v23 }
 0x23e   : > { %v5341_v28 = vpop.eup %5340  ;;  %4015 = vst.msk [vmem:[%s6274_s17 + $0x6c] sm:$0xf] %vm3987_vm8, %v4384_v49  ;;  %v3801_v24 = vadd.f32 0.5, %v3765_v57  ;;  %v3766_v41 = vmul.f32 0.5, %v5339_v35 }
 0x23f   : > { %4013 = vst.msk [vmem:[%s6274_s17 + $0x64] sm:$0xf] %vm3987_vm8, %v4382_v8  ;;  %v3799_v31 = vadd.f32 0.5, %v3763_v38  ;;  %v3764_v52 = vmul.f32 0.5, %v5341_v28 }
 0x240   : > { %v3837_v5 = vmul.f32 %v3801_v24, %v6447_v27  ;;  %v3802_v30 = vadd.f32 0.5, %v3766_v41 }
 0x241   : > { %v3835_v36 = vmul.f32 %v3799_v31, %v6453_v40  ;;  %v3800_v55 = vadd.f32 0.5, %v3764_v52 }
 0x242   : > { %v4387_v59 = vpack.c.bf16 %v3837_v5, %v3837_v5  ;;  %v3838_v15 = vmul.f32 %v3802_v30, %v6460_v44 }
 0x243   : > { %v5343_v13 = vpop.eup %5342  ;;  %v4385_v18 = vpack.c.bf16 %v3835_v36, %v3835_v36  ;;  %v3836_v29 = vmul.f32 %v3800_v55, %v6465_v0 }
 0x244   : > { %v5345_v56 = vpop.eup %5344  ;;  %4018 = vst.msk [vmem:[%s6274_s17 + $0x78] sm:$0xf] %vm3987_vm8, %v4387_v59  ;;  %v4388_v26 = vpack.c.bf16 %v3838_v15, %v3838_v15  ;;  %v3769_v43 = vmul.f32 0.5, %v5343_v13 }
 0x245   : > { %v5347_v22 = vpop.eup %5346  ;;  %4016 = vst.msk [vmem:[%s6274_s17 + $0x70] sm:$0xf] %vm3987_vm8, %v4385_v18  ;;  %v4386_v27 = vpack.c.bf16 %v3836_v29, %v3836_v29  ;;  %v3767_v40 = vmul.f32 0.5, %v5345_v56 }
 0x246   : > { %v5349_v33 = vpop.eup %5348  ;;  %4019 = vst.msk [vmem:[%s6274_s17 + $0x7c] sm:$0xf] %vm3987_vm8, %v4388_v26  ;;  %v3805_v44 = vadd.f32 0.5, %v3769_v43  ;;  %v3770_v2 = vmul.f32 0.5, %v5347_v22 }
 0x247   : > { %4017 = vst.msk [vmem:[%s6274_s17 + $0x74] sm:$0xf] %vm3987_vm8, %v4386_v27  ;;  %v3803_v0 = vadd.f32 0.5, %v3767_v40  ;;  %v3768_v62 = vmul.f32 0.5, %v5349_v33 }
 0x248   : > { %v3841_v16 = vmul.f32 %v3805_v44, %v6479_v60  ;;  %v3806_v53 = vadd.f32 0.5, %v3770_v2 }
 0x249   : > { %v3839_v63 = vmul.f32 %v3803_v0, %v6485_v54  ;;  %v3804_v32 = vadd.f32 0.5, %v3768_v62 }
 0x24a   : > { %v4391_v9 = vpack.c.bf16 %v3841_v16, %v3841_v16  ;;  %v3842_v11 = vmul.f32 %v3806_v53, %v3662_v46 }
 0x24b   : > { %v4389_v17 = vpack.c.bf16 %v3839_v63, %v3839_v63  ;;  %v3840_v51 = vmul.f32 %v3804_v32, %v3660_v47 }
 0x24c   : > { %4022 = vst.msk [vmem:[%s6274_s17 + $0x88] sm:$0xf] %vm3987_vm8, %v4391_v9  ;;  %v4392_v19 = vpack.c.bf16 %v3842_v11, %v3842_v11 }
 0x24d   : > { %4020 = vst.msk [vmem:[%s6274_s17 + $0x80] sm:$0xf] %vm3987_vm8, %v4389_v17  ;;  %v4390_v7 = vpack.c.bf16 %v3840_v51, %v3840_v51 }
 0x24e   : > { %4023 = vst.msk [vmem:[%s6274_s17 + $0x8c] sm:$0xf] %vm3987_vm8, %v4392_v19 }
 0x24f   : > { %4021 = vst.msk [vmem:[%s6274_s17 + $0x84] sm:$0xf] %vm3987_vm8, %v4390_v7 }
 0x250 PF: > { %s13_s12 = sadd.s32 1, %s5367_s12  }
 0x251   : > { %p10_p4 = scmp.ge.s32.totalorder %s13_s12, 4  }
 0x253   :  { %12 = sbr.rel (!%p10_p4) target bundleno = 1 (0x1), region = 70 }

// kernel: variational_encoder_forward.5
= control target key start
LH: loop header
LB: loop body
LE: loop exit
PB: predicated region body
PF: predicated region fallthrough
CT: control target
= control target key end

     0   :  { %s1504_s12 = smov 0   ;;  %s1817_s0 = inlined_call_operand.vmem [shape: bf16[2,90,128], index: 0, kind: input, shape index: {}]   ;;  %s1818_s1 = inlined_call_operand.vmem [shape: bf16[4,128,32], index: 1, kind: input, shape index: {}]   ;;  %s1819_s2 = inlined_call_operand.vmem [shape: f32[1,32], index: 2, kind: input, shape index: {}]   ;;  %s1820_s3 = inlined_call_operand.vmem [shape: bf16[2,72,32], index: 3, kind: output, shape index: {}]  }
   0x1 LB: > { %s1084_s13 = sadd.s32 4294967295, %s1480_s12   ;;  %p1088_p0 = scmp.ge.s32.totalorder %s1480_s12, 1  ;;  %s1480_s12 = sphi %s1504_s12, %s13_s12  }
   0x2   : > { %p137_p1 = scmp.lt.s32.totalorder %s1480_s12, 3 }
   0x4   : > { %p138_p2 = pnand %p1088_p0, %p137_p1 }
   0x5   : > { %v1412_v0 = vld [vmem:[%s1818_s1 + $0x40] sm:$0xff] (!%p138_p2)   ;;  %v1482_v1 = vmov (!%p138_p2), 0.0   ;;  %v1414_v3 = vld [vmem:[%s1818_s1 + $0x48] sm:$0xff] (!%p138_p2)   ;;  %vm1483_vm0 = vmmov (!%p138_p2), 0   ;;  %p161_p3 = scmp.lt.s32.totalorder (!%p138_p2), %s1084_s13, 1  ;;  %v1416_v5 = vld [vmem:[%s1818_s1 + $0x50] sm:$0xff] (!%p138_p2)  }
   0x6   : > { %141 = sbr.rel (%p138_p2) target bundleno = 350 (0x15e), region = 32  ;;  %1256 = vmatprep.subr.bf16.mxu0 (!%p138_p2), %v1482_v1  ;;  %1292 = vmatprep.subr.bf16.mxu1 (!%p138_p2), %v1482_v1  ;;  %v1413_v2 = vld [vmem:[%s1818_s1] sm:$0xff] (!%p138_p2)   ;;  %v1415_v4 = vld [vmem:[%s1818_s1 + $0x8] sm:$0xff] (!%p138_p2)   ;;  %v1417_v6 = vld [vmem:[%s1818_s1 + $0x10] sm:$0xff] (!%p138_p2)   ;;  %vm240_vm1 = vsmask.f32 (!%p138_p2), 7424 }
   0x7   : > { %1257 = vmatpush3.bf16.msra.mxu0 (!%p138_p2), %v1412_v0  ;;  %1272 = vmatprep.mubr.msk.bf16.mxu0 (!%p138_p2), %vm1483_vm0, %v1482_v1  ;;  %v1418_v7 = vld [vmem:[%s1818_s1 + $0x58] sm:$0xff] (!%p138_p2)   ;;  %v1420_v9 = vld [vmem:[%s1818_s1 + $0x60] sm:$0xff] (!%p138_p2)   ;;  %v1422_v11 = vld [vmem:[%s1818_s1 + $0x68] sm:$0xff] (!%p138_p2)   ;;  %vm777_vm2 = vcmask (!%p138_p2), 1046528   ;;  %vm1019_vm3 = vcmask (!%p138_p2), 257024  }
   0x8   : > { %1293 = vmatpush3.bf16.msra.mxu1 (!%p138_p2), %v1413_v2  ;;  %1258 = vmatprep.subr.bf16.mxu0 (!%p138_p2), %v1482_v1  ;;  %v1419_v8 = vld [vmem:[%s1818_s1 + $0x18] sm:$0xff] (!%p138_p2)   ;;  %v1421_v10 = vld [vmem:[%s1818_s1 + $0x20] sm:$0xff] (!%p138_p2)   ;;  %v1423_v14 = vld [vmem:[%s1818_s1 + $0x28] sm:$0xff] (!%p138_p2)  }
   0x9   : > { %1294 = vmatprep.subr.bf16.mxu1 (!%p138_p2), %v1482_v1  ;;  %1308 = vmatprep.mubr.msk.bf16.mxu1 (!%p138_p2), %vm1483_vm0, %v1482_v1  ;;  %v1424_v16 = vld [vmem:[%s1818_s1 + $0x70] sm:$0xff] (!%p138_p2)   ;;  %v1426_v21 = vld [vmem:[%s1818_s1 + $0x78] sm:$0xff] (!%p138_p2)   ;;  %v1430_v27 = vld [vmem:[%s1818_s1 + $0x80] sm:$0xff] (!%p138_p2)  }
   0xa   : > { %v1425_v20 = vld [vmem:[%s1818_s1 + $0x30] sm:$0xff] (!%p138_p2)   ;;  %v1427_v22 = vld [vmem:[%s1818_s1 + $0x38] sm:$0xff] (!%p138_p2)   ;;  %v1431_v30 = vld [vmem:[%s1818_s1 + $0xc0] sm:$0xff] (!%p138_p2)  }
   0xb   : > { %1259 = vmatpush3.bf16.msra.mxu0 (!%p138_p2), %v1414_v3  ;;  %v1432_v31 = vld [vmem:[%s1818_s1 + $0x88] sm:$0xff] (!%p138_p2)   ;;  %v1435_v36 = vld [vmem:[%s1818_s1 + $0x90] sm:$0xff] (!%p138_p2)   ;;  %v1438_v45 = vld [vmem:[%s1818_s1 + $0x98] sm:$0xff] (!%p138_p2)  }
   0xc   : > { %1295 = vmatpush3.bf16.msra.mxu1 (!%p138_p2), %v1415_v4  ;;  %1260 = vmatprep.subr.bf16.mxu0 (!%p138_p2), %v1482_v1  ;;  %v1434_v35 = vld [vmem:[%s1818_s1 + $0xc8] sm:$0xff] (!%p138_p2)   ;;  %v1436_v37 = vld [vmem:[%s1818_s1 + $0xd0] sm:$0xff] (!%p138_p2)   ;;  %v1439_v48 = vld [vmem:[%s1818_s1 + $0xd8] sm:$0xff] (!%p138_p2)  }
   0xd   : > { %s1822_s13 = smov (!%p161_p3, %s1084_s13), 1  ;;  %1296 = vmatprep.subr.bf16.mxu1 %v1482_v1  ;;  %v1440_v54 = vld [vmem:[%s1818_s1 + $0xa0] sm:$0xff]   ;;  %v1443_v63 = vld [vmem:[%s1818_s1 + $0xa8] sm:$0xff]  }
   0xe   : > { %s1400_s28 = smul.u32 48, %s1822_s13  ;;  %v1441_v59 = vld [vmem:[%s1818_s1 + $0xe0] sm:$0xff]   ;;  %v1444_v4 = vld [vmem:[%s1818_s1 + $0xe8] sm:$0xff]  }
   0xf   : > { %1261 = vmatpush3.bf16.msra.mxu0 %v1416_v5  ;;  %s1401_s7 = smul.u32 36, %s1822_s13 }
  0x10   : > { %1297 = vmatpush3.bf16.msra.mxu1 %v1417_v6  ;;  %1262 = vmatprep.subr.bf16.mxu0 %v1482_v1  ;;  %s1557_s8 = scalar_lea.vmem %s1817_s0, %s1400_s28 }
  0x11   : > { %1298 = vmatprep.subr.bf16.mxu1 %v1482_v1  ;;  %v1428_v12 = vld [vmem:[%s1557_s8] sm:$0xff]   ;;  %v1429_v13 = vld [vmem:[%s1557_s8 + $0x8] sm:$0xff]   ;;  %v1589_v25 = vld [vmem:[%s1557_s8 + $0x10] sm:$0xff]   ;;  %s1784_s11 = scalar_lea.vmem %s1820_s3, %s1401_s7 }
  0x12   : > { %v244_v15 = vshll.u32 %v1428_v12, 16  ;;  %v242_v17 = vshrl.u32 %v1428_v12, 16  ;;  %v249_v19 = vshll.u32 %v1429_v13, 16  ;;  %v253_v28 = vshrl.u32 %v1429_v13, 16  ;;  %v1607_v34 = vld [vmem:[%s1557_s8 + $0x18] sm:$0xff]  }
  0x13   : > { %1263 = vmatpush3.bf16.msra.mxu0 %v1418_v7  ;;  %v257_v29 = vshll.u32 %v1589_v25, 16  ;;  %v261_v39 = vshrl.u32 %v1589_v25, 16  ;;  %v265_v40 = vshll.u32 %v1607_v34, 16  ;;  %v1628_v41 = vld [vmem:[%s1557_s8 + $0x20] sm:$0xf]  ;;  %v269_v55 = vshrl.u32 %v1607_v34, 16 }
  0x14   : > { %1299 = vmatpush3.bf16.msra.mxu1 %v1419_v8  ;;  %1264 = vmatprep.subr.bf16.mxu0 %v1482_v1  ;;  %v246_v18 = vrot.slane %v244_v15, 1  ;;  %v251_v24 = vrot.slane %v249_v19, 1  ;;  %v197_v42 = vld [vmem:[%s1557_s8 + $0x24] sm:$0x1]  ;;  %v1638_v47 = vld [vmem:[%s1557_s8 + $0x1c] sm:$0xff]   ;;  %v1445_v7 = vld [vmem:[%s1818_s1 + $0xb0] sm:$0xff]  }
  0x15   : > { %1300 = vmatprep.subr.bf16.mxu1 %v1482_v1  ;;  %v259_v33 = vrot.slane %v257_v29, 1  ;;  %v267_v44 = vrot.slane %v265_v40, 1  ;;  %v1111_v46 = vcombine.low %v1628_v41, %v197_v42  ;;  %v1646_v49 = vld [vmem:[%s1557_s8 + $0x24] sm:$0x1f]   ;;  %v607_v50 = vshll.u32 %v1638_v47, 16  ;;  %v1447_v8 = vld [vmem:[%s1818_s1 + $0xf0] sm:$0xff]  }
  0x16   : > { %v247_v23 = vor.u32 %v246_v18, %v242_v17  ;;  %v255_v32 = vor.u32 %v253_v28, %v251_v24  ;;  %v611_v51 = vshrl.u32 %v1638_v47, 16  ;;  %v615_v52 = vshll.u32 %v1646_v49, 16  ;;  %v531_v2 = vld [vmem:[%s1557_s8 + $0x4] sm:$0xf]  ;;  %v532_v3 = vld [vmem:[%s1557_s8 + $0x8] sm:$0xf] }
  0x17   : > { %1265 = vmatpush3.bf16.msra.mxu0 %v1420_v9  ;;  %v263_v43 = vor.u32 %v261_v39, %v259_v33  ;;  %v273_v56 = vshll.u32 %v1111_v46, 16  ;;  %v1660_v57 = vrot.slane %v607_v50, 1  ;;  %v271_v61 = vor.u32 %v269_v55, %v267_v44 }
  0x18   : > { %1301 = vmatpush3.bf16.msra.mxu1 %v1421_v10  ;;  %1266 = vmatprep.subr.bf16.mxu0 %v1482_v1  ;;  %v252_v26 = vsel %vm240_vm1, %v247_v23, %v251_v24  ;;  %v260_v38 = vsel %vm240_vm1, %v255_v32, %v259_v33  ;;  %v1663_v58 = vrot.slane %v615_v52, 1  ;;  %v1145_v6 = vcombine.low %v531_v2, %v532_v3  ;;  %v1451_v10 = vld [vmem:[%s1557_s8 + $0xc] sm:$0xff]   ;;  %v1453_v23 = vld [vmem:[%s1557_s8 + $0x14] sm:$0xff]  }
  0x19   : > { %1302 = vmatprep.subr.bf16.mxu1 %v1482_v1  ;;  %v268_v53 = vsel %vm240_vm1, %v263_v43, %v267_v44  ;;  %v613_v60 = vor.u32 %v611_v51, %v1660_v57  ;;  %v275_v62 = vrot.slane %v273_v56, 1  ;;  %v277_v9 = vshrl.u32 %v1111_v46, 16 }
  0x1a   : > { %v584_v17 = vshrl.u32 %v1145_v6, 16  ;;  %v591_v19 = vshll.u32 %v1451_v10, 16  ;;  %v599_v28 = vshll.u32 %v1453_v23, 16  ;;  %v781_v32 = vrot.slane %v1453_v23, 1 }
  0x1b   : > { %1267 = vmatpush3.bf16.msra.mxu0 %v1422_v11  ;;  %v1676_v0 = vsel %vm240_vm1, %v613_v60, %v1663_v58  ;;  %v276_v5 = vsel %vm240_vm1, %v271_v61, %v275_v62  ;;  %v586_v11 = vshll.u32 %v1145_v6, 16  ;;  %v279_v15 = vor.u32 %v277_v9, %v275_v62 }
  0x1c   : > { %1303 = vmatpush3.bf16.msra.mxu1 %v1423_v14  ;;  %1268 = vmatprep.subr.bf16.mxu0 %v1482_v1  ;;  %v756_v14 = vld [vmem:[%s1557_s8 + $0x4] sm:$0xe]  ;;  %v785_v40 = vrot.slane %v1646_v49, 1  ;;  %v619_v42 = vshrl.u32 %v1646_v49, 16 }
  0x1d   : > { %1304 = vmatprep.subr.bf16.mxu1 %v1482_v1  ;;  %v588_v18 = vrot.slane %v586_v11, 1 }
  0x1e   : > { %v621_v43 = vor.u32 %v619_v42, %v1663_v58 }
  0x1f   : > { %1269 = vmatpush3.bf16.msra.mxu0 %v1424_v16  ;;  %v1120_v16 = vcombine.low %v1628_v41, %v1628_v41 }
  0x20   : > { %1305 = vmatpush3.bf16.msra.mxu1 %v1425_v20  ;;  %1270 = vmatprep.subr.bf16.mxu0 %v1482_v1  ;;  %v1174_v20 = vcombine.low %v756_v14, %v532_v3 }
  0x21   : > { %1306 = vmatprep.subr.bf16.mxu1 %v1482_v1 }
  0x22   : > { %v778_v24 = vrot.slane %v1174_v20, 1 }
  0x23   : > { %1271 = vmatpush3.bf16.msra.mxu0 %v1426_v21  ;;  %v589_v21 = vor.u32 %v588_v18, %v584_v17 }
  0x24   : > { %1307 = vmatpush3.bf16.msra.mxu1 %v1427_v22  ;;  %1328 = vmatprep.subr.bf16.mxu0 %v1482_v1  ;;  %v593_v22 = vrot.slane %v591_v19, 1 }
  0x25   : > { %1364 = vmatprep.subr.bf16.mxu1 %v1482_v1 }
  0x26   : > { %1273 = vmatmul.mubr.bf16.vlgmr.msra.gmra.mrb[0].mxu0 %v252_v26  ;;  %v594_v26 = vsel %vm240_vm1, %v589_v21, %v593_v22 }
  0x27   : > { %1309 = vmatmul.mubr.bf16.vlgmr.msra.gmra.mrb[0].mxu1 %v1428_v12  ;;  %1329 = vmatpush3.bf16.msra.mxu0 %v1430_v27  ;;  %v1448_v12 = vld [vmem:[%s1818_s1 + $0xb8] sm:$0xff]   ;;  %v595_v27 = vshrl.u32 %v1451_v10, 16 }
  0x28   : > { %1365 = vmatpush3.bf16.msra.mxu1 %v1431_v30  ;;  %1330 = vmatprep.subr.bf16.mxu0 %v1482_v1 }
  0x29   : > { %1276 = vmatprep.mubr.msk.bf16.mxu0 %vm1483_vm0, %v1482_v1  ;;  %1312 = vmatprep.mubr.msk.bf16.mxu1 %vm1483_vm0, %v1482_v1  ;;  %v597_v30 = vor.u32 %v595_v27, %v593_v22 }
  0x2a   : > { %1366 = vmatprep.subr.bf16.mxu1 %v1482_v1 }
  0x2b   : > { %1331 = vmatpush3.bf16.msra.mxu0 %v1432_v31  ;;  %v601_v31 = vrot.slane %v599_v28, 1 }
  0x2c   : > { %1367 = vmatpush3.bf16.msra.mxu1 %v1434_v35  ;;  %1332 = vmatprep.subr.bf16.mxu0 %v1482_v1 }
  0x2d   : > { %1368 = vmatprep.subr.bf16.mxu1 %v1482_v1  ;;  %v602_v33 = vsel %vm240_vm1, %v597_v30, %v601_v31 }
  0x2e   : > { %1277 = vmatmul.mubr.bf16.gmra.mrb[4].mxu0 %v260_v38 }
  0x2f   : > { %1313 = vmatmul.mubr.bf16.gmra.mrb[4].mxu1 %v1429_v13  ;;  %1333 = vmatpush3.bf16.msra.mxu0 %v1435_v36  ;;  %v1449_v13 = vld [vmem:[%s1818_s1 + $0xf8] sm:$0xff]  }
  0x30   : > { %1369 = vmatpush3.bf16.msra.mxu1 %v1436_v37  ;;  %1280 = vmatprep.mubr.msk.bf16.mxu0 %vm1483_vm0, %v1482_v1  ;;  %v783_v37 = vrot.slane %v1638_v47, 1 }
  0x31   : > { %1316 = vmatprep.mubr.msk.bf16.mxu1 %vm1483_vm0, %v1482_v1  ;;  %1334 = vmatprep.subr.bf16.mxu0 %v1482_v1 }
  0x32   : > { %1370 = vmatprep.subr.bf16.mxu1 %v1482_v1  ;;  %v784_v39 = vsel %vm777_vm2, %v781_v32, %v783_v37  ;;  %v786_v41 = vsel %vm777_vm2, %v783_v37, %v785_v40 }
  0x33   : > { %1335 = vmatpush3.bf16.msra.mxu0 %v1438_v45 }
  0x34   : > { %1371 = vmatpush3.bf16.msra.mxu1 %v1439_v48  ;;  %1336 = vmatprep.subr.bf16.mxu0 %v1482_v1 }
  0x35   : > { %1372 = vmatprep.subr.bf16.mxu1 %v1482_v1 }
  0x36   : > { %1281 = vmatmul.mubr.bf16.gmra.mrb[8].mxu0 %v268_v53 }
  0x37   : > { %1317 = vmatmul.mubr.bf16.gmra.mrb[8].mxu1 %v1589_v25  ;;  %1337 = vmatpush3.bf16.msra.mxu0 %v1440_v54  ;;  %v779_v25 = vrot.slane %v1451_v10, 1 }
  0x38   : > { %1284 = vmatprep.mubr.msk.bf16.mxu0 %vm1483_vm0, %v1482_v1  ;;  %1320 = vmatprep.mubr.msk.bf16.mxu1 %vm1483_vm0, %v1482_v1 }
  0x39   : > { %1373 = vmatpush3.bf16.msra.mxu1 %v1441_v59  ;;  %1338 = vmatprep.subr.bf16.mxu0 %v1482_v1  ;;  %v780_v29 = vsel %vm777_vm2, %v778_v24, %v779_v25  ;;  %v782_v35 = vsel %vm777_vm2, %v779_v25, %v781_v32 }
  0x3a   : > { %1374 = vmatprep.subr.bf16.mxu1 %v1482_v1 }
  0x3b   : > { %1339 = vmatpush3.bf16.msra.mxu0 %v1443_v63 }
  0x3c   : > { %1340 = vmatprep.subr.bf16.mxu0 %v1482_v1 }
  0x3d   : > { %1375 = vmatpush3.bf16.msra.mxu1 %v1444_v4 }
  0x3e   : > { %1285 = vmatmul.mubr.bf16.gmra.mrb[12].mxu0 %v276_v5  ;;  %1376 = vmatprep.subr.bf16.mxu1 %v1482_v1 }
  0x3f   : > { %1321 = vmatmul.mubr.bf16.gmra.mrb[12].mxu1 %v1607_v34  ;;  %1288 = vmatprep.mubr.msk.bf16.mxu0 %vm1483_vm0, %v1482_v1  ;;  %v603_v34 = vshrl.u32 %v1453_v23, 16 }
  0x40   : > { %1324 = vmatprep.mubr.msk.bf16.mxu1 %vm1483_vm0, %v1482_v1  ;;  %1341 = vmatpush3.bf16.msra.mxu0 %v1445_v7 }
  0x41   : > { %1377 = vmatpush3.bf16.msra.mxu1 %v1447_v8  ;;  %1342 = vmatprep.subr.bf16.mxu0 %v1482_v1  ;;  %v605_v36 = vor.u32 %v603_v34, %v601_v31 }
  0x42   : > { %1378 = vmatprep.subr.bf16.mxu1 %v1482_v1 }
  0x43   : > { %v610_v38 = vsel %vm240_vm1, %v605_v36, %v1660_v57 }
  0x44   : > { %1343 = vmatpush3.bf16.msra.mxu0 %v1448_v12 }
  0x45   : > { %1379 = vmatpush3.bf16.msra.mxu1 %v1449_v13 }
  0x46   : > { %1289 = vmatmul.mubr.bf16.gmra.mrb[16].mxu0 %v279_v15 }
  0x47   : > { %1325 = vmatmul.mubr.bf16.gmra.mrb[16].mxu1 %v1120_v16  ;;  %1344 = vmatprep.mubr.msk.bf16.mxu0 %vm1483_vm0, %v1482_v1 }
  0x48   : > { %1380 = vmatprep.mubr.msk.bf16.mxu1 %vm1483_vm0, %v1482_v1 }
  0x4e   : > { %1345 = vmatmul.mubr.bf16.vlgmr.msra.gmra.mrb[20].mxu0 %v594_v26 }
  0x4f   : > { %1381 = vmatmul.mubr.bf16.vlgmr.msra.gmra.mrb[20].mxu1 %v780_v29  ;;  %1348 = vmatprep.mubr.msk.bf16.mxu0 %vm1483_vm0, %v1482_v1 }
  0x50   : > { %1384 = vmatprep.mubr.msk.bf16.mxu1 %vm1483_vm0, %v1482_v1 }
  0x56   : > { %1349 = vmatmul.mubr.bf16.gmra.mrb[24].mxu0 %v602_v33  ;;  %v1762_v33 = vld [vmem:[%s1819_s2] ss:$0 sm:$0xff] }
  0x57   : > { %1385 = vmatmul.mubr.bf16.gmra.mrb[24].mxu1 %v782_v35  ;;  %1352 = vmatprep.mubr.msk.bf16.mxu0 %vm1483_vm0, %v1482_v1 }
  0x58   : > { %1388 = vmatprep.mubr.msk.bf16.mxu1 %vm1483_vm0, %v1482_v1 }
  0x5e   : > { %1353 = vmatmul.mubr.bf16.gmra.mrb[28].mxu0 %v610_v38 }
  0x5f   : > { %1389 = vmatmul.mubr.bf16.gmra.mrb[28].mxu1 %v784_v39  ;;  %1356 = vmatprep.mubr.msk.bf16.mxu0 %vm1483_vm0, %v1482_v1 }
  0x60   : > { %1392 = vmatprep.mubr.msk.bf16.mxu1 %vm1483_vm0, %v1482_v1 }
  0x66   : > { %1357 = vmatmul.mubr.bf16.gmra.mrb[32].mxu0 %v1676_v0 }
  0x67   : > { %1393 = vmatmul.mubr.bf16.gmra.mrb[32].mxu1 %v786_v41  ;;  %1360 = vmatprep.mubr.msk.bf16.mxu0 %vm1483_vm0, %v1482_v1 }
  0x68   : > { %1396 = vmatprep.mubr.msk.bf16.mxu1 %vm1483_vm0, %v1482_v1 }
  0x6e   : > { %1361 = vmatmul.mubr.bf16.gmra.mrb[36].mxu0 %v621_v43 }
  0x6f   : > { %1397 = vmatmul.mubr.bf16.gmra.mrb[36].mxu1 %v785_v40 }
  0xf9   : > { %v367_v44 = vpop.f32.mrb[0].mxu0 }
  0xfa   : > { %v493_v45 = vpop.f32.mrb[0].mxu1  ;;  %v1274_v46 = vpop.f32.mrb[1].mxu0 }
  0xfb   : > { %v494_v47 = vadd.f32 %v493_v45, %v367_v44  ;;  %v1310_v48 = vpop.f32.mrb[1].mxu1  ;;  %v370_v50 = vpop.f32.mrb[2].mxu0 }
  0xfc   : > { %v496_v51 = vpop.f32.mrb[2].mxu1  ;;  %v1275_v52 = vpop.f32.mrb[3].mxu0 }
  0xfd   : > { %v497_v49 = vadd.f32 %v496_v51, %v370_v50  ;;  %v1311_v53 = vpop.f32.mrb[3].mxu1 }
 0x101   : > { %v375_v54 = vpop.f32.mrb[4].mxu0 }
 0x102   : > { %v501_v55 = vpop.f32.mrb[4].mxu1  ;;  %v1278_v56 = vpop.f32.mrb[5].mxu0 }
 0x103   : > { %v502_v57 = vadd.f32 %v501_v55, %v375_v54  ;;  %v1314_v59 = vpop.f32.mrb[5].mxu1  ;;  %v378_v1 = vpop.f32.mrb[6].mxu0 }
 0x104   : > { %v504_v60 = vpop.f32.mrb[6].mxu1  ;;  %v1279_v58 = vpop.f32.mrb[7].mxu0 }
 0x105   : > { %v505_v61 = vadd.f32 %v504_v60, %v378_v1  ;;  %v1315_v62 = vpop.f32.mrb[7].mxu1 }
 0x109   : > { %v383_v63 = vpop.f32.mrb[8].mxu0 }
 0x10a   : > { %v509_v0 = vpop.f32.mrb[8].mxu1  ;;  %v1282_v2 = vpop.f32.mrb[9].mxu0 }
 0x10b   : > { %v1749_v3 = vadd.f32 %v509_v0, %v383_v63  ;;  %v1318_v4 = vpop.f32.mrb[9].mxu1  ;;  %v386_v5 = vpop.f32.mrb[10].mxu0 }
 0x10c   : > { %v512_v6 = vpop.f32.mrb[10].mxu1  ;;  %v1283_v7 = vpop.f32.mrb[11].mxu0 }
 0x10d   : > { %v1751_v8 = vadd.f32 %v512_v6, %v386_v5  ;;  %v1319_v9 = vpop.f32.mrb[11].mxu1 }
 0x111   : > { %v391_v10 = vpop.f32.mrb[12].mxu0 }
 0x112   : > { %v517_v11 = vpop.f32.mrb[12].mxu1  ;;  %v1286_v12 = vpop.f32.mrb[13].mxu0 }
 0x113   : > { %v1753_v13 = vadd.f32 %v517_v11, %v391_v10  ;;  %v1322_v14 = vpop.f32.mrb[13].mxu1  ;;  %v394_v15 = vpop.f32.mrb[14].mxu0 }
 0x114   : > { %v520_v16 = vpop.f32.mrb[14].mxu1  ;;  %v1287_v17 = vpop.f32.mrb[15].mxu0 }
 0x115   : > { %v1755_v18 = vadd.f32 %v520_v16, %v394_v15  ;;  %v1323_v19 = vpop.f32.mrb[15].mxu1 }
 0x119   : > { %v399_v20 = vpop.f32.mrb[16].mxu0 }
 0x11a   : > { %v525_v21 = vpop.f32.mrb[16].mxu1  ;;  %v1290_v22 = vpop.f32.mrb[17].mxu0 }
 0x11b   : > { %v1757_v23 = vadd.f32 %v525_v21, %v399_v20  ;;  %v1326_v24 = vpop.f32.mrb[17].mxu1  ;;  %v402_v25 = vpop.f32.mrb[18].mxu0 }
 0x11c   : > { %v528_v26 = vpop.f32.mrb[18].mxu1  ;;  %v1291_v27 = vpop.f32.mrb[19].mxu0 }
 0x11d   : > { %v1327_v28 = vpop.f32.mrb[19].mxu1 }
 0x121   : > { %v709_v29 = vpop.f32.mrb[20].mxu0 }
 0x122   : > { %v747_v30 = vadd.f32 %v709_v29, %v494_v47  ;;  %v874_v31 = vpop.f32.mrb[20].mxu1  ;;  %v1346_v32 = vpop.f32.mrb[21].mxu0 }
 0x123   : > { %v1382_v34 = vpop.f32.mrb[21].mxu1  ;;  %v712_v35 = vpop.f32.mrb[22].mxu0 }
 0x124   : > { %v912_v36 = vadd.f32 %v874_v31, %v747_v30  ;;  %v748_v37 = vadd.f32 %v712_v35, %v497_v49  ;;  %v877_v38 = vpop.f32.mrb[22].mxu1  ;;  %v1347_v39 = vpop.f32.mrb[23].mxu0 }
 0x125   : > { %v1383_v40 = vpop.f32.mrb[23].mxu1 }
 0x126   : > { %v928_v41 = vadd.f32 %v1762_v33, %v912_v36  ;;  %v913_v42 = vadd.f32 %v877_v38, %v748_v37 }
 0x128   : > { %v937_v43 = vmul.f32 0.5, %v928_v41  ;;  %v929_v44 = vadd.f32 %v1762_v33, %v913_v42 }
 0x129   : > { %v717_v45 = vpop.f32.mrb[24].mxu0 }
 0x12a   : > { %1456 = vtanh.f32 %v937_v43  ;;  %v938_v46 = vmul.f32 0.5, %v929_v44  ;;  %v749_v47 = vadd.f32 %v717_v45, %v502_v57  ;;  %v882_v48 = vpop.f32.mrb[24].mxu1  ;;  %v1350_v50 = vpop.f32.mrb[25].mxu0 }
 0x12b   : > { %v1386_v51 = vpop.f32.mrb[25].mxu1  ;;  %v720_v52 = vpop.f32.mrb[26].mxu0 }
 0x12c   : > { %1458 = vtanh.f32 %v938_v46  ;;  %v914_v53 = vadd.f32 %v882_v48, %v749_v47  ;;  %v750_v49 = vadd.f32 %v720_v52, %v505_v61  ;;  %v885_v54 = vpop.f32.mrb[26].mxu1  ;;  %v1351_v55 = vpop.f32.mrb[27].mxu0 }
 0x12d   : > { %v1387_v56 = vpop.f32.mrb[27].mxu1 }
 0x12e   : > { %v930_v59 = vadd.f32 %v1762_v33, %v914_v53  ;;  %v915_v1 = vadd.f32 %v885_v54, %v750_v49 }
 0x130   : > { %v939_v60 = vmul.f32 0.5, %v930_v59  ;;  %v1768_v58 = vadd.f32 %v1762_v33, %v915_v1 }
 0x131   : > { %v725_v62 = vpop.f32.mrb[28].mxu0 }
 0x132   : > { %1460 = vtanh.f32 %v939_v60  ;;  %v940_v57 = vmul.f32 0.5, %v1768_v58  ;;  %v751_v63 = vadd.f32 %v725_v62, %v1749_v3  ;;  %v890_v0 = vpop.f32.mrb[28].mxu1  ;;  %v1354_v2 = vpop.f32.mrb[29].mxu0 }
 0x133   : > { %v1390_v61 = vpop.f32.mrb[29].mxu1  ;;  %v728_v4 = vpop.f32.mrb[30].mxu0 }
 0x134   : > { %v1457_v5 = vpop.eup %1456  ;;  %1462 = vtanh.f32 %v940_v57  ;;  %v916_v6 = vadd.f32 %v890_v0, %v751_v63  ;;  %v752_v7 = vadd.f32 %v728_v4, %v1751_v8  ;;  %v893_v9 = vpop.f32.mrb[30].mxu1 }
 0x135   : > { %v1355_v10 = vpop.f32.mrb[31].mxu0  ;;  %v955_v11 = vmul.f32 0.5, %v1457_v5  ;;  %v1391_v12 = vpop.f32.mrb[31].mxu1 }
 0x136   : > { %v1459_v14 = vpop.eup %1458  ;;  %v1775_v15 = vadd.f32 %v1762_v33, %v916_v6  ;;  %v917_v16 = vadd.f32 %v893_v9, %v752_v7 }
 0x137   : > { %v964_v3 = vadd.f32 0.5, %v955_v11  ;;  %v956_v17 = vmul.f32 0.5, %v1459_v14 }
 0x138   : > { %v941_v19 = vmul.f32 0.5, %v1775_v15  ;;  %v1779_v20 = vadd.f32 %v1762_v33, %v917_v16 }
 0x139   : > { %v973_v21 = vmul.f32 %v964_v3, %v928_v41  ;;  %v965_v22 = vadd.f32 0.5, %v956_v17  ;;  %v733_v8 = vpop.f32.mrb[32].mxu0 }
 0x13a   : > { %1464 = vtanh.f32 %v941_v19  ;;  %v942_v24 = vmul.f32 0.5, %v1779_v20  ;;  %v753_v25 = vadd.f32 %v733_v8, %v1753_v13  ;;  %v898_v26 = vpop.f32.mrb[32].mxu1  ;;  %v1358_v27 = vpop.f32.mrb[33].mxu0 }
 0x13b   : > { %v1195_v28 = vpack.c.bf16 %v973_v21, %v973_v21  ;;  %v974_v29 = vmul.f32 %v965_v22, %v929_v44  ;;  %v1394_v30 = vpop.f32.mrb[33].mxu1  ;;  %v736_v31 = vpop.f32.mrb[34].mxu0 }
 0x13c   : > { %v1461_v32 = vpop.eup %1460  ;;  %1466 = vtanh.f32 %v942_v24  ;;  %v918_v34 = vadd.f32 %v898_v26, %v753_v25  ;;  %v754_v35 = vadd.f32 %v736_v31, %v1755_v18  ;;  %v901_v36 = vpop.f32.mrb[34].mxu1 }
 0x13d   : > { %v1359_v37 = vpop.f32.mrb[35].mxu0  ;;  %1020 = vst.msk [vmem:[%s1784_s11] sm:$0xf] %vm1019_vm3, %v1195_v28  ;;  %v1196_v38 = vpack.c.bf16 %v974_v29, %v974_v29  ;;  %v957_v39 = vmul.f32 0.5, %v1461_v32  ;;  %v1395_v40 = vpop.f32.mrb[35].mxu1 }
 0x13e   : > { %v1463_v13 = vpop.eup %1462  ;;  %v934_v41 = vadd.f32 %v1762_v33, %v918_v34  ;;  %v919_v42 = vadd.f32 %v901_v36, %v754_v35 }
 0x13f   : > { %1021 = vst.msk [vmem:[%s1784_s11 + $0x4] sm:$0xf] %vm1019_vm3, %v1196_v38  ;;  %v966_v43 = vadd.f32 0.5, %v957_v39  ;;  %v958_v44 = vmul.f32 0.5, %v1463_v13 }
 0x140   : > { %v943_v45 = vmul.f32 0.5, %v934_v41  ;;  %v935_v46 = vadd.f32 %v1762_v33, %v919_v42 }
 0x141   : > { %v975_v47 = vmul.f32 %v966_v43, %v930_v59  ;;  %v967_v18 = vadd.f32 0.5, %v958_v44  ;;  %v741_v48 = vpop.f32.mrb[36].mxu0 }
 0x142   : > { %1468 = vtanh.f32 %v943_v45  ;;  %v944_v50 = vmul.f32 0.5, %v935_v46  ;;  %v755_v51 = vadd.f32 %v741_v48, %v1757_v23  ;;  %v906_v52 = vpop.f32.mrb[36].mxu1  ;;  %v1362_v53 = vpop.f32.mrb[37].mxu0 }
 0x143   : > { %v1197_v49 = vpack.c.bf16 %v975_v47, %v975_v47  ;;  %v976_v54 = vmul.f32 %v967_v18, %v1768_v58  ;;  %v1398_v55 = vpop.f32.mrb[37].mxu1  ;;  %v744_v56 = vpop.f32.mrb[38].mxu0 }
 0x144   : > { %v1465_v1 = vpop.eup %1464  ;;  %1470 = vtanh.f32 %v944_v50  ;;  %v920_v60 = vadd.f32 %v906_v52, %v755_v51  ;;  %v909_v62 = vpop.f32.mrb[38].mxu1 }
 0x145   : > { %v1363_v59 = vpop.f32.mrb[39].mxu0  ;;  %1022 = vst.msk [vmem:[%s1784_s11 + $0x8] sm:$0xf] %vm1019_vm3, %v1197_v49  ;;  %v1198_v57 = vpack.c.bf16 %v976_v54, %v976_v54  ;;  %v959_v63 = vmul.f32 0.5, %v1465_v1  ;;  %v1399_v0 = vpop.f32.mrb[39].mxu1 }
 0x146   : > { %v1467_v23 = vpop.eup %1466  ;;  %v936_v2 = vadd.f32 %v1762_v33, %v920_v60 }
 0x147   : > { %1023 = vst.msk [vmem:[%s1784_s11 + $0xc] sm:$0xf] %vm1019_vm3, %v1198_v57  ;;  %v968_v58 = vadd.f32 0.5, %v959_v63  ;;  %v960_v61 = vmul.f32 0.5, %v1467_v23 }
 0x148   : > { %v945_v4 = vmul.f32 0.5, %v936_v2 }
 0x149   : > { %v977_v5 = vmul.f32 %v968_v58, %v1775_v15  ;;  %v969_v6 = vadd.f32 0.5, %v960_v61 }
 0x14a   : > { %1472 = vtanh.f32 %v945_v4 }
 0x14b   : > { %v1199_v7 = vpack.c.bf16 %v977_v5, %v977_v5  ;;  %v978_v9 = vmul.f32 %v969_v6, %v1779_v20 }
 0x14c   : > { %v1469_v10 = vpop.eup %1468 }
 0x14d   : > { %1024 = vst.msk [vmem:[%s1784_s11 + $0x10] sm:$0xf] %vm1019_vm3, %v1199_v7  ;;  %v1200_v11 = vpack.c.bf16 %v978_v9, %v978_v9  ;;  %v961_v12 = vmul.f32 0.5, %v1469_v10 }
 0x14e   : > { %v1471_v33 = vpop.eup %1470 }
 0x14f   : > { %1025 = vst.msk [vmem:[%s1784_s11 + $0x14] sm:$0xf] %vm1019_vm3, %v1200_v11  ;;  %v970_v14 = vadd.f32 0.5, %v961_v12  ;;  %v962_v16 = vmul.f32 0.5, %v1471_v33 }
 0x151   : > { %v979_v3 = vmul.f32 %v970_v14, %v934_v41  ;;  %v971_v15 = vadd.f32 0.5, %v962_v16 }
 0x153   : > { %v1201_v17 = vpack.c.bf16 %v979_v3, %v979_v3  ;;  %v980_v19 = vmul.f32 %v971_v15, %v935_v46 }
 0x154   : > { %v1473_v21 = vpop.eup %1472 }
 0x155   : > { %1026 = vst.msk [vmem:[%s1784_s11 + $0x18] sm:$0xf] %vm1019_vm3, %v1201_v17  ;;  %v1202_v20 = vpack.c.bf16 %v980_v19, %v980_v19  ;;  %v963_v22 = vmul.f32 0.5, %v1473_v21 }
 0x157   : > { %1027 = vst.msk [vmem:[%s1784_s11 + $0x1c] sm:$0xf] %vm1019_vm3, %v1202_v20  ;;  %v972_v8 = vadd.f32 0.5, %v963_v22 }
 0x159   : > { %v981_v24 = vmul.f32 %v972_v8, %v936_v2 }
 0x15b   : > { %v1203_v25 = vpack.c.bf16 %v981_v24, %v981_v24 }
 0x15d   : > { %1028 = vst.msk [vmem:[%s1784_s11 + $0x20] sm:$0xf] %vm1019_vm3, %v1203_v25 }
 0x15e PF: > { %s13_s12 = sadd.s32 1, %s1480_s12  }
 0x15f   : > { %p10_p4 = scmp.ge.s32.totalorder %s13_s12, 4  }
 0x161   :  { %12 = sbr.rel (!%p10_p4) target bundleno = 1 (0x1), region = 65 }

// kernel: variational_encoder_forward.6
= control target key start
LH: loop header
LB: loop body
LE: loop exit
PB: predicated region body
PF: predicated region fallthrough
CT: control target
= control target key end

     0   :  { %s1111_s12 = smov 0   ;;  %s1241_s0 = inlined_call_operand.vmem [shape: bf16[2,30,128], index: 0, kind: input, shape index: {}]   ;;  %s1242_s1 = inlined_call_operand.vmem [shape: bf16[4,128,64], index: 1, kind: input, shape index: {}]   ;;  %s1243_s2 = inlined_call_operand.vmem [shape: f32[1,64], index: 2, kind: input, shape index: {}]   ;;  %s1244_s3 = inlined_call_operand.vmem [shape: bf16[2,20,64], index: 3, kind: output, shape index: {}]  }
   0x1 LB: > { %s806_s13 = sadd.s32 4294967295, %s1089_s12   ;;  %p810_p0 = scmp.ge.s32.totalorder %s1089_s12, 1  ;;  %s1089_s12 = sphi %s1111_s12, %s13_s12  }
   0x2   : > { %p137_p1 = scmp.lt.s32.totalorder %s1089_s12, 3 }
   0x4   : > { %p138_p2 = pnand %p810_p0, %p137_p1 }
   0x5   : > { %v1039_v0 = vld [vmem:[%s1242_s1 + $0x40] sm:$0xff] (!%p138_p2)   ;;  %v1041_v2 = vld [vmem:[%s1242_s1 + $0x48] sm:$0xff] (!%p138_p2)   ;;  %p161_p3 = scmp.lt.s32.totalorder (!%p138_p2), %s806_s13, 1  ;;  %v1043_v4 = vld [vmem:[%s1242_s1 + $0x50] sm:$0xff] (!%p138_p2)   ;;  %vm217_vm0 = vsmask.f32 (!%p138_p2), 7424 }
   0x6   : > { %141 = sbr.rel (%p138_p2) target bundleno = 313 (0x139), region = 32  ;;  %v1040_v1 = vld [vmem:[%s1242_s1] sm:$0xff] (!%p138_p2)   ;;  %950 = vmatprep.subr.bf16.mxu0 (!%p138_p2), %v1039_v0  ;;  %v1042_v3 = vld [vmem:[%s1242_s1 + $0x8] sm:$0xff] (!%p138_p2)   ;;  %v1044_v5 = vld [vmem:[%s1242_s1 + $0x10] sm:$0xff] (!%p138_p2)   ;;  %vm603_vm1 = vcmask (!%p138_p2), 1044480   ;;  %vm749_vm3 = vcmask (!%p138_p2), 517120  }
   0x7   : > { %970 = vmatprep.subr.bf16.mxu1 (!%p138_p2), %v1040_v1  ;;  %951 = vmatpush3.bf16.msra.mxu0 (!%p138_p2), %v1039_v0  ;;  %v1045_v6 = vld [vmem:[%s1242_s1 + $0x58] sm:$0xff] (!%p138_p2)   ;;  %v1047_v8 = vld [vmem:[%s1242_s1 + $0x60] sm:$0xff] (!%p138_p2)   ;;  %v1049_v10 = vld [vmem:[%s1242_s1 + $0x68] sm:$0xff] (!%p138_p2)   ;;  %vm463_vm2 = vsmask.f32 (!%p138_p2), 5376  ;;  %vm746_vm4 = vcmask (!%p138_p2), 519168  }
   0x8   : > { %971 = vmatpush3.bf16.msra.mxu1 (!%p138_p2), %v1040_v1  ;;  %952 = vmatprep.subr.bf16.mxu0 (!%p138_p2), %v1041_v2  ;;  %v1046_v7 = vld [vmem:[%s1242_s1 + $0x18] sm:$0xff] (!%p138_p2)   ;;  %v1048_v9 = vld [vmem:[%s1242_s1 + $0x20] sm:$0xff] (!%p138_p2)   ;;  %v1050_v11 = vld [vmem:[%s1242_s1 + $0x28] sm:$0xff] (!%p138_p2)  }
   0x9   : > { %972 = vmatprep.subr.bf16.mxu1 (!%p138_p2), %v1042_v3  ;;  %v1051_v14 = vld [vmem:[%s1242_s1 + $0x70] sm:$0xff] (!%p138_p2)   ;;  %v1053_v22 = vld [vmem:[%s1242_s1 + $0x78] sm:$0xff] (!%p138_p2)   ;;  %v1058_v26 = vld [vmem:[%s1242_s1 + $0x80] sm:$0xff] (!%p138_p2)  }
   0xa   : > { %v1052_v15 = vld [vmem:[%s1242_s1 + $0x30] sm:$0xff] (!%p138_p2)   ;;  %v1054_v23 = vld [vmem:[%s1242_s1 + $0x38] sm:$0xff] (!%p138_p2)   ;;  %v1059_v28 = vld [vmem:[%s1242_s1 + $0xc0] sm:$0xff] (!%p138_p2)  }
   0xb   : > { %953 = vmatpush3.bf16.msra.mxu0 (!%p138_p2), %v1041_v2  ;;  %v1060_v30 = vld [vmem:[%s1242_s1 + $0x88] sm:$0xff] (!%p138_p2)   ;;  %v1062_v32 = vld [vmem:[%s1242_s1 + $0x90] sm:$0xff] (!%p138_p2)   ;;  %v1064_v45 = vld [vmem:[%s1242_s1 + $0x98] sm:$0xff] (!%p138_p2)  }
   0xc   : > { %973 = vmatpush3.bf16.msra.mxu1 (!%p138_p2), %v1042_v3  ;;  %954 = vmatprep.subr.bf16.mxu0 (!%p138_p2), %v1043_v4  ;;  %v1061_v31 = vld [vmem:[%s1242_s1 + $0xc8] sm:$0xff] (!%p138_p2)   ;;  %v1063_v37 = vld [vmem:[%s1242_s1 + $0xd0] sm:$0xff] (!%p138_p2)   ;;  %v1065_v50 = vld [vmem:[%s1242_s1 + $0xd8] sm:$0xff] (!%p138_p2)  }
   0xd   : > { %s1246_s13 = smov (!%p161_p3, %s806_s13), 1  ;;  %974 = vmatprep.subr.bf16.mxu1 %v1044_v5  ;;  %v1066_v55 = vld [vmem:[%s1242_s1 + $0xa0] sm:$0xff]   ;;  %v1068_v58 = vld [vmem:[%s1242_s1 + $0xa8] sm:$0xff]   ;;  %v1070_v60 = vld [vmem:[%s1242_s1 + $0xb0] sm:$0xff]  }
   0xe   : > { %s906_s30 = sshll.u32 %s1246_s13, 4  ;;  %v1067_v57 = vld [vmem:[%s1242_s1 + $0xe0] sm:$0xff]   ;;  %v1069_v59 = vld [vmem:[%s1242_s1 + $0xe8] sm:$0xff]   ;;  %v1071_v61 = vld [vmem:[%s1242_s1 + $0xf0] sm:$0xff]   ;;  %s1030_s7 = smul.u32 12, %s1246_s13 }
   0xf   : > { %955 = vmatpush3.bf16.msra.mxu0 %v1043_v4  ;;  %s1155_s10 = scalar_lea.vmem %s1241_s0, %s906_s30  ;;  %v1072_v62 = vld [vmem:[%s1242_s1 + $0xb8] sm:$0xff]  }
  0x10   : > { %975 = vmatpush3.bf16.msra.mxu1 %v1044_v5  ;;  %956 = vmatprep.subr.bf16.mxu0 %v1045_v6  ;;  %v1055_v12 = vld [vmem:[%s1155_s10] sm:$0xff]   ;;  %v1056_v13 = vld [vmem:[%s1155_s10 + $0x8] ss:$0 sps:$4 sm:$0x77]   ;;  %v1073_v63 = vld [vmem:[%s1242_s1 + $0xf8] sm:$0xff]   ;;  %s170_s11 = scalar_lea.vmem %s1244_s3, %s1030_s7 }
  0x11   : > { %976 = vmatprep.subr.bf16.mxu1 %v1046_v7  ;;  %v219_v16 = vshrl.u32 %v1055_v12, 16  ;;  %v221_v17 = vshll.u32 %v1055_v12, 16  ;;  %v226_v18 = vshll.u32 %v1056_v13, 16  ;;  %986 = vmatprep.mubr.bf16.mxu1 %v1055_v12  ;;  %v230_v25 = vshrl.u32 %v1056_v13, 16  ;;  %v432_v33 = vld [vmem:[%s1155_s10] sm:$0xc] }
  0x12   : > { %v1057_v27 = vld [vmem:[%s1155_s10 + $0x8] ss:$0 sps:$4 sm:$0x33]   ;;  %v433_v34 = vld [vmem:[%s1155_s10 + $0x4] sm:$0xf] }
  0x13   : > { %957 = vmatpush3.bf16.msra.mxu0 %v1045_v6  ;;  %v223_v19 = vrot.slane %v221_v17, 1  ;;  %v228_v20 = vrot.slane %v226_v18, 1  ;;  %v865_v35 = vcombine.low %v432_v33, %v433_v34  ;;  %v1075_v36 = vld [vmem:[%s1155_s10 + $0x8] sm:$0x1f]   ;;  %v582_v38 = vld [vmem:[%s1155_s10] sm:$0x8] }
  0x14   : > { %977 = vmatpush3.bf16.msra.mxu1 %v1046_v7  ;;  %958 = vmatprep.subr.bf16.mxu0 %v1047_v8  ;;  %v473_v41 = vshrl.u32 %v1075_v36, 16  ;;  %v476_v42 = vshll.u32 %v1075_v36, 16  ;;  %v891_v43 = vcombine.low %v582_v38, %v433_v34  ;;  %v605_v44 = vrot.slane %v1075_v36, 3 }
  0x15   : > { %978 = vmatprep.subr.bf16.mxu1 %v1048_v9  ;;  %v224_v21 = vor.u32 %v223_v19, %v219_v16  ;;  %v232_v29 = vor.u32 %v230_v25, %v228_v20  ;;  %v465_v39 = vshrl.u32 %v865_v35, 16  ;;  %v468_v40 = vshll.u32 %v865_v35, 16 }
  0x16   : > { %v475_v48 = vrot.slane %v473_v41, 2  ;;  %v478_v49 = vrot.slane %v476_v42, 3  ;;  %v604_v51 = vrot.slane %v891_v43, 3 }
  0x17   : > { %959 = vmatpush3.bf16.msra.mxu0 %v1047_v8  ;;  %v229_v24 = vsel %vm217_vm0, %v224_v21, %v228_v20  ;;  %v467_v46 = vrot.slane %v465_v39, 2  ;;  %v470_v47 = vrot.slane %v468_v40, 3 }
  0x18   : > { %979 = vmatpush3.bf16.msra.mxu1 %v1048_v9  ;;  %960 = vmatprep.subr.bf16.mxu0 %v1049_v10  ;;  %v479_v53 = vor.u32 %v478_v49, %v475_v48  ;;  %v606_v54 = vsel %vm603_vm1, %v604_v51, %v605_v44 }
  0x19   : > { %980 = vmatprep.subr.bf16.mxu1 %v1050_v11  ;;  %966 = vmatprep.mubr.bf16.mxu0 %v229_v24  ;;  %v471_v52 = vor.u32 %v470_v47, %v467_v46 }
  0x1b   : > { %961 = vmatpush3.bf16.msra.mxu0 %v1049_v10  ;;  %v480_v56 = vsel %vm463_vm2, %v471_v52, %v479_v53 }
  0x1c   : > { %981 = vmatpush3.bf16.msra.mxu1 %v1050_v11  ;;  %962 = vmatprep.subr.bf16.mxu0 %v1051_v14 }
  0x1d   : > { %982 = vmatprep.subr.bf16.mxu1 %v1052_v15 }
  0x1f   : > { %963 = vmatpush3.bf16.msra.mxu0 %v1051_v14 }
  0x20   : > { %983 = vmatpush3.bf16.msra.mxu1 %v1052_v15  ;;  %964 = vmatprep.subr.bf16.mxu0 %v1053_v22  ;;  %v900_v15 = vld [vmem:[%s1243_s2] ss:$0 sm:$0xff] }
  0x21   : > { %984 = vmatprep.subr.bf16.mxu1 %v1054_v23 }
  0x23   : > { %965 = vmatpush3.bf16.msra.mxu0 %v1053_v22 }
  0x24   : > { %985 = vmatpush3.bf16.msra.mxu1 %v1054_v23  ;;  %990 = vmatprep.subr.bf16.mxu0 %v1058_v26 }
  0x25   : > { %1010 = vmatprep.subr.bf16.mxu1 %v1059_v28 }
  0x26   : > { %967 = vmatmul.mubr.bf16.vlgmr.msra.gmra.mrb[0].mxu0 %v232_v29 }
  0x27   : > { %987 = vmatmul.mubr.bf16.vlgmr.msra.gmra.mrb[0].mxu1 %v1057_v27  ;;  %991 = vmatpush3.bf16.msra.mxu0 %v1058_v26 }
  0x28   : > { %1011 = vmatpush3.bf16.msra.mxu1 %v1059_v28  ;;  %992 = vmatprep.subr.bf16.mxu0 %v1060_v30 }
  0x29   : > { %1012 = vmatprep.subr.bf16.mxu1 %v1061_v31  ;;  %1006 = vmatprep.mubr.bf16.mxu0 %v480_v56 }
  0x2a   : > { %1026 = vmatprep.mubr.bf16.mxu1 %v606_v54 }
  0x2b   : > { %993 = vmatpush3.bf16.msra.mxu0 %v1060_v30 }
  0x2c   : > { %1013 = vmatpush3.bf16.msra.mxu1 %v1061_v31  ;;  %994 = vmatprep.subr.bf16.mxu0 %v1062_v32 }
  0x2d   : > { %1014 = vmatprep.subr.bf16.mxu1 %v1063_v37 }
  0x2f   : > { %995 = vmatpush3.bf16.msra.mxu0 %v1062_v32 }
  0x30   : > { %1015 = vmatpush3.bf16.msra.mxu1 %v1063_v37  ;;  %996 = vmatprep.subr.bf16.mxu0 %v1064_v45 }
  0x31   : > { %1016 = vmatprep.subr.bf16.mxu1 %v1065_v50 }
  0x33   : > { %997 = vmatpush3.bf16.msra.mxu0 %v1064_v45 }
  0x34   : > { %1017 = vmatpush3.bf16.msra.mxu1 %v1065_v50  ;;  %998 = vmatprep.subr.bf16.mxu0 %v1066_v55 }
  0x35   : > { %1018 = vmatprep.subr.bf16.mxu1 %v1067_v57 }
  0x37   : > { %999 = vmatpush3.bf16.msra.mxu0 %v1066_v55 }
  0x38   : > { %1019 = vmatpush3.bf16.msra.mxu1 %v1067_v57  ;;  %1000 = vmatprep.subr.bf16.mxu0 %v1068_v58 }
  0x39   : > { %1020 = vmatprep.subr.bf16.mxu1 %v1069_v59 }
  0x3b   : > { %1001 = vmatpush3.bf16.msra.mxu0 %v1068_v58 }
  0x3c   : > { %1021 = vmatpush3.bf16.msra.mxu1 %v1069_v59  ;;  %1002 = vmatprep.subr.bf16.mxu0 %v1070_v60 }
  0x3d   : > { %1022 = vmatprep.subr.bf16.mxu1 %v1071_v61 }
  0x3f   : > { %1003 = vmatpush3.bf16.msra.mxu0 %v1070_v60 }
  0x40   : > { %1023 = vmatpush3.bf16.msra.mxu1 %v1071_v61  ;;  %1004 = vmatprep.subr.bf16.mxu0 %v1072_v62 }
  0x41   : > { %1024 = vmatprep.subr.bf16.mxu1 %v1073_v63 }
  0x43   : > { %1005 = vmatpush3.bf16.msra.mxu0 %v1072_v62 }
  0x44   : > { %1025 = vmatpush3.bf16.msra.mxu1 %v1073_v63 }
  0x46   : > { %1007 = vmatmul.mubr.bf16.vlgmr.msra.gmra.mrb[4].mxu0 %v479_v53 }
  0x47   : > { %1027 = vmatmul.mubr.bf16.vlgmr.msra.gmra.mrb[4].mxu1 %v605_v44 }
  0xf9   : > { %v968_v0 = vpop.f32.mrb[0].mxu0 }
  0xfa   : > { %v988_v1 = vpop.f32.mrb[0].mxu1  ;;  %v317_v2 = vpop.f32.mrb[1].mxu0 }
  0xfb   : > { %v427_v3 = vadd.f32 %v988_v1, %v968_v0  ;;  %v418_v4 = vpop.f32.mrb[1].mxu1  ;;  %v969_v5 = vpop.f32.mrb[2].mxu0 }
  0xfc   : > { %v419_v6 = vadd.f32 %v418_v4, %v317_v2  ;;  %v989_v7 = vpop.f32.mrb[2].mxu1  ;;  %v320_v8 = vpop.f32.mrb[3].mxu0 }
  0xfd   : > { %v421_v9 = vpop.f32.mrb[3].mxu1 }
  0xfe   : > { %v422_v10 = vadd.f32 %v421_v9, %v320_v8 }
 0x119   : > { %v1008_v11 = vpop.f32.mrb[4].mxu0 }
 0x11a   : > { %v581_v12 = vadd.f32 %v1008_v11, %v427_v3  ;;  %v1028_v13 = vpop.f32.mrb[4].mxu1  ;;  %v565_v14 = vpop.f32.mrb[5].mxu0 }
 0x11b   : > { %v579_v16 = vadd.f32 %v565_v14, %v419_v6  ;;  %v691_v17 = vpop.f32.mrb[5].mxu1  ;;  %v1009_v18 = vpop.f32.mrb[6].mxu0 }
 0x11c   : > { %v707_v19 = vadd.f32 %v1028_v13, %v581_v12  ;;  %v1029_v20 = vpop.f32.mrb[6].mxu1  ;;  %v568_v21 = vpop.f32.mrb[7].mxu0 }
 0x11d   : > { %v705_v22 = vadd.f32 %v691_v17, %v579_v16  ;;  %v580_v23 = vadd.f32 %v568_v21, %v422_v10  ;;  %v694_v24 = vpop.f32.mrb[7].mxu1 }
 0x11e   : > { %v717_v25 = vadd.f32 %v900_v15, %v707_v19 }
 0x11f   : > { %v715_v26 = vadd.f32 %v900_v15, %v705_v22  ;;  %v706_v27 = vadd.f32 %v694_v24, %v580_v23 }
 0x120   : > { %v720_v28 = vmul.f32 0.5, %v717_v25 }
 0x121   : > { %v718_v29 = vmul.f32 0.5, %v715_v26  ;;  %v716_v30 = vadd.f32 %v900_v15, %v706_v27 }
 0x122   : > { %1077 = vtanh.f32 %v720_v28 }
 0x123   : > { %1079 = vtanh.f32 %v718_v29  ;;  %v719_v31 = vmul.f32 0.5, %v716_v30 }
 0x125   : > { %1081 = vtanh.f32 %v719_v31 }
 0x12c   : > { %v1078_v32 = vpop.eup %1077 }
 0x12d   : > { %v1080_v33 = vpop.eup %1079  ;;  %v726_v34 = vmul.f32 0.5, %v1078_v32 }
 0x12e   : > { %v724_v35 = vmul.f32 0.5, %v1080_v33 }
 0x12f   : > { %v1082_v36 = vpop.eup %1081  ;;  %v729_v37 = vadd.f32 0.5, %v726_v34 }
 0x130   : > { %v727_v38 = vadd.f32 0.5, %v724_v35  ;;  %v725_v39 = vmul.f32 0.5, %v1082_v36 }
 0x131   : > { %v732_v40 = vmul.f32 %v729_v37, %v717_v25 }
 0x132   : > { %v730_v41 = vmul.f32 %v727_v38, %v715_v26  ;;  %v728_v42 = vadd.f32 0.5, %v725_v39 }
 0x133   : > { %v909_v43 = vpack.c.bf16 %v732_v40, %v732_v40 }
 0x134   : > { %v907_v44 = vpack.c.bf16 %v730_v41, %v730_v41  ;;  %v731_v45 = vmul.f32 %v728_v42, %v716_v30 }
 0x135   : > { %750 = vst.msk [vmem:[%s170_s11 + $0x8] sm:$0x3] %vm749_vm3, %v909_v43 }
 0x136   : > { %747 = vst.msk [vmem:[%s170_s11] sm:$0xf] %vm746_vm4, %v907_v44  ;;  %v908_v46 = vpack.c.bf16 %v731_v45, %v731_v45 }
 0x138   : > { %748 = vst.msk [vmem:[%s170_s11 + $0x4] sm:$0xf] %vm746_vm4, %v908_v46 }
 0x139 PF: > { %s13_s12 = sadd.s32 1, %s1089_s12  }
 0x13a   : > { %p10_p4 = scmp.ge.s32.totalorder %s13_s12, 4  }
 0x13c   :  { %12 = sbr.rel (!%p10_p4) target bundleno = 1 (0x1), region = 65 }

// kernel: variational_encoder_forward.7
= control target key start
LH: loop header
LB: loop body
LE: loop exit
PB: predicated region body
PF: predicated region fallthrough
CT: control target
= control target key end

     0   :  { %vm161_vm0 = vcmask 523264   ;;  %vm121_vm1 = vsmask.f32 7424  ;;  %vm298_vm2 = vcmask 1046528   ;;  %vm391_vm3 = vcmask 1044480   ;;  %s2398_s10 = smov 124   ;;  %s3162_s1 = inlined_call_operand.vmem [shape: bf16[9,64,8], index: 1, kind: input, shape index: {}]   ;;  %s3163_s0 = inlined_call_operand.vmem [shape: bf16[2,42,64], index: 0, kind: input, shape index: {}]   ;;  %s3164_s4 = inlined_call_operand.vmem [shape: f32[24,1], index: 4, kind: input, shape index: {}]   ;;  %s3165_s2 = inlined_call_operand.vmem [shape: f32[1,8], index: 2, kind: input, shape index: {}]   ;;  %s3166_s3 = inlined_call_operand.vmem [shape: f32[2,24,4], index: 3, kind: input, shape index: {}]   ;;  %s3167_s5 = inlined_call_operand.vmem [shape: f32[2,24,4], index: 5, kind: output, shape index: {0}]   ;;  %s3168_s6 = inlined_call_operand.vmem [shape: f32[2,8,128], index: 6, kind: output, shape index: {1}]  }
   0x1   :  { %v2437_v0 = vld [vmem:[%s3162_s1 + $0x20] sm:$0xff]   ;;  %v2448_v2 = vld [vmem:[%s3162_s1 + $0x28] sm:$0xff]   ;;  %v2462_v4 = vld [vmem:[%s3162_s1 + $0x30] sm:$0xff]   ;;  %vm480_vm4 = vsmask.f32 4352  ;;  %vm676_vm5 = vcmask 1045504  }
   0x2   :  { %v2442_v1 = vld [vmem:[%s3162_s1] sm:$0xff]   ;;  %2098 = vmatprep.subr.bf16.mxu0 %v2437_v0  ;;  %v2455_v3 = vld [vmem:[%s3162_s1 + $0x8] sm:$0xff]   ;;  %v2468_v5 = vld [vmem:[%s3162_s1 + $0x10] sm:$0xff]   ;;  %vm765_vm6 = vsmask.f32 5376  ;;  %vm991_vm7 = vcmask 31744  }
   0x3   :  { %2110 = vmatprep.subr.bf16.mxu1 %v2442_v1  ;;  %2099 = vmatpush3.bf16.msra.mxu0 %v2437_v0  ;;  %v2473_v6 = vld [vmem:[%s3162_s1 + $0x38] sm:$0xff]   ;;  %v107_v8 = vld [vmem:[%s3163_s0] sm:$0xf]  ;;  %v2489_v9 = vld [vmem:[%s3163_s0 + $0x4] sm:$0xf] }
   0x4   :  { %2111 = vmatpush3.bf16.msra.mxu1 %v2442_v1  ;;  %2100 = vmatprep.subr.bf16.mxu0 %v2448_v2  ;;  %v2479_v7 = vld [vmem:[%s3162_s1 + $0x18] sm:$0xff]   ;;  %v2494_v10 = vld [vmem:[%s3163_s0 + $0x8] sm:$0xf]  ;;  %v110_v11 = vld [vmem:[%s3163_s0 + $0xc] sm:$0x1]  ;;  %v1870_v12 = vcombine.low %v107_v8, %v2489_v9 }
   0x5   :  { %2112 = vmatprep.subr.bf16.mxu1 %v2455_v3  ;;  %v2502_v13 = vcombine.low %v2494_v10, %v110_v11  ;;  %v2509_v16 = vld [vmem:[%s3162_s1 + $0x40] sm:$0xff]   ;;  %v1878_v23 = vcombine.low %v2494_v10, %v2494_v10  ;;  %v2529_v25 = vld [vmem:[%s3162_s1 + $0x48] sm:$0xff]   ;;  %v2561_v36 = vld [vmem:[%s3162_s1 + $0x50] sm:$0xff]   ;;  %v1907_v60 = vcombine.low %v2489_v9, %v2494_v10 }
   0x6   :  { %v123_v14 = vshrl.u32 %v1870_v12, 16  ;;  %v125_v15 = vshll.u32 %v1870_v12, 16  ;;  %2118 = vmatprep.mubr.msk.bf16.mxu1 %vm161_vm0, %v1870_v12  ;;  %v2519_v20 = vld [vmem:[%s3162_s1 + $0x60] sm:$0xff]   ;;  %v2536_v27 = vld [vmem:[%s3162_s1 + $0x68] sm:$0xff]   ;;  %v2566_v37 = vld [vmem:[%s3162_s1 + $0x70] sm:$0xff]  }
   0x7   :  { %2101 = vmatpush3.bf16.msra.mxu0 %v2448_v2  ;;  %v130_v17 = vshll.u32 %v2502_v13, 16  ;;  %v134_v18 = vshrl.u32 %v2502_v13, 16  ;;  %v294_v28 = vld [vmem:[%s3163_s0] sm:$0xe]  ;;  %v300_v29 = vrot.slane %v2502_v13, 1  ;;  %v2576_v43 = vld [vmem:[%s3162_s1 + $0x58] sm:$0xff]  }
   0x8   :  { %2113 = vmatpush3.bf16.msra.mxu1 %v2455_v3  ;;  %2102 = vmatprep.subr.bf16.mxu0 %v2462_v4  ;;  %v127_v19 = vrot.slane %v125_v15, 1  ;;  %v1885_v30 = vcombine.low %v294_v28, %v2489_v9  ;;  %v383_v31 = vld [vmem:[%s3163_s0] sm:$0x8]  ;;  %v384_v32 = vld [vmem:[%s3163_s0 + $0xc] sm:$0x7]  ;;  %v2583_v45 = vld [vmem:[%s3162_s1 + $0x78] sm:$0xff]  }
   0x9   :  { %2114 = vmatprep.subr.bf16.mxu1 %v2468_v5  ;;  %v132_v21 = vrot.slane %v130_v17, 1  ;;  %v1892_v33 = vcombine.low %v383_v31, %v2489_v9  ;;  %v1893_v34 = vcombine.low %v2494_v10, %v384_v32  ;;  %v2589_v46 = vld [vmem:[%s3163_s0 + $0xc] sm:$0xf]  ;;  %v2600_v50 = vld [vmem:[%s3162_s1 + $0x80] sm:$0xff]   ;;  %v2635_v63 = vld [vmem:[%s3163_s0 + $0x8] sm:$0xf] }
   0xa   :  { %v128_v22 = vor.u32 %v127_v19, %v123_v14  ;;  %v299_v35 = vrot.slane %v1885_v30, 1  ;;  %v1900_v47 = vcombine.low %v2494_v10, %v2589_v46  ;;  %v2605_v51 = vld [vmem:[%s3162_s1 + $0xa0] sm:$0xff]   ;;  %v2610_v54 = vld [vmem:[%s3162_s1 + $0x88] sm:$0xff]   ;;  %v2642_v8 = vld [vmem:[%s3162_s1 + $0x90] sm:$0xff]  }
   0xb   :  { %2103 = vmatpush3.bf16.msra.mxu0 %v2462_v4  ;;  %v136_v24 = vor.u32 %v134_v18, %v132_v21  ;;  %v392_v38 = vrot.slane %v1892_v33, 3  ;;  %v393_v39 = vrot.slane %v1893_v34, 3  ;;  %v482_v42 = vshrl.u32 %v1892_v33, 16  ;;  %v2619_v58 = vld [vmem:[%s3162_s1 + $0xa8] sm:$0xff]   ;;  %v662_v62 = vld [vmem:[%s3163_s0 + $0x4] sm:$0xc] }
   0xc   :  { %2115 = vmatpush3.bf16.msra.mxu1 %v2468_v5  ;;  %2104 = vmatprep.subr.bf16.mxu0 %v2473_v6  ;;  %v133_v26 = vsel %vm121_vm1, %v128_v22, %v132_v21  ;;  %v301_v40 = vsel %vm298_vm2, %v299_v35, %v300_v29  ;;  %v485_v44 = vshll.u32 %v1892_v33, 16  ;;  %v490_v52 = vshrl.u32 %v1900_v47, 16  ;;  %v664_v9 = vld [vmem:[%s3163_s0 + $0xc] sm:$0xf]  ;;  %v761_v11 = vld [vmem:[%s3163_s0 + $0x10] sm:$0x7] }
   0xd   :  { %2116 = vmatprep.subr.bf16.mxu1 %v2479_v7  ;;  %2106 = vmatprep.mubr.msk.bf16.mxu0 %vm161_vm0, %v133_v26  ;;  %v394_v41 = vsel %vm391_vm3, %v392_v38, %v393_v39  ;;  %v484_v48 = vrot.slane %v482_v42, 3  ;;  %v493_v53 = vshll.u32 %v1900_v47, 16  ;;  %v2648_v10 = vcombine.low %v662_v62, %v2635_v63  ;;  %v2658_v12 = vld [vmem:[%s3162_s1 + $0xb0] sm:$0xff]   ;;  %v2678_v21 = vld [vmem:[%s3162_s1 + $0x98] sm:$0xff]   ;;  %v2690_v30 = vld [vmem:[%s3162_s1 + $0xc0] sm:$0xff]  }
   0xe   :  { %v487_v49 = vrot.slane %v485_v44, 4  ;;  %v492_v56 = vrot.slane %v490_v52, 3  ;;  %v2660_v13 = vcombine.low %v664_v9, %v761_v11  ;;  %v665_v14 = vld [vmem:[%s3163_s0 + $0x10] sm:$0x3]  ;;  %v2683_v22 = vld [vmem:[%s3162_s1 + $0xb8] sm:$0xff]   ;;  %v2695_v31 = vld [vmem:[%s3162_s1 + $0xe0] sm:$0xff]   ;;  %v1908_v47 = vcombine.low %v2589_v46, %v2589_v46 }
   0xf   :  { %2105 = vmatpush3.bf16.msra.mxu0 %v2473_v6  ;;  %v495_v57 = vrot.slane %v493_v53, 4  ;;  %v767_v15 = vshrl.u32 %v2648_v10, 16  ;;  %v770_v17 = vshll.u32 %v2648_v10, 16  ;;  %v1953_v32 = vld [vmem:[%s3163_s0 + $0x18] sm:$0x8]  ;;  %v677_v38 = vrot.slane %v2648_v10, 2 }
  0x10   :  { %2117 = vmatpush3.bf16.msra.mxu1 %v2479_v7  ;;  %2122 = vmatprep.subr.bf16.mxu0 %v2509_v16  ;;  %v488_v55 = vor.u32 %v487_v49, %v484_v48  ;;  %v775_v18 = vshrl.u32 %v2660_v13, 16  ;;  %v778_v19 = vshll.u32 %v2660_v13, 16  ;;  %v2705_v33 = vld [vmem:[%s3163_s0 + $0x1c] sm:$0xf]  ;;  %v2710_v34 = vld [vmem:[%s3163_s0 + $0x20] sm:$0xf] }
  0x11   :  { %2134 = vmatprep.subr.bf16.mxu1 %v2519_v20  ;;  %v2621_v59 = vor.u32 %v495_v57, %v492_v56  ;;  %v772_v26 = vrot.slane %v770_v17, 3  ;;  %v1954_v35 = vld [vmem:[%s3163_s0 + $0x24] sm:$0x7]  ;;  %v2733_v48 = vld [vmem:[%s3162_s1 + $0xc8] sm:$0xff]   ;;  %v2748_v46 = vld [vmem:[%s3163_s0 + $0x20] sm:$0xf] }
  0x12   :  { %2107 = vmatmul.mubr.msk.bf16.vlgmr.msra.gmra.mrb[0].mxu0 %vm161_vm0, %v136_v24  ;;  %v769_v24 = vrot.slane %v767_v15, 2  ;;  %v777_v28 = vrot.slane %v775_v18, 2  ;;  %v1956_v42 = vcombine.low %v2710_v34, %v1954_v35  ;;  %v2726_v44 = vld [vmem:[%s3163_s0 + $0x24] sm:$0xf]  ;;  %v2738_v49 = vld [vmem:[%s3162_s1 + $0xe8] sm:$0xff]  }
  0x13   :  { %2119 = vmatmul.mubr.msk.bf16.vlgmr.msra.gmra.mrb[0].mxu1 %vm161_vm0, %v1878_v23  ;;  %2123 = vmatpush3.bf16.msra.mxu0 %v2509_v16  ;;  %v497_v61 = vsel %vm480_vm4, %v488_v55, %v2621_v59  ;;  %v1916_v23 = vcombine.low %v664_v9, %v665_v14  ;;  %3172 = vst [vmem:[#allocation2_spill] sm:$0xff] %v2738_v49  ;;  %v1967_v55 = vld [vmem:[%s3163_s0 + $0x1c] sm:$0xc]  ;;  %v1941_v56 = vld [vmem:[%s3163_s0 + $0x24] sm:$0x1] }
  0x14   :  { %2135 = vmatpush3.bf16.msra.mxu1 %v2519_v20  ;;  %2124 = vmatprep.subr.bf16.mxu0 %v2529_v25  ;;  %v773_v52 = vor.u32 %v772_v26, %v769_v24  ;;  %v1960_v62 = vcombine.low %v2710_v34, %v2726_v44  ;;  %v1969_v11 = vld [vmem:[%s3163_s0 + $0x24] sm:$0xf]  ;;  %v1970_v14 = vld [vmem:[%s3163_s0 + $0x28] sm:$0x3]  ;;  %v1971_v18 = vcombine.low %v1967_v55, %v2748_v46 }
  0x15   :  { %2136 = vmatprep.subr.bf16.mxu1 %v2536_v27  ;;  %2130 = vmatprep.mubr.msk.bf16.mxu0 %vm161_vm0, %v301_v40  ;;  %v1938_v40 = vld [vmem:[%s3163_s0 + $0x18] sm:$0xf]  ;;  %v1972_v35 = vcombine.low %v1969_v11, %v1970_v14 }
  0x16   :  { %2142 = vmatprep.mubr.msk.bf16.mxu1 %vm161_vm0, %v394_v41  ;;  %v1955_v41 = vcombine.low %v1953_v32, %v2705_v33  ;;  %v1359_v32 = vshll.u32 %v1960_v62, 16 }
  0x17   :  { %2125 = vmatpush3.bf16.msra.mxu0 %v2529_v25 }
  0x18   :  { %2137 = vmatpush3.bf16.msra.mxu1 %v2536_v27  ;;  %2126 = vmatprep.subr.bf16.mxu0 %v2561_v36  ;;  %v1283_v57 = vrot.slane %v1955_v41, 3  ;;  %v1348_v9 = vshrl.u32 %v1955_v41, 16  ;;  %v1351_v10 = vshll.u32 %v1955_v41, 16  ;;  %v2803_v41 = vld [vmem:[%s3162_s1 + $0xf0] sm:$0xff]  }
  0x19   :  { %2138 = vmatprep.subr.bf16.mxu1 %v2566_v37 }
  0x1a   :  { %v1350_v24 = vrot.slane %v1348_v9, 3  ;;  %v1353_v26 = vrot.slane %v1351_v10, 4  ;;  %v1562_v9 = vshll.u32 %v1971_v18, 16  ;;  %v864_v10 = vld [vmem:[%s3163_s0 + $0x4] sm:$0x8] }
  0x1b   :  { %2127 = vmatpush3.bf16.msra.mxu0 %v2561_v36 }
  0x1c   :  { %2139 = vmatpush3.bf16.msra.mxu1 %v2566_v37  ;;  %2128 = vmatprep.subr.bf16.mxu0 %v2576_v43 }
  0x1d   :  { %2140 = vmatprep.subr.bf16.mxu1 %v2583_v45 }
  0x1f   :  { %2129 = vmatpush3.bf16.msra.mxu0 %v2576_v43 }
  0x20   :  { %2141 = vmatpush3.bf16.msra.mxu1 %v2583_v45  ;;  %2146 = vmatprep.subr.bf16.mxu0 %v2600_v50 }
  0x21   :  { %2158 = vmatprep.subr.bf16.mxu1 %v2605_v51 }
  0x22   :  { %2131 = vmatmul.mubr.msk.bf16.vlgmr.msra.gmra.mrb[4].mxu0 %vm161_vm0, %v300_v29  ;;  %v780_v29 = vrot.slane %v778_v19, 3  ;;  %v1975_v19 = vld [vmem:[%s3163_s0 + $0x28] sm:$0x7] }
  0x23   :  { %2143 = vmatmul.mubr.msk.bf16.vlgmr.msra.gmra.mrb[4].mxu1 %vm161_vm0, %v393_v39  ;;  %2147 = vmatpush3.bf16.msra.mxu0 %v2600_v50  ;;  %v2716_v39 = vrot.slane %v1916_v23, 2  ;;  %v2806_v55 = vcombine.low %v1969_v11, %v1975_v19 }
  0x24   :  { %2159 = vmatpush3.bf16.msra.mxu1 %v2605_v51  ;;  %2148 = vmatprep.subr.bf16.mxu0 %v2610_v54  ;;  %v2740_v53 = vor.u32 %v780_v29, %v777_v28  ;;  %v1356_v28 = vshrl.u32 %v1960_v62, 16  ;;  %v2788_v29 = vcombine.low %v2710_v34, %v1941_v56  ;;  %v1361_v56 = vrot.slane %v1359_v32, 4 }
  0x25   :  { %2160 = vmatprep.subr.bf16.mxu1 %v2619_v58  ;;  %2154 = vmatprep.mubr.msk.bf16.mxu0 %vm161_vm0, %v497_v61  ;;  %v2760_v61 = vcombine.low %v1938_v40, %v2705_v33  ;;  %v679_v15 = vsel %vm676_vm5, %v677_v38, %v2716_v39  ;;  %v1494_v38 = vrot.slane %v1971_v18, 2  ;;  %v2798_v40 = vld [vmem:[%s3162_s1 + $0xd0] sm:$0xff]   ;;  %v1559_v62 = vshrl.u32 %v1971_v18, 16 }
  0x26   :  { %2166 = vmatprep.mubr.msk.bf16.mxu1 %vm161_vm0, %v1907_v60  ;;  %v2755_v60 = vrot.slane %v1956_v42, 3  ;;  %v782_v23 = vsel %vm765_vm6, %v773_v52, %v2740_v53  ;;  %v1358_v52 = vrot.slane %v1356_v28, 3  ;;  %v1567_v14 = vshrl.u32 %v2806_v55, 16  ;;  %v2837_v28 = vld [vmem:[%s3162_s1 + $0xf8] sm:$0xff]  }
  0x27   :  { %2149 = vmatpush3.bf16.msra.mxu0 %v2610_v54  ;;  %v1091_v42 = vshll.u32 %v2760_v61, 16  ;;  %v1096_v19 = vshll.u32 %v2788_v29, 16 }
  0x28   :  { %2161 = vmatpush3.bf16.msra.mxu1 %v2619_v58  ;;  %2150 = vmatprep.subr.bf16.mxu0 %v2642_v8  ;;  %v2774_v17 = vsel %vm391_vm3, %v1283_v57, %v2755_v60  ;;  %v2810_v57 = vrot.slane %v1972_v35, 2  ;;  %v1569_v32 = vrot.slane %v1567_v14, 2 }
  0x29   :  { %2162 = vmatprep.subr.bf16.mxu1 %v2658_v12 }
  0x2a   :  { %3173 = vst [vmem:[#allocation3_spill] sm:$0xff] %v2810_v57  ;;  %v2825_v18 = vsel %vm676_vm5, %v1494_v38, %v2810_v57  ;;  %v3174_v57 = vrot.slane %v2806_v55, 3 }
  0x2b   :  { %2151 = vmatpush3.bf16.msra.mxu0 %v2642_v8 }
  0x2c   :  { %2163 = vmatpush3.bf16.msra.mxu1 %v2658_v12  ;;  %2152 = vmatprep.subr.bf16.mxu0 %v2678_v21 }
  0x2d   :  { %2164 = vmatprep.subr.bf16.mxu1 %v2683_v22 }
  0x2f   :  { %2153 = vmatpush3.bf16.msra.mxu0 %v2678_v21 }
  0x30   :  { %2165 = vmatpush3.bf16.msra.mxu1 %v2683_v22  ;;  %2170 = vmatprep.subr.bf16.mxu0 %v2690_v30 }
  0x31   :  { %2182 = vmatprep.subr.bf16.mxu1 %v2695_v31 }
  0x32   :  { %2155 = vmatmul.mubr.msk.bf16.vlgmr.msra.gmra.mrb[8].mxu0 %vm161_vm0, %v2621_v59  ;;  %v1979_v59 = vld [vmem:[%s3163_s0 + $0x1c] sm:$0x8] }
  0x33   :  { %2167 = vmatmul.mubr.msk.bf16.vlgmr.msra.gmra.mrb[8].mxu1 %vm161_vm0, %v1908_v47  ;;  %2171 = vmatpush3.bf16.msra.mxu0 %v2690_v30  ;;  %v1354_v47 = vor.u32 %v1353_v26, %v1350_v24  ;;  %v1570_v24 = vshll.u32 %v2806_v55, 16  ;;  %v1980_v11 = vcombine.low %v1979_v59, %v2748_v46  ;;  %v1564_v26 = vrot.slane %v1562_v9, 3  ;;  %v2832_v46 = vld [vmem:[%s3162_s1 + $0xd8] sm:$0xff]  }
  0x34   :  { %2183 = vmatpush3.bf16.msra.mxu1 %v2695_v31  ;;  %2172 = vmatprep.subr.bf16.mxu0 %v2733_v48  ;;  %v1930_v59 = vcombine.low %v864_v10, %v2635_v63  ;;  %v1093_v9 = vrot.slane %v1091_v42, 1  ;;  %v2860_v63 = vld [vmem:[%s3162_s1 + $0x100] sm:$0xff]  }
  0x35   :  { %2184 = vmatprep.subr.bf16.mxu1 %v2738_v49  ;;  %2178 = vmatprep.mubr.msk.bf16.mxu0 %vm161_vm0, %v679_v15  ;;  %v2821_v15 = vor.u32 %v1361_v56, %v1358_v52  ;;  %v1572_v35 = vrot.slane %v1570_v24, 3  ;;  %v1636_v38 = vrot.slane %v1980_v11, 3  ;;  %v1089_v52 = vshrl.u32 %v2760_v61, 16  ;;  %v2874_v11 = vld [vmem:[%s3162_s1 + $0x108] sm:$0xff]  }
  0x36   :  { %2190 = vmatprep.mubr.msk.bf16.mxu1 %vm161_vm0, %v782_v23  ;;  %v1561_v23 = vrot.slane %v1559_v62, 2  ;;  %v1098_v24 = vrot.slane %v1096_v19, 1 }
  0x37   :  { %2173 = vmatpush3.bf16.msra.mxu0 %v2733_v48  ;;  %v2843_v56 = vsel %vm480_vm4, %v1354_v47, %v2821_v15  ;;  %v2851_v14 = vsel %vm391_vm3, %v1636_v38, %v3174_v57  ;;  %v868_v47 = vrot.slane %v1930_v59, 3  ;;  %v869_v57 = vrot.slane %v2660_v13, 3 }
  0x38   :  { %2185 = vmatpush3.bf16.msra.mxu1 %v2738_v49  ;;  %2174 = vmatprep.subr.bf16.mxu0 %v2798_v40  ;;  %v1565_v62 = vor.u32 %v1564_v26, %v1561_v23  ;;  %v2846_v49 = vor.u32 %v1572_v35, %v1569_v32  ;;  %v1094_v10 = vor.u32 %v1093_v9, %v1089_v52  ;;  %v2889_v23 = vld [vmem:[%s3162_s1 + $0x110] sm:$0xff]   ;;  %v1216_v35 = vrot.slane %v2788_v29, 1 }
  0x39   :  { %2186 = vmatprep.subr.bf16.mxu1 %v2803_v41  ;;  %v870_v13 = vsel %vm391_vm3, %v868_v47, %v869_v57 }
  0x3a   :  { %v2864_v42 = vsel %vm765_vm6, %v1565_v62, %v2846_v49  ;;  %v1099_v19 = vsel %vm121_vm1, %v1094_v10, %v1098_v24 }
  0x3b   :  { %2175 = vmatpush3.bf16.msra.mxu0 %v2798_v40 }
  0x3c   :  { %2187 = vmatpush3.bf16.msra.mxu1 %v2803_v41  ;;  %2176 = vmatprep.subr.bf16.mxu0 %v2832_v46 }
  0x3d   :  { %2188 = vmatprep.subr.bf16.mxu1 %v2837_v28 }
  0x3f   :  { %2177 = vmatpush3.bf16.msra.mxu0 %v2832_v46 }
  0x40   :  { %2189 = vmatpush3.bf16.msra.mxu1 %v2837_v28  ;;  %2194 = vmatprep.subr.bf16.mxu0 %v2860_v63 }
  0x41   :  { %2206 = vmatprep.subr.bf16.mxu1 %v2437_v0 }
  0x42   :  { %2179 = vmatmul.mubr.msk.bf16.vlgmr.msra.gmra.mrb[12].mxu0 %vm161_vm0, %v2716_v39  ;;  %v2903_v39 = vld [vmem:[%s3162_s1 + $0x118] sm:$0xff]  }
  0x43   :  { %2191 = vmatmul.mubr.msk.bf16.vlgmr.msra.gmra.mrb[12].mxu1 %vm161_vm0, %v2740_v53  ;;  %2195 = vmatpush3.bf16.msra.mxu0 %v2860_v63  ;;  %v1100_v53 = vshrl.u32 %v2788_v29, 16 }
  0x44   :  { %2207 = vmatpush3.bf16.msra.mxu1 %v2437_v0  ;;  %2196 = vmatprep.subr.bf16.mxu0 %v2874_v11  ;;  %v1949_v0 = vld [vmem:[%s3163_s0 + $0x18] sm:$0xe] }
  0x45   :  { %2208 = vmatprep.subr.bf16.mxu1 %v2448_v2  ;;  %2202 = vmatprep.mubr.msk.bf16.mxu0 %vm161_vm0, %v870_v13  ;;  %v1950_v26 = vcombine.low %v1949_v0, %v2705_v33 }
  0x46   :  { %2214 = vmatprep.mubr.msk.bf16.mxu1 %vm161_vm0, %v1099_v19 }
  0x47   :  { %2197 = vmatpush3.bf16.msra.mxu0 %v2874_v11  ;;  %v1215_v32 = vrot.slane %v1950_v26, 1 }
  0x48   :  { %2209 = vmatpush3.bf16.msra.mxu1 %v2448_v2  ;;  %2198 = vmatprep.subr.bf16.mxu0 %v2889_v23  ;;  %v1102_v2 = vor.u32 %v1100_v53, %v1098_v24 }
  0x49   :  { %2210 = vmatprep.subr.bf16.mxu1 %v2462_v4 }
  0x4b   :  { %2199 = vmatpush3.bf16.msra.mxu0 %v2889_v23 }
  0x4c   :  { %2211 = vmatpush3.bf16.msra.mxu1 %v2462_v4  ;;  %2200 = vmatprep.subr.bf16.mxu0 %v2903_v39  ;;  %v1217_v4 = vsel %vm298_vm2, %v1215_v32, %v1216_v35 }
  0x4d   :  { %2212 = vmatprep.subr.bf16.mxu1 %v2473_v6 }
  0x4f   :  { %2201 = vmatpush3.bf16.msra.mxu0 %v2903_v39 }
  0x50   :  { %2213 = vmatpush3.bf16.msra.mxu1 %v2473_v6  ;;  %2218 = vmatprep.subr.bf16.mxu0 %v2442_v1  ;;  %v3175_v6 = vld [vmem:[#allocation3_spill] sm:$0xff] }
  0x51   :  { %2230 = vmatprep.subr.bf16.mxu1 %v2509_v16 }
  0x52   :  { %2203 = vmatmul.mubr.msk.bf16.vlgmr.msra.gmra.mrb[16].mxu0 %vm161_vm0, %v869_v57 }
  0x53   :  { %2215 = vmatmul.mubr.msk.bf16.vlgmr.msra.gmra.mrb[16].mxu1 %vm161_vm0, %v1102_v2  ;;  %2219 = vmatpush3.bf16.msra.mxu0 %v2442_v1  ;;  %v1946_v1 = vcombine.low %v2710_v34, %v2710_v34 }
  0x54   :  { %2231 = vmatpush3.bf16.msra.mxu1 %v2509_v16  ;;  %2220 = vmatprep.subr.bf16.mxu0 %v2455_v3  ;;  %v3177_v16 = vrot.slane %v2806_v55, 3 }
  0x55   :  { %2232 = vmatprep.subr.bf16.mxu1 %v2529_v25  ;;  %2226 = vmatprep.mubr.msk.bf16.mxu0 %vm161_vm0, %v2760_v61 }
  0x56   :  { %2238 = vmatprep.mubr.msk.bf16.mxu1 %vm161_vm0, %v1217_v4 }
  0x57   :  { %2221 = vmatpush3.bf16.msra.mxu0 %v2455_v3  ;;  %v1963_v3 = vcombine.low %v2705_v33, %v2710_v34 }
  0x58   :  { %2233 = vmatpush3.bf16.msra.mxu1 %v2529_v25  ;;  %2222 = vmatprep.subr.bf16.mxu0 %v2468_v5  ;;  %v24_v25 = vld [vmem:[%s3164_s4] sm:$0xff] }
  0x59   :  { %2234 = vmatprep.subr.bf16.mxu1 %v2561_v36 }
  0x5b   :  { %2223 = vmatpush3.bf16.msra.mxu0 %v2468_v5  ;;  %v1964_v5 = vcombine.low %v2726_v44, %v2726_v44 }
  0x5c   :  { %2235 = vmatpush3.bf16.msra.mxu1 %v2561_v36  ;;  %2224 = vmatprep.subr.bf16.mxu0 %v2479_v7  ;;  %v26_v36 = vld [vmem:[%s3164_s4 + $0x10] sm:$0xff] }
  0x5d   :  { %2236 = vmatprep.subr.bf16.mxu1 %v2576_v43 }
  0x5f   :  { %2225 = vmatpush3.bf16.msra.mxu0 %v2479_v7  ;;  %v3176_v7 = vld [vmem:[#allocation2_spill] sm:$0xff] }
  0x60   :  { %2237 = vmatpush3.bf16.msra.mxu1 %v2576_v43  ;;  %2242 = vmatprep.subr.bf16.mxu0 %v2519_v20 }
  0x61   :  { %2254 = vmatprep.subr.bf16.mxu1 %v2600_v50 }
  0x62   :  { %2227 = vmatmul.mubr.msk.bf16.vlgmr.msra.gmra.mrb[20].mxu0 %vm161_vm0, %v1946_v1 }
  0x63   :  { %2239 = vmatmul.mubr.msk.bf16.vlgmr.msra.gmra.mrb[20].mxu1 %vm161_vm0, %v1216_v35  ;;  %2243 = vmatpush3.bf16.msra.mxu0 %v2519_v20  ;;  %v2396_v20 = vmov 0  }
  0x64   :  { %2255 = vmatpush3.bf16.msra.mxu1 %v2600_v50  ;;  %2244 = vmatprep.subr.bf16.mxu0 %v2536_v27 }
  0x65   :  { %2256 = vmatprep.subr.bf16.mxu1 %v2610_v54  ;;  %2250 = vmatprep.mubr.msk.bf16.mxu0 %vm161_vm0, %v2774_v17 }
  0x66   :  { %2262 = vmatprep.mubr.msk.bf16.mxu1 %vm161_vm0, %v2843_v56  ;;  %2321 = vset.pattern.permute.xlu0 %v2396_v20 }
  0x67   :  { %2245 = vmatpush3.bf16.msra.mxu0 %v2536_v27  ;;  %1027 = vperm.xlu0 %2321, %v24_v25   ;;  %v25_v27 = vld [vmem:[%s3164_s4 + $0x8] sm:$0xff] }
  0x68   :  { %2257 = vmatpush3.bf16.msra.mxu1 %v2610_v54  ;;  %2246 = vmatprep.subr.bf16.mxu0 %v2566_v37 }
  0x69   :  { %2258 = vmatprep.subr.bf16.mxu1 %v2642_v8 }
  0x6b   :  { %2247 = vmatpush3.bf16.msra.mxu0 %v2566_v37  ;;  %1032 = vperm.xlu0 %2321, %v25_v27  }
  0x6c   :  { %2259 = vmatpush3.bf16.msra.mxu1 %v2642_v8  ;;  %2248 = vmatprep.subr.bf16.mxu0 %v2583_v45 }
  0x6d   :  { %2260 = vmatprep.subr.bf16.mxu1 %v2678_v21 }
  0x6f   :  { %2249 = vmatpush3.bf16.msra.mxu0 %v2583_v45  ;;  %1037 = vperm.xlu0 %2321, %v26_v36  }
  0x70   :  { %2261 = vmatpush3.bf16.msra.mxu1 %v2678_v21  ;;  %2266 = vmatprep.subr.bf16.mxu0 %v2605_v51 }
  0x71   :  { %2278 = vmatprep.subr.bf16.mxu1 %v2690_v30 }
  0x72   :  { %2251 = vmatmul.mubr.msk.bf16.vlgmr.msra.gmra.mrb[24].mxu0 %vm161_vm0, %v2755_v60 }
  0x73   :  { %2263 = vmatmul.mubr.msk.bf16.vlgmr.msra.gmra.mrb[24].mxu1 %vm161_vm0, %v2821_v15  ;;  %2267 = vmatpush3.bf16.msra.mxu0 %v2605_v51 }
  0x74   :  { %2279 = vmatpush3.bf16.msra.mxu1 %v2690_v30  ;;  %2268 = vmatprep.subr.bf16.mxu0 %v2619_v58 }
  0x75   :  { %2280 = vmatprep.subr.bf16.mxu1 %v2733_v48  ;;  %2274 = vmatprep.mubr.msk.bf16.mxu0 %vm161_vm0, %v1963_v3  ;;  %v3027_v3 = vld [vmem:[%s3165_s2] ss:$0 sm:$0xff]  ;;  %s2397_s2 = smov 4  }
  0x76   :  { %2286 = vmatprep.mubr.msk.bf16.mxu1 %vm161_vm0, %v2825_v18 }
  0x77   :  { %2269 = vmatpush3.bf16.msra.mxu0 %v2619_v58 }
  0x78   :  { %2281 = vmatpush3.bf16.msra.mxu1 %v2733_v48  ;;  %2270 = vmatprep.subr.bf16.mxu0 %v2658_v12 }
  0x79   :  { %2282 = vmatprep.subr.bf16.mxu1 %v2798_v40 }
  0x7b   :  { %2271 = vmatpush3.bf16.msra.mxu0 %v2658_v12 }
  0x7c   :  { %2283 = vmatpush3.bf16.msra.mxu1 %v2798_v40  ;;  %2272 = vmatprep.subr.bf16.mxu0 %v2683_v22 }
  0x7d   :  { %2284 = vmatprep.subr.bf16.mxu1 %v2832_v46 }
  0x7f   :  { %2273 = vmatpush3.bf16.msra.mxu0 %v2683_v22 }
  0x80   :  { %2285 = vmatpush3.bf16.msra.mxu1 %v2832_v46  ;;  %2290 = vmatprep.subr.bf16.mxu0 %v2695_v31 }
  0x81   :  { %2302 = vmatprep.subr.bf16.mxu1 %v2860_v63 }
  0x82   :  { %2275 = vmatmul.mubr.msk.bf16.vlgmr.msra.gmra.mrb[28].mxu0 %vm161_vm0, %v1964_v5 }
  0x83   :  { %2287 = vmatmul.mubr.msk.bf16.vlgmr.msra.gmra.mrb[28].mxu1 %vm161_vm0, %v3175_v6  ;;  %2291 = vmatpush3.bf16.msra.mxu0 %v2695_v31 }
  0x84   :  { %2303 = vmatpush3.bf16.msra.mxu1 %v2860_v63  ;;  %2292 = vmatprep.subr.bf16.mxu0 %v3176_v7 }
  0x85   :  { %2304 = vmatprep.subr.bf16.mxu1 %v2874_v11  ;;  %2298 = vmatprep.mubr.msk.bf16.mxu0 %vm161_vm0, %v2864_v42 }
  0x86   :  { %2310 = vmatprep.mubr.msk.bf16.mxu1 %vm161_vm0, %v2851_v14 }
  0x87   :  { %2293 = vmatpush3.bf16.msra.mxu0 %v3176_v7 }
  0x88   :  { %2305 = vmatpush3.bf16.msra.mxu1 %v2874_v11  ;;  %2294 = vmatprep.subr.bf16.mxu0 %v2803_v41 }
  0x89   :  { %2306 = vmatprep.subr.bf16.mxu1 %v2889_v23 }
  0x8b   :  { %2295 = vmatpush3.bf16.msra.mxu0 %v2803_v41 }
  0x8c   :  { %2307 = vmatpush3.bf16.msra.mxu1 %v2889_v23  ;;  %2296 = vmatprep.subr.bf16.mxu0 %v2837_v28 }
  0x8d   :  { %2308 = vmatprep.subr.bf16.mxu1 %v2903_v39 }
  0x8f   :  { %2297 = vmatpush3.bf16.msra.mxu0 %v2837_v28 }
  0x90   :  { %2309 = vmatpush3.bf16.msra.mxu1 %v2903_v39 }
  0x92   :  { %2299 = vmatmul.mubr.msk.bf16.vlgmr.msra.gmra.mrb[32].mxu0 %vm161_vm0, %v2846_v49 }
  0x93   :  { %2311 = vmatmul.mubr.msk.bf16.vlgmr.msra.gmra.mrb[32].mxu1 %vm161_vm0, %v3177_v16 }
  0xe5   :  { %v2108_v37 = vpop.f32.mrb[0].mxu0 }
  0xe6   :  { %v2120_v43 = vpop.f32.mrb[0].mxu1  ;;  %v202_v50 = vpop.f32.mrb[1].mxu0 }
  0xe7   :  { %v289_v45 = vadd.f32 %v2120_v43, %v2108_v37  ;;  %v280_v51 = vpop.f32.mrb[1].mxu1  ;;  %v2109_v58 = vpop.f32.mrb[2].mxu0 }
  0xe8   :  { %v281_v54 = vadd.f32 %v280_v51, %v202_v50  ;;  %v2121_v8 = vpop.f32.mrb[2].mxu1  ;;  %v205_v12 = vpop.f32.mrb[3].mxu0 }
  0xe9   :  { %v283_v21 = vpop.f32.mrb[3].mxu1 }
  0xea   :  { %v284_v22 = vadd.f32 %v283_v21, %v205_v12 }
  0xf5   :  { %v2132_v30 = vpop.f32.mrb[4].mxu0 }
  0xf6   :  { %v2144_v31 = vpop.f32.mrb[4].mxu1  ;;  %v382_v33 = vadd.f32 %v2132_v30, %v289_v45  ;;  %v366_v34 = vpop.f32.mrb[5].mxu0 }
  0xf7   :  { %v459_v44 = vpop.f32.mrb[5].mxu1  ;;  %v380_v48 = vadd.f32 %v366_v34, %v281_v54  ;;  %v2133_v49 = vpop.f32.mrb[6].mxu0 }
  0xf8   :  { %v2145_v60 = vpop.f32.mrb[6].mxu1  ;;  %v475_v61 = vadd.f32 %v2144_v31, %v382_v33  ;;  %v369_v17 = vpop.f32.mrb[7].mxu0 }
  0xf9   :  { %v462_v29 = vpop.f32.mrb[7].mxu1  ;;  %v473_v40 = vadd.f32 %v459_v44, %v380_v48  ;;  %v381_v41 = vadd.f32 %v369_v17, %v284_v22 }
  0xfb   :  { %v474_v55 = vadd.f32 %v462_v29, %v381_v41 }
 0x105   :  { %v2156_v15 = vpop.f32.mrb[8].mxu0 }
 0x106   :  { %v2168_v18 = vpop.f32.mrb[8].mxu1  ;;  %v578_v46 = vadd.f32 %v2156_v15, %v475_v61  ;;  %v562_v28 = vpop.f32.mrb[9].mxu0 }
 0x107   :  { %v645_v38 = vpop.f32.mrb[9].mxu1  ;;  %v576_v59 = vadd.f32 %v562_v28, %v473_v40  ;;  %v2157_v52 = vpop.f32.mrb[10].mxu0 }
 0x108   :  { %v2169_v56 = vpop.f32.mrb[10].mxu1  ;;  %v661_v62 = vadd.f32 %v2168_v18, %v578_v46  ;;  %v565_v9 = vpop.f32.mrb[11].mxu0 }
 0x109   :  { %v648_v14 = vpop.f32.mrb[11].mxu1  ;;  %v659_v63 = vadd.f32 %v645_v38, %v576_v59  ;;  %v577_v42 = vadd.f32 %v565_v9, %v474_v55 }
 0x10b   :  { %v660_v47 = vadd.f32 %v648_v14, %v577_v42 }
 0x115   :  { %v2180_v57 = vpop.f32.mrb[12].mxu0 }
 0x116   :  { %v2192_v10 = vpop.f32.mrb[12].mxu1  ;;  %v760_v24 = vadd.f32 %v2180_v57, %v661_v62  ;;  %v744_v11 = vpop.f32.mrb[13].mxu0 }
 0x117   :  { %v847_v13 = vpop.f32.mrb[13].mxu1  ;;  %v758_v19 = vadd.f32 %v744_v11, %v659_v63  ;;  %v2181_v23 = vpop.f32.mrb[14].mxu0 }
 0x118   :  { %v2193_v0 = vpop.f32.mrb[14].mxu1  ;;  %v863_v39 = vadd.f32 %v2192_v10, %v760_v24  ;;  %v747_v53 = vpop.f32.mrb[15].mxu0 }
 0x119   :  { %v850_v26 = vpop.f32.mrb[15].mxu1  ;;  %v861_v2 = vadd.f32 %v847_v13, %v758_v19  ;;  %v759_v32 = vadd.f32 %v747_v53, %v660_v47 }
 0x11b   :  { %v862_v35 = vadd.f32 %v850_v26, %v759_v32 }
 0x125   :  { %v2204_v4 = vpop.f32.mrb[16].mxu0 }
 0x126   :  { %v2216_v1 = vpop.f32.mrb[16].mxu1  ;;  %v3029_v5 = vadd.f32 %v2204_v4, %v863_v39  ;;  %v935_v6 = vpop.f32.mrb[17].mxu0 }
 0x127   :  { %v1143_v7 = vpop.f32.mrb[17].mxu1  ;;  %v949_v16 = vadd.f32 %v935_v6, %v861_v2  ;;  %v2205_v20 = vpop.f32.mrb[18].mxu0 }
 0x128   :  { %v2217_v25 = vpop.f32.mrb[18].mxu1  ;;  %v938_v27 = vpop.f32.mrb[19].mxu0 }
 0x129   :  { %v1146_v36 = vpop.f32.mrb[19].mxu1  ;;  %v3032_v37 = vadd.f32 %v3027_v3, %v949_v16  ;;  %v950_v43 = vadd.f32 %v938_v27, %v862_v35 }
 0x12b   :  { %v3035_v45 = vadd.f32 %v3027_v3, %v950_v43  ;;  %v998_v50 = vmul.f32 %v3032_v37, %v3032_v37 }
 0x12d   :  { %1004 = vrot.lane.b32.xlu1 %v998_v50, %s2397_s2  ;;  %v999_v51 = vmul.f32 %v3035_v45, %v3035_v45 }
 0x131   :  { %1006 = vrot.lane.b32.xlu1 %v999_v51, %s2397_s2 }
 0x135   :  { %v2228_v54 = vpop.f32.mrb[20].mxu0 }
 0x136   :  { %v2240_v58 = vpop.f32.mrb[20].mxu1  ;;  %v1206_v8 = vadd.f32 %v2228_v54, %v2216_v1  ;;  %v1197_v12 = vpop.f32.mrb[21].mxu0  ;;  %v3056_v54 = vadd.f32 %v3027_v3, %v3029_v5 }
 0x137   :  { %v1258_v21 = vpop.f32.mrb[21].mxu1  ;;  %v1198_v22 = vadd.f32 %v1197_v12, %v1143_v7  ;;  %v2229_v30 = vpop.f32.mrb[22].mxu0 }
 0x138   :  { %v2241_v31 = vpop.f32.mrb[22].mxu1  ;;  %v1274_v33 = vadd.f32 %v2240_v58, %v1206_v8  ;;  %v1200_v34 = vpop.f32.mrb[23].mxu0  ;;  %v1000_v12 = vmul.f32 %v3056_v54, %v3056_v54 }
 0x139   :  { %v1261_v44 = vpop.f32.mrb[23].mxu1  ;;  %v1272_v48 = vadd.f32 %v1258_v21, %v1198_v22  ;;  %v1201_v49 = vadd.f32 %v1200_v34, %v1146_v36  ;;  %v962_v21 = vmul.f32 0.5, %v3035_v45  ;;  %v995_v31 = vadd.f32 1.0, %v3032_v37 }
 0x13b   :  { %v1273_v60 = vadd.f32 %v1261_v44, %v1201_v49  ;;  %v966_v22 = vmul.f32 1.442695, %v962_v21  ;;  %v1028_v49 = vpop.permute.xlu0 %1027 }
 0x145   :  { %v2252_v61 = vpop.f32.mrb[24].mxu0 }
 0x146   :  { %v2264_v17 = vpop.f32.mrb[24].mxu1  ;;  %v1342_v29 = vadd.f32 %v2252_v61, %v1274_v33  ;;  %v1326_v40 = vpop.f32.mrb[25].mxu0  ;;  %v996_v61 = vadd.f32 1.0, %v3035_v45 }
 0x147   :  { %v1404_v41 = vpop.f32.mrb[25].mxu1  ;;  %v1340_v55 = vadd.f32 %v1326_v40, %v1272_v48  ;;  %v2253_v15 = vpop.f32.mrb[26].mxu0 }
 0x148   :  { %v2265_v18 = vpop.f32.mrb[26].mxu1  ;;  %v1420_v46 = vadd.f32 %v2264_v17, %v1342_v29  ;;  %v1329_v28 = vpop.f32.mrb[27].mxu0 }
 0x149   :  { %v1407_v38 = vpop.f32.mrb[27].mxu1  ;;  %v1418_v59 = vadd.f32 %v1404_v41, %v1340_v55  ;;  %v1341_v52 = vadd.f32 %v1329_v28, %v1273_v60  ;;  %v1033_v18 = vpop.permute.xlu0 %1032 }
 0x14b   :  { %v1419_v56 = vadd.f32 %v1407_v38, %v1341_v52 }
 0x155   :  { %v2276_v62 = vpop.f32.mrb[28].mxu0 }
 0x156   :  { %v2288_v9 = vpop.f32.mrb[28].mxu1  ;;  %v1479_v14 = vadd.f32 %v2276_v62, %v1420_v46  ;;  %v1463_v63 = vpop.f32.mrb[29].mxu0  ;;  %v963_v62 = vmul.f32 0.5, %v3056_v54 }
 0x157   :  { %v1537_v42 = vpop.f32.mrb[29].mxu1  ;;  %v1477_v47 = vadd.f32 %v1463_v63, %v1418_v59  ;;  %v2277_v57 = vpop.f32.mrb[30].mxu0 }
 0x158   :  { %v2289_v10 = vpop.f32.mrb[30].mxu1  ;;  %v1553_v24 = vadd.f32 %v2288_v9, %v1479_v14  ;;  %v1466_v11 = vpop.f32.mrb[31].mxu0  ;;  %v968_v63 = vmul.f32 1.442695, %v963_v62 }
 0x159   :  { %v1540_v13 = vpop.f32.mrb[31].mxu1  ;;  %v1551_v19 = vadd.f32 %v1537_v42, %v1477_v47  ;;  %v1478_v23 = vadd.f32 %v1466_v11, %v1419_v56  ;;  %v1038_v42 = vpop.permute.xlu0 %1037 }
 0x15b   :  { %v1552_v0 = vadd.f32 %v1540_v13, %v1478_v23 }
 0x165   :  { %v2300_v39 = vpop.f32.mrb[32].mxu0 }
 0x166   :  { %v2312_v53 = vpop.f32.mrb[32].mxu1  ;;  %v1631_v26 = vadd.f32 %v2300_v39, %v1553_v24  ;;  %v1615_v2 = vpop.f32.mrb[33].mxu0 }
 0x167   :  { %v1679_v32 = vpop.f32.mrb[33].mxu1  ;;  %v1629_v35 = vadd.f32 %v1615_v2, %v1551_v19  ;;  %v2301_v4 = vpop.f32.mrb[34].mxu0 }
 0x168   :  { %v2313_v1 = vpop.f32.mrb[34].mxu1  ;;  %v1695_v6 = vadd.f32 %v2312_v53, %v1631_v26  ;;  %v1618_v7 = vpop.f32.mrb[35].mxu0  ;;  %v997_v4 = vadd.f32 1.0, %v3056_v54 }
 0x169   :  { %v1682_v16 = vpop.f32.mrb[35].mxu1  ;;  %v1693_v20 = vadd.f32 %v1679_v32, %v1629_v35  ;;  %v1630_v25 = vadd.f32 %v1618_v7, %v1552_v0 }
 0x16a   :  { %v3047_v43 = vadd.f32 %v3027_v3, %v1695_v6 }
 0x16b   :  { %v3044_v27 = vadd.f32 %v3027_v3, %v1693_v20  ;;  %v1694_v36 = vadd.f32 %v1682_v16, %v1630_v25 }
 0x16c   :  { %v1739_v8 = vmul.f32 %v3047_v43, %v3047_v43  ;;  %v1701_v52 = vmul.f32 0.5, %v3047_v43  ;;  %v1736_v32 = vadd.f32 1.0, %v3047_v43 }
 0x16d   :  { %v3050_v50 = vadd.f32 %v3027_v3, %v1694_v36  ;;  %v1737_v51 = vmul.f32 %v3044_v27, %v3044_v27  ;;  %v961_v3 = vmul.f32 0.5, %v3032_v37  ;;  %v1699_v38 = vmul.f32 0.5, %v3044_v27 }
 0x16e   :  { %v1706_v14 = vmul.f32 1.442695, %v1701_v52  ;;  %v1734_v57 = vadd.f32 1.0, %v3044_v27 }
 0x16f   :  { %1743 = vrot.lane.b32.xlu0 %v1737_v51, %s2397_s2  ;;  %v1738_v58 = vmul.f32 %v3050_v50, %v3050_v50  ;;  %v964_v5 = vmul.f32 1.442695, %v961_v3  ;;  %v1700_v59 = vmul.f32 0.5, %v3050_v50  ;;  %v1702_v56 = vmul.f32 1.442695, %v1699_v38 }
 0x170   :  { %v1735_v19 = vadd.f32 1.0, %v3050_v50 }
 0x171   :  { %1745 = vrot.lane.b32.xlu1 %v1738_v58, %s2397_s2  ;;  %2384 = vpow2.f32 %v964_v5  ;;  %v1704_v9 = vmul.f32 1.442695, %v1700_v59 }
 0x172   :  { %2386 = vpow2.f32 %v966_v22 }
 0x173   :  { %1747 = vrot.lane.b32.xlu0 %v1739_v8, %s2397_s2  ;;  %2388 = vpow2.f32 %v1702_v56 }
 0x174   :  { %2390 = vpow2.f32 %v1704_v9  ;;  %v971_v9 = vld [vmem:[%s3166_s3 + $0x8] sm:$0xff] }
 0x175   :  { %1008 = vrot.lane.b32.xlu1 %v1000_v12, %s2397_s2  ;;  %2392 = vpow2.f32 %v1706_v14 }
 0x176   :  { %2394 = vpow2.f32 %v968_v63 }
 0x17b   :  { %v3070_v30 = vpop.eup %2384 }
 0x17c   :  { %v1016_v44 = vmul.f32 %v3070_v30, %v3070_v30  ;;  %v3075_v48 = vpop.eup %2386 }
 0x17d   :  { %v1017_v41 = vmul.f32 %v3075_v48, %v3075_v48  ;;  %v2389_v47 = vpop.eup %2388 }
 0x17e   :  { %v2391_v10 = vpop.eup %2390  ;;  %v1755_v13 = vmul.f32 %v2389_v47, %v2389_v47 }
 0x17f   :  { %v2393_v23 = vpop.eup %2392  ;;  %v1756_v26 = vmul.f32 %v2391_v10, %v2391_v10 }
 0x180   :  { %v2395_v39 = vpop.eup %2394  ;;  %v1757_v7 = vmul.f32 %v2393_v23, %v2393_v23 }
 0x181   :  { %v1018_v20 = vmul.f32 %v2395_v39, %v2395_v39 }
 0x19f   :  { %v1005_v33 = vpop.permute.xlu1 %1004 }
 0x1a0   :  { %v1013_v34 = vsub.f32 %v995_v31, %v1005_v33 }
 0x1a2   :  { %v1019_v60 = vsub.f32 %v1013_v34, %v1016_v44 }
 0x1a3   :  { %v1007_v17 = vpop.permute.xlu1 %1006 }
 0x1a4   :  { %v1022_v29 = vmul.f32 -0.5, %v1019_v60  ;;  %v1014_v40 = vsub.f32 %v996_v61, %v1007_v17 }
 0x1a6   :  { %v1020_v55 = vsub.f32 %v1014_v40, %v1017_v41  ;;  %v1040_v15 = vmul.f32 %v1028_v49, %v1022_v29 }
 0x1a8   :  { %v1023_v46 = vmul.f32 -0.5, %v1020_v55  ;;  %1046 = vrot.lane.b32.xlu1 %v1040_v15, %s2398_s10 }
 0x1aa   :  { %v1041_v28 = vmul.f32 %v1033_v18, %v1023_v46 }
 0x1ac   :  { %1048 = vrot.lane.b32.xlu0 %v1041_v28, %s2398_s10 }
 0x1e1   :  { %v1744_v24 = vpop.permute.xlu0 %1743 }
 0x1e2   :  { %v1752_v11 = vsub.f32 %v1734_v57, %v1744_v24 }
 0x1e3   :  { %v1746_v0 = vpop.permute.xlu1 %1745 }
 0x1e4   :  { %v1758_v53 = vsub.f32 %v1752_v11, %v1755_v13  ;;  %v1753_v2 = vsub.f32 %v1735_v19, %v1746_v0  ;;  %v972_v11 = vld [vmem:[%s3166_s3 + $0x10] sm:$0xff]  ;;  %v1983_v13 = vld [vmem:[%s3166_s3 + $0x18] sm:$0xff] }
 0x1e5   :  { %v1748_v35 = vpop.permute.xlu0 %1747 }
 0x1e6   :  { %v1761_v1 = vmul.f32 -0.5, %v1758_v53  ;;  %v1759_v6 = vsub.f32 %v1753_v2, %v1756_v26  ;;  %v1754_v16 = vsub.f32 %v1736_v32, %v1748_v35 }
 0x1e7   :  { %v1009_v25 = vpop.permute.xlu1 %1008 }
 0x1e8   :  { %v1762_v36 = vmul.f32 -0.5, %v1759_v6  ;;  %v1760_v51 = vsub.f32 %v1754_v16, %v1757_v7  ;;  %v1015_v58 = vsub.f32 %v997_v4, %v1009_v25  ;;  %v1764_v8 = vmul.f32 %v1761_v1, %v1028_v49  ;;  %v1985_v4 = vld [vmem:[%s3166_s3 + $0x28] sm:$0xff] }
 0x1ea   :  { %v1763_v12 = vmul.f32 -0.5, %v1760_v51  ;;  %v1021_v3 = vsub.f32 %v1015_v58, %v1018_v20  ;;  %1770 = vrot.lane.b32.xlu1 %v1764_v8, %s2398_s10  ;;  %v1765_v5 = vmul.f32 %v1762_v36, %v1033_v18 }
 0x1ec   :  { %v1024_v21 = vmul.f32 -0.5, %v1021_v3  ;;  %1772 = vrot.lane.b32.xlu0 %v1765_v5, %s2398_s10  ;;  %v1766_v31 = vmul.f32 %v1763_v12, %v1038_v42 }
 0x1ee   :  { %v1042_v22 = vmul.f32 %v1038_v42, %v1024_v21 }
 0x1f0   :  { %1050 = vrot.lane.b32.xlu1 %v1042_v22, %s2398_s10  ;;  %1774 = vrot.lane.b32.xlu0 %v1766_v31, %s2398_s10 }
 0x21a   :  { %v1047_v33 = vpop.permute.xlu1 %1046 }
 0x21b   :  { %v1055_v17 = vsel %vm991_vm7, %v1047_v33, 0.0 }
 0x21e   :  { %v1049_v34 = vpop.permute.xlu0 %1048 }
 0x21f   :  { %v1056_v49 = vsel %vm991_vm7, %v1049_v34, 0.0 }
 0x220   :  { %v1057_v40 = vadd.f32 %v1056_v49, %v1055_v17 }
 0x25c   :  { %v1771_v44 = vpop.permute.xlu1 %1770 }
 0x25d   :  { %v1779_v29 = vsel %vm991_vm7, %v1771_v44, 0.0 }
 0x25e   :  { %v1773_v60 = vpop.permute.xlu0 %1772 }
 0x25f   :  { %v1780_v61 = vsel %vm991_vm7, %v1773_v60, 0.0 }
 0x260   :  { %v1781_v41 = vadd.f32 %v1780_v61, %v1779_v29 }
 0x262   :  { %v1051_v55 = vpop.permute.xlu1 %1050  ;;  %v1775_v15 = vpop.permute.xlu0 %1774 }
 0x263   :  { %v1058_v18 = vsel %vm991_vm7, %v1051_v55, 0.0  ;;  %v1782_v46 = vsel %vm991_vm7, %v1775_v15, 0.0 }
 0x264   :  { %v1059_v28 = vadd.f32 %v1058_v18, %v1057_v40  ;;  %v1783_v38 = vadd.f32 %v1782_v46, %v1781_v41 }
 0x266   :  { %1060 = vadd.xlane.f32.xlu1 %v1059_v28  ;;  %1784 = vadd.xlane.f32.xlu0 %v1783_v38 }
 0x277   :  { %978 = vrot.lane.b32.xlu1 %v3075_v48, %s2398_s10  ;;  %v970_v48 = vld [vmem:[%s3166_s3] sm:$0xff] }
 0x27b   :  { %980 = vrot.lane.b32.xlu1 %v2395_v39, %s2398_s10 }
 0x27c   :  { %976 = vrot.lane.b32.xlu0 %v3070_v30, %s2398_s10 }
 0x27f   :  { %1717 = vrot.lane.b32.xlu1 %v2391_v10, %s2398_s10 }
 0x280   :  { %1715 = vrot.lane.b32.xlu0 %v2389_v47, %s2398_s10 }
 0x284   :  { %1719 = vrot.lane.b32.xlu0 %v2393_v23, %s2398_s10 }
 0x2f3   :  { %v1061_v59 = vpop.xlane.xlu1 %1060  ;;  %v1785_v52 = vpop.xlane.xlu0 %1784 }
 0x2f4   :  { %v1062_v56 = vrot.slane %v1061_v59, 4  ;;  %v1786_v62 = vrot.slane %v1785_v52, 4 }
 0x2f6   :  { %v1063_v14 = vadd.f32 %v1062_v56, %v1061_v59  ;;  %v1787_v30 = vadd.f32 %v1786_v62, %v1785_v52 }
 0x2f7   :  { %v979_v63 = vpop.permute.xlu1 %978  ;;  %v977_v42 = vpop.permute.xlu0 %976 }
 0x2f8   :  { %v1064_v57 = vrot.slane %v1063_v14, 2  ;;  %v1788_v47 = vrot.slane %v1787_v30, 2  ;;  %v986_v10 = vmul.f32 %v979_v63, %v971_v9  ;;  %v985_v24 = vmul.f32 %v977_v42, %v970_v48 }
 0x2fa   :  { %v989_v19 = vadd.f32 %v986_v10, %v3035_v45  ;;  %v988_v23 = vadd.f32 %v985_v24, %v3032_v37  ;;  %v1065_v0 = vadd.f32 %v1064_v57, %v1063_v14  ;;  %v1789_v39 = vadd.f32 %v1788_v47, %v1787_v30  ;;  %v1984_v37 = vld [vmem:[%s3166_s3 + $0x20] sm:$0xff] }
 0x2fb   :  { %v981_v53 = vpop.permute.xlu1 %980  ;;  %v1716_v26 = vpop.permute.xlu0 %1715 }
 0x2fc   :  { %993 = vst.msk [vmem:[%s3167_s5 + $0x8] sm:$0xff] %vm991_vm7, %v989_v19  ;;  %992 = vst.msk [vmem:[%s3167_s5] sm:$0xff] %vm991_vm7, %v988_v23  ;;  %v987_v2 = vmul.f32 %v981_v53, %v972_v11  ;;  %v1724_v32 = vmul.f32 %v1983_v13, %v1716_v26  ;;  %v1066_v35 = vrot.slane %v1065_v0, 1  ;;  %v1790_v45 = vrot.slane %v1789_v39, 1 }
 0x2fe   :  { %v990_v1 = vadd.f32 %v987_v2, %v3056_v54  ;;  %v1727_v6 = vadd.f32 %v1724_v32, %v3044_v27  ;;  %v1067_v7 = vadd.f32 %v1066_v35, %v1065_v0  ;;  %v1791_v16 = vadd.f32 %v1790_v45, %v1789_v39 }
 0x2ff   :  { %v1718_v20 = vpop.permute.xlu1 %1717  ;;  %v1720_v25 = vpop.permute.xlu0 %1719 }
 0x300   :  { %994 = vst.msk [vmem:[%s3167_s5 + $0x10] sm:$0xff] %vm991_vm7, %v990_v1  ;;  %1986 = vst.msk [vmem:[%s3167_s5 + $0x18] sm:$0xff] %vm991_vm7, %v1727_v6  ;;  %v1725_v36 = vmul.f32 %v1984_v37, %v1718_v20  ;;  %v1726_v51 = vmul.f32 %v1985_v4, %v1720_v25 }
 0x301   :  { %2314 = vpush %v1067_v7 }
 0x302   :  { %2316 = vpush %v1791_v16  ;;  %v1728_v27 = vadd.f32 %v1725_v36, %v3050_v50  ;;  %v1729_v54 = vadd.f32 %v1726_v51, %v3047_v43 }
 0x304   :  { %1987 = vst.msk [vmem:[%s3167_s5 + $0x20] sm:$0xff] %vm991_vm7, %v1728_v27  ;;  %1988 = vst.msk [vmem:[%s3167_s5 + $0x28] sm:$0xff] %vm991_vm7, %v1729_v54 }
 0x332   :  { %s2315_s8 = spop %2314 }
 0x333   :  { %s1069_s4 = smul.f32 0.015625, %s2315_s8  ;;  %s2317_s9 = spop %2316 }
 0x334   :  { %s1793_s2 = smul.f32 0.015625, %s2317_s9 }
 0x335   :  { %v1070_v58 = vstv %s1069_s4 }
 0x336   :  { %1072 = vst [vmem:[%s3168_s6] sm:$0xff] %v1070_v58  ;;  %v1794_v43 = vstv %s1793_s2 }
 0x337   :  { %1989 = vst [vmem:[%s3168_s6 + $0x8] sm:$0xff] %v1794_v43 }

</bundles_post_ra>
